<compile_context>
chip_gen: v7x
topology: tpu7x:2x2x1
jax: 0.10.0
libtpu: 0.0.40
codegen_flags: <defaults>
</compile_context>

<pallas_src>
import jax
import jax.numpy as jnp
from jax.experimental import pallas as pl
from jax.experimental.pallas import tpu as pltpu

IN_F = 14
HID = 200
OUT_F = 1
TILE_B = 2048          # default batch tile (amortizes per-grid-step overhead)


def _round_up(v, m):
    return ((v + m - 1) // m) * m


def ddnet_kernel(x_ref,
                 w0_ref, b0_ref,
                 w1_ref, b1_ref,
                 w2_ref, b2_ref,
                 w3_ref, b3_ref,
                 w4_ref, b4_ref,
                 w5_ref, b5_ref,
                 out_ref):
    # fc0: (tile_b, 14) @ (14, 200) on the MXU; x arrives pre-cast to bf16,
    # accumulation and the gate value c stay f32.
    c = jnp.dot(x_ref[...], w0_ref[...],
                preferred_element_type=jnp.float32) + b0_ref[...]

    # dd .. dd4, each gated elementwise (in f32) by c.
    h = c
    for w_ref, b_ref in ((w1_ref, b1_ref), (w2_ref, b2_ref),
                         (w3_ref, b3_ref), (w4_ref, b4_ref)):
        hd = jnp.dot(h.astype(jnp.bfloat16), w_ref[...],
                     preferred_element_type=jnp.float32)
        h = (hd + b_ref[...]) * c

    # fc2 (200 -> 1): VPU multiply + XLU lane reduce, f32 throughout.  An N=1
    # MXU matmul would waste almost the whole array while the MXU is busy.
    y = jnp.sum(h * w5_ref[...], axis=-1, keepdims=True) + b5_ref[...]   # (tile_b, 1)

    # Direct (tile_b, 1) store: only tile_b*4 bytes of HBM writeback per tile.
    out_ref[...] = y.astype(out_ref.dtype)


def ddnet_forward(x, params, *, tile_b=TILE_B):
    """x: (B, 14) float32.  params: list of 6 (W, b) pairs with W in (in, out) layout."""
    B = x.shape[0]
    # Keep >= 2 grid steps when the batch allows (v7x megacore sharding of the
    # "parallel" axis); tile_b stays a multiple of 512 for clean sublane tiling.
    tile_b = max(512, min(tile_b, _round_up(pl.cdiv(B, 2), 512)))
    n_tiles = pl.cdiv(B, tile_b)
    b_pad = n_tiles * tile_b
    if b_pad != B:
        # Zero padding: padded tail rows compute finite garbage, sliced off below.
        x = jnp.pad(x, ((0, b_pad - B), (0, 0)))

    (w0, b0), (w1, b1), (w2, b2), (w3, b3), (w4, b4), (w5, b5) = params
    # bf16 MXU operands (halves x/weight HBM traffic); biases / gate stay f32.
    xb = x.astype(jnp.bfloat16)
    w0b, w1b, w2b, w3b, w4b = (w.astype(jnp.bfloat16) for w in (w0, w1, w2, w3, w4))
    w5_row = w5.reshape(1, HID).astype(jnp.float32)      # (1, 200) row for the VPU reduce
    b5_sc = b5.reshape(1, 1).astype(jnp.float32)

    flat = [xb, w0b, b0, w1b, b1, w2b, b2, w3b, b3, w4b, b4, w5_row, b5_sc]

    def const_spec(shape):
        # Same block every grid step -> stays VMEM-resident, no re-DMA.
        return pl.BlockSpec(shape, lambda i: (0, 0))

    in_specs = [
        pl.BlockSpec((tile_b, IN_F), lambda i: (i, 0)),   # x walks the batch
        const_spec((IN_F, HID)), const_spec((1, HID)),    # fc0
        const_spec((HID, HID)), const_spec((1, HID)),     # dd
        const_spec((HID, HID)), const_spec((1, HID)),     # dd2
        const_spec((HID, HID)), const_spec((1, HID)),     # dd3
        const_spec((HID, HID)), const_spec((1, HID)),     # dd4
        const_spec((1, HID)), const_spec((1, 1)),         # fc2 (row + scalar bias)
    ]
    out_specs = pl.BlockSpec((tile_b, OUT_F), lambda i: (i, 0))

    flops = 2 * b_pad * (IN_F * HID + 4 * HID * HID + HID)
    weight_bytes = (IN_F * HID + 4 * HID * HID) * 2 + (5 * HID + HID + 1) * 4
    bytes_accessed = b_pad * (IN_F * 2 + OUT_F * 4) + weight_bytes

    out = pl.pallas_call(
        ddnet_kernel,
        out_shape=jax.ShapeDtypeStruct((b_pad, OUT_F), jnp.float32),
        grid=(n_tiles,),
        in_specs=in_specs,
        out_specs=out_specs,
        compiler_params=pltpu.CompilerParams(
            dimension_semantics=("parallel",),
            vmem_limit_bytes=32 * 1024 * 1024),
        cost_estimate=pl.CostEstimate(
            flops=flops, transcendentals=0, bytes_accessed=bytes_accessed),
    )(*flat)

    return out[:B]


def init_params(key):
    """Deterministic PyTorch-Linear-style init (uniform +-1/sqrt(fan_in)).
    Returns weights already transposed to (in, out)."""
    dims = [(IN_F, HID), (HID, HID), (HID, HID), (HID, HID), (HID, HID), (HID, OUT_F)]
    params = []
    for (fan_in, fan_out) in dims:
        key, kw, kb = jax.random.split(key, 3)
        bound = 1.0 / jnp.sqrt(float(fan_in))
        w = jax.random.uniform(kw, (fan_in, fan_out), jnp.float32, -bound, bound)
        b = jax.random.uniform(kb, (1, fan_out), jnp.float32, -bound, bound)
        params.append((w, b))
    return params


def reference_forward(x, params):
    """Pure f32 reference (matches the PyTorch module semantics)."""
    (w0, b0), (w1, b1), (w2, b2), (w3, b3), (w4, b4), (w5, b5) = params
    c = x @ w0 + b0
    h = c
    for w, b in ((w1, b1), (w2, b2), (w3, b3), (w4, b4)):
        h = (h @ w + b) * c
    return h @ w5 + b5


def reference_forward_bf16(x, params):
    """Reference matching the kernel's mixed precision (bf16 MXU operands, f32 acc/gate)."""
    (w0, b0), (w1, b1), (w2, b2), (w3, b3), (w4, b4), (w5, b5) = params

    def mm(a, w):
        return jnp.dot(a.astype(jnp.bfloat16), w.astype(jnp.bfloat16),
                       preferred_element_type=jnp.float32)

    c = mm(x, w0) + b0
    h = c
    for w, b in ((w1, b1), (w2, b2), (w3, b3), (w4, b4)):
        h = (mm(h, w) + b) * c
    return jnp.sum(h * w5.reshape(1, HID), axis=-1, keepdims=True) + b5.reshape(1, 1)


if __name__ == "__main__":
    key = jax.random.PRNGKey(0)
    key, kx1, kx2 = jax.random.split(key, 3)
    params = init_params(key)

    # Case 1: batch not a multiple of the tile -> 2 steps of 512 rows + padded tail.
    B1 = 1000
    x1 = jax.random.normal(kx1, (B1, IN_F), jnp.float32)
    out1 = jax.block_until_ready(ddnet_forward(x1, params))
    assert out1.shape == (B1, OUT_F)

    # Case 2: larger batch exercising the default 2048-row tiles (3 grid steps).
    B2 = 4500
    x2 = jax.random.normal(kx2, (B2, IN_F), jnp.float32)
    out2 = jax.block_until_ready(ddnet_forward(x2, params))
    assert out2.shape == (B2, OUT_F)

    for x, out in ((x1, out1), (x2, out2)):
        ref_bf16 = reference_forward_bf16(x, params)   # same precision recipe as the kernel
        ref_f32 = reference_forward(x, params)         # pure f32 semantics
        assert jnp.allclose(out, ref_bf16, atol=1e-3, rtol=1e-3), \
            float(jnp.max(jnp.abs(out - ref_bf16)))
        assert jnp.allclose(out, ref_f32, atol=2e-2, rtol=2e-2), \
            float(jnp.max(jnp.abs(out - ref_f32)))

    print("KERNEL_OK")
</pallas_src>

<mosaic_0001>
module attributes {stable_mosaic.version = 11 : i64} {
  func.func @ddnet_kernel(%arg0: i32, %arg1: memref<512x14xbf16, #tpu.memory_space<vmem>>, %arg2: memref<14x200xbf16, #tpu.memory_space<vmem>>, %arg3: memref<1x200xf32, #tpu.memory_space<vmem>>, %arg4: memref<200x200xbf16, #tpu.memory_space<vmem>>, %arg5: memref<1x200xf32, #tpu.memory_space<vmem>>, %arg6: memref<200x200xbf16, #tpu.memory_space<vmem>>, %arg7: memref<1x200xf32, #tpu.memory_space<vmem>>, %arg8: memref<200x200xbf16, #tpu.memory_space<vmem>>, %arg9: memref<1x200xf32, #tpu.memory_space<vmem>>, %arg10: memref<200x200xbf16, #tpu.memory_space<vmem>>, %arg11: memref<1x200xf32, #tpu.memory_space<vmem>>, %arg12: memref<1x200xf32, #tpu.memory_space<vmem>>, %arg13: memref<1x1xf32, #tpu.memory_space<vmem>>, %arg14: memref<512x1xf32, #tpu.memory_space<vmem>>) attributes {dimension_semantics = [#tpu.dimension_semantics<parallel>], iteration_bounds = array<i64: 2>, scalar_prefetch = 0 : i64, scratch_operands = 0 : i64, tpu.core_type = #tpu.core_type<tc>, window_params = [{transform_indices = @transform_0, window_bounds = array<i64: 512, 14>}, {pipeline_mode = #tpu.pipeline_mode<synchronous>, transform_indices = @transform_1, window_bounds = array<i64: 14, 200>}, {pipeline_mode = #tpu.pipeline_mode<synchronous>, transform_indices = @transform_2, window_bounds = array<i64: 1, 200>}, {pipeline_mode = #tpu.pipeline_mode<synchronous>, transform_indices = @transform_3, window_bounds = array<i64: 200, 200>}, {pipeline_mode = #tpu.pipeline_mode<synchronous>, transform_indices = @transform_4, window_bounds = array<i64: 1, 200>}, {pipeline_mode = #tpu.pipeline_mode<synchronous>, transform_indices = @transform_5, window_bounds = array<i64: 200, 200>}, {pipeline_mode = #tpu.pipeline_mode<synchronous>, transform_indices = @transform_6, window_bounds = array<i64: 1, 200>}, {pipeline_mode = #tpu.pipeline_mode<synchronous>, transform_indices = @transform_7, window_bounds = array<i64: 200, 200>}, {pipeline_mode = #tpu.pipeline_mode<synchronous>, transform_indices = @transform_8, window_bounds = array<i64: 1, 200>}, {pipeline_mode = #tpu.pipeline_mode<synchronous>, transform_indices = @transform_9, window_bounds = array<i64: 200, 200>}, {pipeline_mode = #tpu.pipeline_mode<synchronous>, transform_indices = @transform_10, window_bounds = array<i64: 1, 200>}, {pipeline_mode = #tpu.pipeline_mode<synchronous>, transform_indices = @transform_11, window_bounds = array<i64: 1, 200>}, {pipeline_mode = #tpu.pipeline_mode<synchronous>, transform_indices = @transform_12, window_bounds = array<i64: 1, 1>}, {transform_indices = @transform_13, window_bounds = array<i64: 512, 1>}]} {
    %c0 = arith.constant 0 : index
    %c0_0 = arith.constant 0 : index
    %0 = vector.load %arg1[%c0, %c0_0] : memref<512x14xbf16, #tpu.memory_space<vmem>>, vector<512x14xbf16>
    %c0_1 = arith.constant 0 : index
    %c0_2 = arith.constant 0 : index
    %1 = vector.load %arg2[%c0_1, %c0_2] : memref<14x200xbf16, #tpu.memory_space<vmem>>, vector<14x200xbf16>
    %cst = arith.constant dense<0.000000e+00> : vector<512x200xf32>
    %2 = tpu.matmul %0, %1, %cst {dimension_numbers = #tpu.dot_dimension_numbers<[1], [0], [0], [1], [0, 0, 1, 1], [], []>} : vector<512x14xbf16>, vector<14x200xbf16>, vector<512x200xf32> -> vector<512x200xf32>
    %c0_3 = arith.constant 0 : index
    %c0_4 = arith.constant 0 : index
    %3 = vector.load %arg3[%c0_3, %c0_4] : memref<1x200xf32, #tpu.memory_space<vmem>>, vector<1x200xf32>
    %4 = vector.broadcast %3 : vector<1x200xf32> to vector<512x200xf32>
    %5 = arith.addf %2, %4 : vector<512x200xf32>
    %6 = arith.truncf %5 : vector<512x200xf32> to vector<512x200xbf16>
    %c0_5 = arith.constant 0 : index
    %c0_6 = arith.constant 0 : index
    %7 = vector.load %arg4[%c0_5, %c0_6] : memref<200x200xbf16, #tpu.memory_space<vmem>>, vector<200x200xbf16>
    %cst_7 = arith.constant dense<0.000000e+00> : vector<512x200xf32>
    %8 = tpu.matmul %6, %7, %cst_7 {dimension_numbers = #tpu.dot_dimension_numbers<[1], [0], [0], [1], [0, 0, 1, 1], [], []>} : vector<512x200xbf16>, vector<200x200xbf16>, vector<512x200xf32> -> vector<512x200xf32>
    %c0_8 = arith.constant 0 : index
    %c0_9 = arith.constant 0 : index
    %9 = vector.load %arg5[%c0_8, %c0_9] : memref<1x200xf32, #tpu.memory_space<vmem>>, vector<1x200xf32>
    %10 = vector.broadcast %9 : vector<1x200xf32> to vector<512x200xf32>
    %11 = arith.addf %8, %10 : vector<512x200xf32>
    %12 = arith.mulf %11, %5 : vector<512x200xf32>
    %13 = arith.truncf %12 : vector<512x200xf32> to vector<512x200xbf16>
    %c0_10 = arith.constant 0 : index
    %c0_11 = arith.constant 0 : index
    %14 = vector.load %arg6[%c0_10, %c0_11] : memref<200x200xbf16, #tpu.memory_space<vmem>>, vector<200x200xbf16>
    %cst_12 = arith.constant dense<0.000000e+00> : vector<512x200xf32>
    %15 = tpu.matmul %13, %14, %cst_12 {dimension_numbers = #tpu.dot_dimension_numbers<[1], [0], [0], [1], [0, 0, 1, 1], [], []>} : vector<512x200xbf16>, vector<200x200xbf16>, vector<512x200xf32> -> vector<512x200xf32>
    %c0_13 = arith.constant 0 : index
    %c0_14 = arith.constant 0 : index
    %16 = vector.load %arg7[%c0_13, %c0_14] : memref<1x200xf32, #tpu.memory_space<vmem>>, vector<1x200xf32>
    %17 = vector.broadcast %16 : vector<1x200xf32> to vector<512x200xf32>
    %18 = arith.addf %15, %17 : vector<512x200xf32>
    %19 = arith.mulf %18, %5 : vector<512x200xf32>
    %20 = arith.truncf %19 : vector<512x200xf32> to vector<512x200xbf16>
    %c0_15 = arith.constant 0 : index
    %c0_16 = arith.constant 0 : index
    %21 = vector.load %arg8[%c0_15, %c0_16] : memref<200x200xbf16, #tpu.memory_space<vmem>>, vector<200x200xbf16>
    %cst_17 = arith.constant dense<0.000000e+00> : vector<512x200xf32>
    %22 = tpu.matmul %20, %21, %cst_17 {dimension_numbers = #tpu.dot_dimension_numbers<[1], [0], [0], [1], [0, 0, 1, 1], [], []>} : vector<512x200xbf16>, vector<200x200xbf16>, vector<512x200xf32> -> vector<512x200xf32>
    %c0_18 = arith.constant 0 : index
    %c0_19 = arith.constant 0 : index
    %23 = vector.load %arg9[%c0_18, %c0_19] : memref<1x200xf32, #tpu.memory_space<vmem>>, vector<1x200xf32>
    %24 = vector.broadcast %23 : vector<1x200xf32> to vector<512x200xf32>
    %25 = arith.addf %22, %24 : vector<512x200xf32>
    %26 = arith.mulf %25, %5 : vector<512x200xf32>
    %27 = arith.truncf %26 : vector<512x200xf32> to vector<512x200xbf16>
    %c0_20 = arith.constant 0 : index
    %c0_21 = arith.constant 0 : index
    %28 = vector.load %arg10[%c0_20, %c0_21] : memref<200x200xbf16, #tpu.memory_space<vmem>>, vector<200x200xbf16>
    %cst_22 = arith.constant dense<0.000000e+00> : vector<512x200xf32>
    %29 = tpu.matmul %27, %28, %cst_22 {dimension_numbers = #tpu.dot_dimension_numbers<[1], [0], [0], [1], [0, 0, 1, 1], [], []>} : vector<512x200xbf16>, vector<200x200xbf16>, vector<512x200xf32> -> vector<512x200xf32>
    %c0_23 = arith.constant 0 : index
    %c0_24 = arith.constant 0 : index
    %30 = vector.load %arg11[%c0_23, %c0_24] : memref<1x200xf32, #tpu.memory_space<vmem>>, vector<1x200xf32>
    %31 = vector.broadcast %30 : vector<1x200xf32> to vector<512x200xf32>
    %32 = arith.addf %29, %31 : vector<512x200xf32>
    %33 = arith.mulf %32, %5 : vector<512x200xf32>
    %c0_25 = arith.constant 0 : index
    %c0_26 = arith.constant 0 : index
    %34 = vector.load %arg12[%c0_25, %c0_26] : memref<1x200xf32, #tpu.memory_space<vmem>>, vector<1x200xf32>
    %35 = vector.broadcast %34 : vector<1x200xf32> to vector<512x200xf32>
    %36 = arith.mulf %33, %35 : vector<512x200xf32>
    %cst_27 = arith.constant dense<0.000000e+00> : vector<512xf32>
    %37 = vector.multi_reduction <add>, %36, %cst_27 [1] : vector<512x200xf32> to vector<512xf32>
    %38 = vector.shape_cast %37 : vector<512xf32> to vector<512x1xf32>
    %c0_28 = arith.constant 0 : index
    %c0_29 = arith.constant 0 : index
    %39 = vector.load %arg13[%c0_28, %c0_29] : memref<1x1xf32, #tpu.memory_space<vmem>>, vector<1x1xf32>
    %40 = vector.broadcast %39 : vector<1x1xf32> to vector<512x1xf32>
    %41 = arith.addf %38, %40 : vector<512x1xf32>
    %c0_30 = arith.constant 0 : index
    %c0_31 = arith.constant 0 : index
    %42 = vector.load %arg14[%c0_30, %c0_31] : memref<512x1xf32, #tpu.memory_space<vmem>>, vector<512x1xf32>
    tpu.vector_store %arg14[%c0_30, %c0_31], %41 {strides = array<i32>} : memref<512x1xf32, #tpu.memory_space<vmem>>, vector<512x1xf32>,
    return
  }
  func.func @transform_0(%arg0: i32) -> (i32, i32) {
    %c0_i32 = arith.constant 0 : i32
    %c0_i32_0 = arith.constant 0 : i32
    return %arg0, %c0_i32 : i32, i32
  }
  func.func @transform_1(%arg0: i32) -> (i32, i32) {
    %c0_i32 = arith.constant 0 : i32
    %c0_i32_0 = arith.constant 0 : i32
    %c0_i32_1 = arith.constant 0 : i32
    return %c0_i32, %c0_i32_0 : i32, i32
  }
  func.func @transform_2(%arg0: i32) -> (i32, i32) {
    %c0_i32 = arith.constant 0 : i32
    %c0_i32_0 = arith.constant 0 : i32
    %c0_i32_1 = arith.constant 0 : i32
    return %c0_i32, %c0_i32_0 : i32, i32
  }
  func.func @transform_3(%arg0: i32) -> (i32, i32) {
    %c0_i32 = arith.constant 0 : i32
    %c0_i32_0 = arith.constant 0 : i32
    %c0_i32_1 = arith.constant 0 : i32
    return %c0_i32, %c0_i32_0 : i32, i32
  }
  func.func @transform_4(%arg0: i32) -> (i32, i32) {
    %c0_i32 = arith.constant 0 : i32
    %c0_i32_0 = arith.constant 0 : i32
    %c0_i32_1 = arith.constant 0 : i32
    return %c0_i32, %c0_i32_0 : i32, i32
  }
  func.func @transform_5(%arg0: i32) -> (i32, i32) {
    %c0_i32 = arith.constant 0 : i32
    %c0_i32_0 = arith.constant 0 : i32
    %c0_i32_1 = arith.constant 0 : i32
    return %c0_i32, %c0_i32_0 : i32, i32
  }
  func.func @transform_6(%arg0: i32) -> (i32, i32) {
    %c0_i32 = arith.constant 0 : i32
    %c0_i32_0 = arith.constant 0 : i32
    %c0_i32_1 = arith.constant 0 : i32
    return %c0_i32, %c0_i32_0 : i32, i32
  }
  func.func @transform_7(%arg0: i32) -> (i32, i32) {
    %c0_i32 = arith.constant 0 : i32
    %c0_i32_0 = arith.constant 0 : i32
    %c0_i32_1 = arith.constant 0 : i32
    return %c0_i32, %c0_i32_0 : i32, i32
  }
  func.func @transform_8(%arg0: i32) -> (i32, i32) {
    %c0_i32 = arith.constant 0 : i32
    %c0_i32_0 = arith.constant 0 : i32
    %c0_i32_1 = arith.constant 0 : i32
    return %c0_i32, %c0_i32_0 : i32, i32
  }
  func.func @transform_9(%arg0: i32) -> (i32, i32) {
    %c0_i32 = arith.constant 0 : i32
    %c0_i32_0 = arith.constant 0 : i32
    %c0_i32_1 = arith.constant 0 : i32
    return %c0_i32, %c0_i32_0 : i32, i32
  }
  func.func @transform_10(%arg0: i32) -> (i32, i32) {
    %c0_i32 = arith.constant 0 : i32
    %c0_i32_0 = arith.constant 0 : i32
    %c0_i32_1 = arith.constant 0 : i32
    return %c0_i32, %c0_i32_0 : i32, i32
  }
  func.func @transform_11(%arg0: i32) -> (i32, i32) {
    %c0_i32 = arith.constant 0 : i32
    %c0_i32_0 = arith.constant 0 : i32
    %c0_i32_1 = arith.constant 0 : i32
    return %c0_i32, %c0_i32_0 : i32, i32
  }
  func.func @transform_12(%arg0: i32) -> (i32, i32) {
    %c0_i32 = arith.constant 0 : i32
    %c0_i32_0 = arith.constant 0 : i32
    %c0_i32_1 = arith.constant 0 : i32
    return %c0_i32, %c0_i32_0 : i32, i32
  }
  func.func @transform_13(%arg0: i32) -> (i32, i32) {
    %c0_i32 = arith.constant 0 : i32
    %c0_i32_0 = arith.constant 0 : i32
    return %arg0, %c0_i32 : i32, i32
  }
}

</mosaic_0001>

<bundles_post_ra>
// kernel: tpu_custom_call.1
= control target key start
LH: loop header
LB: loop body
LE: loop exit
PB: predicated region body
PF: predicated region fallthrough
CT: control target
= control target key end

     0   :  { %s8535_s0 = inlined_call_operand.vmem [shape: bf16[1024,14], index: 0, kind: input, shape index: {}]   ;;  %s8536_s1 = inlined_call_operand.hbm [shape: bf16[14,200], index: 1, kind: input, shape index: {}]   ;;  %s8537_s2 = inlined_call_operand.vmem [shape: f32[1,200], index: 2, kind: input, shape index: {}]   ;;  %s8538_s3 = inlined_call_operand.vmem [shape: bf16[200,200], index: 3, kind: input, shape index: {}]   ;;  %s8539_s4 = inlined_call_operand.vmem [shape: f32[1,200], index: 4, kind: input, shape index: {}]   ;;  %s8540_s5 = inlined_call_operand.vmem [shape: bf16[200,200], index: 5, kind: input, shape index: {}]   ;;  %s8541_s6 = inlined_call_operand.vmem [shape: f32[1,200], index: 6, kind: input, shape index: {}]   ;;  %s8542_s7 = inlined_call_operand.vmem [shape: bf16[200,200], index: 7, kind: input, shape index: {}]   ;;  %s8543_s8 = inlined_call_operand.hbm [shape: f32[1,200], index: 8, kind: input, shape index: {}]   ;;  %s8544_s9 = inlined_call_operand.hbm [shape: bf16[200,200], index: 9, kind: input, shape index: {}]   ;;  %s8545_s10 = inlined_call_operand.vmem [shape: f32[1,200], index: 10, kind: input, shape index: {}]   ;;  %s8546_s11 = inlined_call_operand.vmem [shape: f32[1,200], index: 11, kind: input, shape index: {}]   ;;  %s8547_s12 = inlined_call_operand.<no memory space> [shape: f32[1,1], index: 12, kind: input, shape index: {}]   ;;  %s8548_s13 = inlined_call_operand.vmem [shape: f32[1024,1], index: 13, kind: output, shape index: {}]  }
   0x1   :  { %v18_v0 = vstv %s8547_s12 }
   0x2   :  { %19 = vst [vmem:[#allocation2] sm:$0x1] %v18_v0 }
   0x3   :  { %20 = vsyncpa [#allocation4], 0 }
   0x4   :  { %21 = vsyncpa [#allocation6], 0  ;;  %s5780_s27 = smov 0  }
   0x5 LB: > { %s5701_s28 = smov [#allocation5]   ;;  %s8552_s30 = sadd.s32 4294967295, %s5699_s27   ;;  %s5699_s27 = sphi %s5780_s27, %s27_s27  }
   0x6   : > { %s380_s29 = sshll.u32 %s5701_s28, 4  ;;  %p5051_p0 = scmp.ge.s32.totalorder %s5699_s27, 1  ;;  %s381_s29 = int_to_ptr.vmem [resolvable:$true] %s380_s29 }
   0x7   : > { %p336_p1 = scmp.lt.s32.totalorder %s5699_s27, 3  ;;  %p5790_p2 = scmp.eq.s32.totalorder %s8552_s30, 0 }
   0x8   : > { %s5702_s15 = smov [#allocation3]   ;;  %s5703_s18 = smov [#allocation7]  }
   0x9   : > { %s8810_s12 = scalar_select %p5790_p2, 1, 0 }
   0xa   : > { %p5794_p3 = pnand %p5051_p0, %p336_p1  ;;  %s348_s16 = sshll.u32 %s5702_s15, 4  ;;  %s5806_s16 = int_to_ptr.vmem [resolvable:$true] %s348_s16 }
   0xb   : > { %s390_s19 = sshll.u32 %s5703_s18, 4  ;;  %s5601_s22 = scalar_lea.hbm %s8543_s8, 32  ;;  %s5808_s19 = int_to_ptr.vmem [resolvable:$true] %s390_s19 }
   0xc   : > { %s8811_s14 = scalar_select %p5794_p3, 1, 0 }
   0xd   : > { %p5384_p4 = pneg %p5794_p3  ;;  %p5602_p6 = scmp.ne.s32.totalorder %s8543_s8, %s5601_s22 }
   0xe   : > { %p5608_p10 = scmp.lt.u32.totalorder %s5601_s22, %s8543_s8 }
   0xf   : > { %p5802_p5 = pnand %p5790_p2, %p5384_p4 }
  0x11   : > { %p5818_p7 = pneg %p5802_p5 }
  0x13   : > { %p5604_p8 = pnand %p5818_p7, %p5602_p6 }
  0x15   : > { %p5605_p9 = pneg %p5604_p8 }
  0x17   : > { %p5610_p11 = pnand %p5608_p10, %p5605_p9 }
  0x19   : > { %5613 = shalt.err (!%p5610_p11)
}
  0x1a   : > { %s5614_s15 = scalar_lea.vmem %s381_s29, 32  ;;  %p5622_p1 = scmp.lt.s32.totalorder %s381_s29, %s381_s29 }
  0x1b   : > { %p5615_p12 = scmp.ne.s32.totalorder %s381_s29, %s5614_s15  ;;  %p5623_p4 = scmp.lt.s32.totalorder %s5614_s15, %s5614_s15 }
  0x1d   : > { %p5617_p13 = pnand %p5615_p12, %p5818_p7  ;;  %p5624_p2 = por %p5623_p4, %p5622_p1 }
  0x1f   : > { %p5618_p0 = pneg %p5617_p13 }
  0x21   : > { %p5625_p3 = pnand %p5624_p2, %p5618_p0 }
  0x23   : > { %5628 = shalt.err (!%p5625_p3)
}
  0x24   : > { %5390 = dma.hbm_to_vmem [thread:$0]  (!%p5802_p5), %s8543_s8, 32, %s381_s29, [#allocation6]  }
  0x25   : > { %s5629_s23 = scalar_lea.hbm %s8536_s1, 256 }
  0x26   : > { %p5630_p6 = scmp.ne.s32.totalorder %s8536_s1, %s5629_s23  ;;  %p5636_p2 = scmp.lt.u32.totalorder %s5629_s23, %s8536_s1 }
  0x28   : > { %p5632_p8 = pnand %p5630_p6, %p5818_p7 }
  0x2a   : > { %p5633_p9 = pneg %p5632_p8 }
  0x2c   : > { %p5638_p3 = pnand %p5636_p2, %p5633_p9 }
  0x2e   : > { %5641 = shalt.err (!%p5638_p3)
}
  0x2f   : > { %s5642_s29 = scalar_lea.vmem %s5806_s16, 256  ;;  %p5650_p13 = scmp.lt.s32.totalorder %s5806_s16, %s5806_s16 }
  0x30   : > { %p5643_p10 = scmp.ne.s32.totalorder %s5806_s16, %s5642_s29  ;;  %p5651_p0 = scmp.lt.s32.totalorder %s5642_s29, %s5642_s29 }
  0x32   : > { %p5645_p11 = pnand %p5643_p10, %p5818_p7  ;;  %p5652_p1 = por %p5651_p0, %p5650_p13 }
  0x34   : > { %p5646_p12 = pneg %p5645_p11 }
  0x36   : > { %p5653_p4 = pnand %p5652_p1, %p5646_p12 }
  0x38   : > { %5656 = shalt.err (!%p5653_p4)
}
  0x39   : > { %s5704_s18 = smov 128   ;;  %s5705_s20 = smov 8  }
  0x3a   : > { %5387 = dma.hbm_to_vmem [thread:$0]  (!%p5802_p5), %s8536_s1, 256, %s5806_s16, [#allocation4], %s5704_s18, %s5704_s18, %s5705_s20  }
  0x3b   : > { %s5657_s26 = scalar_lea.hbm %s8544_s9, 3200 }
  0x3c   : > { %p5658_p6 = scmp.ne.s32.totalorder %s8544_s9, %s5657_s26  ;;  %p5664_p2 = scmp.lt.u32.totalorder %s5657_s26, %s8544_s9 }
  0x3e   : > { %p5660_p8 = pnand %p5658_p6, %p5818_p7 }
  0x40   : > { %p5661_p9 = pneg %p5660_p8 }
  0x42   : > { %p5666_p3 = pnand %p5664_p2, %p5661_p9 }
  0x44   : > { %5669 = shalt.err (!%p5666_p3)
}
  0x45   : > { %s5670_s16 = scalar_lea.vmem %s5808_s19, 3200  ;;  %p5678_p13 = scmp.lt.s32.totalorder %s5808_s19, %s5808_s19 }
  0x46   : > { %p5671_p10 = scmp.ne.s32.totalorder %s5808_s19, %s5670_s16  ;;  %p5679_p0 = scmp.lt.s32.totalorder %s5670_s16, %s5670_s16 }
  0x48   : > { %p5673_p11 = pnand %p5671_p10, %p5818_p7  ;;  %p5680_p1 = por %p5679_p0, %p5678_p13 }
  0x4a   : > { %p5674_p12 = pneg %p5673_p11 }
  0x4c   : > { %p5681_p4 = pnand %p5680_p1, %p5674_p12 }
  0x4e   : > { %5684 = shalt.err (!%p5681_p4)
}
  0x4f   : > { %5393 = dma.hbm_to_vmem [thread:$0]  (!%p5802_p5), %s8544_s9, 3200, %s5808_s19, [#allocation6], %s5704_s18, %s5704_s18, %s5705_s20  }
  0x50   : > { %p8814_p6 = scmp.ne.s32.totalorder %s8811_s14, 0 }
  0x52   : > { %424 = sbr.rel (%p8814_p6) target bundleno = 1605 (0x645), region = 72 }
  0x59   : > { %p8815_p8 = scmp.ne.s32.totalorder %s8810_s12, 0 }
  0x5b   : > { %5690 = dma.done.wait (%p8815_p8), [#allocation4], 256  }
  0x5c   : > { %5692 = vsyncadd (%p8815_p8), [#allocation4], 4294967040 }
  0x5d   : > { %5694 = dma.done.wait (%p8815_p8), [#allocation6], 3232  }
  0x5e   : > { %5696 = vsyncadd (%p8815_p8), [#allocation6], 4294964064  ;;  %s8816_s17 = sadd.s32 4294967295, %s5699_s27   ;;  %v5706_v1 = vmov 0   ;;  %vm832_vm0 = vcmask 1046528   ;;  %vm735_vm1 = vcmask 113664  }
  0x5f   : > { %s5060_s25 = sshll.u32 %s8816_s17, 6  ;;  %871 = vmatprep.mubr.bf16.mxu0 %v5706_v1  ;;  %1031 = vmatprep.mubr.bf16.mxu1 %v5706_v1  ;;  %v5414_v2 = vld [vmem:[#allocation3 + $0x4] ss:$8 sps:$4 sm:$0x7f]   ;;  %v5435_v10 = vld [vmem:[%s8538_s3 + $0x10] ss:$8 sps:$4 sm:$0xff]  }
  0x60   : > { %p477_p5 = scmp.lt.s32.totalorder %s5060_s25, 127  ;;  %v5416_v3 = vld [vmem:[#allocation3] ss:$8 sps:$4 sm:$0x7f]   ;;  %5098 = vmatprep.subr.msk.bf16.mxu0 %vm832_vm0, %v5414_v2  ;;  %5370 = vmatprep.subr.msk.bf16.mxu1 %vm832_vm0, %v5414_v2  ;;  %v5437_v11 = vld [vmem:[%s8538_s3 + $0x14] ss:$8 sps:$4 sm:$0xff]  }
  0x61   : > { %v834_v4 = vsel %vm832_vm0, %v5416_v3, 0  ;;  %v5430_v8 = vld [vmem:[%s8538_s3] ss:$8 sps:$4 sm:$0xff]   ;;  %v5432_v9 = vld [vmem:[%s8538_s3 + $0x4] ss:$8 sps:$4 sm:$0xff]   ;;  %vm1515_vm2 = vcmask 1043456  }
  0x62   : > { %s9333_s25 = smov (!%p477_p5, %s5060_s25), 127  ;;  %840 = vmatpush1.bf16.msra.mxu0 %v834_v4  ;;  %5371 = vmatpush1.bf16.msra.mxu1 %v834_v4  ;;  %v5440_v14 = vld [vmem:[%s8538_s3 + $0x20] ss:$8 sps:$4 sm:$0xff]   ;;  %v5442_v15 = vld [vmem:[%s8538_s3 + $0x24] ss:$8 sps:$4 sm:$0xff]   ;;  %vm1418_vm3 = vcmask 588800  }
  0x63   : > { %s5061_s14 = sshll.u32 %s9333_s25, 2  ;;  %1522 = vmatprep.subr.bf16.mxu1 %v5432_v9  ;;  %v5447_v17 = vld [vmem:[%s8538_s3 + $0x30] ss:$8 sps:$4 sm:$0xff]   ;;  %v5449_v18 = vld [vmem:[%s8538_s3 + $0x34] ss:$8 sps:$4 sm:$0xff]   ;;  %v1280_v41 = vld [vmem:[%s8538_s3 + $0xc0] sm:$0xff] }
  0x64   : > { %s5900_s12 = scalar_lea.vmem %s8535_s0, %s5061_s14  ;;  %v5453_v20 = vld [vmem:[%s8538_s3 + $0x44] ss:$8 sps:$4 sm:$0xff]   ;;  %v5451_v21 = vld [vmem:[%s8538_s3 + $0x40] ss:$8 sps:$4 sm:$0xff]   ;;  %v5457_v22 = vld [vmem:[%s8538_s3 + $0x54] ss:$8 sps:$4 sm:$0xff]   ;;  %v5156_v45 = vcombine.high %v1280_v41, %v1280_v41  ;;  %v5155_v53 = vcombine.low %v1280_v41, %v1280_v41 }
  0x65   : > { %v5417_v5 = vld [vmem:[%s5900_s12] sm:$0xff]   ;;  %v5418_v6 = vld [vmem:[%s5900_s12 + $0x8] sm:$0xff]   ;;  %v5419_v12 = vld [vmem:[%s5900_s12 + $0x10] sm:$0xff]   ;;  %s5063_s24 = sshll.u32 %s9333_s25, 3  ;;  %vm4897_vm4 = vcmask 7168  }
  0x66   : > { %5099 = vmatmul.mubr.msk.bf16.vlgmr.msra.gmra.mrb[0].mxu0 %vm735_vm1, %v5417_v5  ;;  %v5429_v7 = vld [vmem:[%s5900_s12 + $0x80] sm:$0xff]   ;;  %v5434_v13 = vld [vmem:[%s5900_s12 + $0x88] sm:$0xff]   ;;  %v5420_v16 = vld [vmem:[%s5900_s12 + $0x18] sm:$0xff]   ;;  %v1517_v55 = vsel %vm1515_vm2, %v5155_v53, 0  ;;  %v557_v5 = vlaneseq  ;;  %s8152_s15 = scalar_lea.vmem %s8548_s13, %s5063_s24 }
  0x67   : > { %881 = vmatprep.mubr.bf16.mxu0 %v5706_v1  ;;  %5115 = vmatmul.mubr.msk.bf16.vlgmr.msra.gmra.mrb[0].mxu1 %vm735_vm1, %v5429_v7  ;;  %v5439_v19 = vld [vmem:[%s5900_s12 + $0x90] sm:$0xff]   ;;  %v5421_v23 = vld [vmem:[%s5900_s12 + $0x20] sm:$0xff]   ;;  %v5444_v26 = vld [vmem:[%s5900_s12 + $0x98] sm:$0xff]  }
  0x68   : > { %1041 = vmatprep.mubr.bf16.mxu1 %v5706_v1  ;;  %1523 = vmatpush1.bf16.msra.mxu1 %v5430_v8  ;;  %v5455_v24 = vld [vmem:[%s8538_s3 + $0x50] ss:$8 sps:$4 sm:$0xff]   ;;  %v5461_v25 = vld [vmem:[%s8538_s3 + $0x64] ss:$8 sps:$4 sm:$0xff]   ;;  %v5459_v27 = vld [vmem:[%s8538_s3 + $0x60] ss:$8 sps:$4 sm:$0xff]  }
  0x69   : > { %1524 = vmatprep.subr.bf16.mxu1 %v5437_v11  ;;  %v5465_v28 = vld [vmem:[%s8538_s3 + $0x74] ss:$8 sps:$4 sm:$0xff]   ;;  %v5422_v29 = vld [vmem:[%s5900_s12 + $0x28] sm:$0xff]   ;;  %v5463_v30 = vld [vmem:[%s8538_s3 + $0x70] ss:$8 sps:$4 sm:$0xff]  }
  0x6a   : > { %v5470_v31 = vld [vmem:[%s8538_s3 + $0x84] ss:$8 sps:$4 sm:$0xff]   ;;  %v5468_v33 = vld [vmem:[%s8538_s3 + $0x80] ss:$8 sps:$4 sm:$0xff]   ;;  %v5474_v34 = vld [vmem:[%s8538_s3 + $0x94] ss:$8 sps:$4 sm:$0xff]  }
  0x6b   : > { %v5446_v32 = vld [vmem:[%s5900_s12 + $0xa0] sm:$0xff]   ;;  %v5423_v35 = vld [vmem:[%s5900_s12 + $0x30] sm:$0xff]   ;;  %v5450_v38 = vld [vmem:[%s5900_s12 + $0xa8] sm:$0xff]  }
  0x6c   : > { %1525 = vmatpush1.bf16.msra.mxu1 %v5435_v10  ;;  %v5472_v36 = vld [vmem:[%s8538_s3 + $0x90] ss:$8 sps:$4 sm:$0xff]   ;;  %v5478_v37 = vld [vmem:[%s8538_s3 + $0xa4] ss:$8 sps:$4 sm:$0xff]   ;;  %v5476_v39 = vld [vmem:[%s8538_s3 + $0xa0] ss:$8 sps:$4 sm:$0xff]  }
  0x6d   : > { %1526 = vmatprep.subr.bf16.mxu1 %v5442_v15  ;;  %v5482_v40 = vld [vmem:[%s8538_s3 + $0xb4] ss:$8 sps:$4 sm:$0xff]   ;;  %v5480_v42 = vld [vmem:[%s8538_s3 + $0xb0] ss:$8 sps:$4 sm:$0xff]   ;;  %v5425_v46 = vld [vmem:[%s5900_s12 + $0x40] sm:$0xff]  }
  0x6e   : > { %5100 = vmatmul.mubr.msk.bf16.gmra.mrb[4].mxu0 %vm735_vm1, %v5418_v6  ;;  %v5424_v43 = vld [vmem:[%s5900_s12 + $0x38] sm:$0xff]   ;;  %v5454_v44 = vld [vmem:[%s5900_s12 + $0xb0] sm:$0xff]   ;;  %v5426_v48 = vld [vmem:[%s5900_s12 + $0x48] sm:$0xff]   ;;  %v558_v6 = vshrl.u32 %v557_v5, 7 }
  0x6f   : > { %891 = vmatprep.mubr.bf16.mxu0 %v5706_v1  ;;  %5116 = vmatmul.mubr.msk.bf16.gmra.mrb[4].mxu1 %vm735_vm1, %v5434_v13  ;;  %v5458_v47 = vld [vmem:[%s5900_s12 + $0xb8] sm:$0xff]   ;;  %v5462_v49 = vld [vmem:[%s5900_s12 + $0xc0] sm:$0xff]   ;;  %v5427_v50 = vld [vmem:[%s5900_s12 + $0x50] sm:$0xff]  }
  0x70   : > { %1051 = vmatprep.mubr.bf16.mxu1 %v5706_v1  ;;  %1527 = vmatpush1.bf16.msra.mxu1 %v5440_v14  ;;  %v5466_v51 = vld [vmem:[%s5900_s12 + $0xc8] sm:$0xff]   ;;  %v5428_v52 = vld [vmem:[%s5900_s12 + $0x58] sm:$0xff]   ;;  %v5467_v54 = vld [vmem:[%s5900_s12 + $0xd0] sm:$0xff]   ;;  %v6091_v9 = vsub.s32 1, %v558_v6  ;;  %v6096_v11 = vsub.s32 0, %v558_v6 }
  0x71   : > { %1528 = vmatprep.subr.bf16.mxu1 %v5449_v18  ;;  %v5433_v56 = vld [vmem:[%s5900_s12 + $0x60] sm:$0xff]   ;;  %v5471_v57 = vld [vmem:[%s5900_s12 + $0xd8] sm:$0xff]   ;;  %v5438_v58 = vld [vmem:[%s5900_s12 + $0x68] sm:$0xff]  }
  0x72   : > { %v5475_v59 = vld [vmem:[%s5900_s12 + $0xe0] sm:$0xff]   ;;  %v5443_v60 = vld [vmem:[%s5900_s12 + $0x70] sm:$0xff]   ;;  %v5479_v61 = vld [vmem:[%s5900_s12 + $0xe8] sm:$0xff]   ;;  %8817 = vst [vmem:[#allocation10_spill] sm:$0xff] %v6091_v9 }
  0x73   : > { %v5445_v62 = vld [vmem:[%s5900_s12 + $0x78] sm:$0xff]   ;;  %v5483_v63 = vld [vmem:[%s5900_s12 + $0xf0] sm:$0xff]   ;;  %v5487_v2 = vld [vmem:[%s8540_s5] ss:$8 sps:$4 sm:$0xff]   ;;  %8818 = vst [vmem:[#allocation11_spill] sm:$0xff] %v6096_v11 }
  0x74   : > { %1529 = vmatpush1.bf16.msra.mxu1 %v5447_v17  ;;  %v5484_v0 = vld [vmem:[%s5900_s12 + $0xf8] sm:$0xff]   ;;  %v5489_v3 = vld [vmem:[%s8540_s5 + $0x4] ss:$8 sps:$4 sm:$0xff]   ;;  %v5493_v7 = vld [vmem:[%s8540_s5 + $0x20] ss:$8 sps:$4 sm:$0xff]  }
  0x75   : > { %1530 = vmatprep.subr.bf16.mxu1 %v5453_v20  ;;  %2331 = vmatprep.subr.bf16.mxu0 %v5489_v3  ;;  %v5490_v4 = vld [vmem:[%s8540_s5 + $0x10] ss:$8 sps:$4 sm:$0xff]   ;;  %v5495_v8 = vld [vmem:[%s8540_s5 + $0x24] ss:$8 sps:$4 sm:$0xff]   ;;  %v555_v10 = vld [vmem:[%s8537_s2] sm:$0x3] }
  0x76   : > { %5101 = vmatmul.mubr.msk.bf16.gmra.mrb[8].mxu0 %vm735_vm1, %v5419_v12  ;;  %v6099_v13 = vrot.slane %v555_v10, %v6091_v9  ;;  %v6102_v14 = vrot.slane %v555_v10, %v6096_v11  ;;  %v5496_v17 = vld [vmem:[%s8540_s5 + $0x30] ss:$8 sps:$4 sm:$0xff]   ;;  %v5498_v18 = vld [vmem:[%s8540_s5 + $0x34] ss:$8 sps:$4 sm:$0xff]  }
  0x77   : > { %901 = vmatprep.mubr.bf16.mxu0 %v5706_v1  ;;  %5117 = vmatmul.mubr.msk.bf16.gmra.mrb[8].mxu1 %vm735_vm1, %v5439_v19 }
  0x78   : > { %1061 = vmatprep.mubr.bf16.mxu1 %v5706_v1  ;;  %1531 = vmatpush1.bf16.msra.mxu1 %v5451_v21 }
  0x79   : > { %1532 = vmatprep.subr.bf16.mxu1 %v5457_v22  ;;  %2332 = vmatpush1.bf16.msra.mxu0 %v5487_v2 }
  0x7c   : > { %1533 = vmatpush1.bf16.msra.mxu1 %v5455_v24 }
  0x7d   : > { %1534 = vmatprep.subr.bf16.mxu1 %v5461_v25 }
  0x7e   : > { %5102 = vmatmul.mubr.msk.bf16.gmra.mrb[12].mxu0 %vm735_vm1, %v5420_v16 }
  0x7f   : > { %911 = vmatprep.mubr.bf16.mxu0 %v5706_v1  ;;  %5118 = vmatmul.mubr.msk.bf16.gmra.mrb[12].mxu1 %vm735_vm1, %v5444_v26 }
  0x80   : > { %1071 = vmatprep.mubr.bf16.mxu1 %v5706_v1  ;;  %1535 = vmatpush1.bf16.msra.mxu1 %v5459_v27 }
  0x81   : > { %1536 = vmatprep.subr.bf16.mxu1 %v5465_v28 }
  0x84   : > { %1537 = vmatpush1.bf16.msra.mxu1 %v5463_v30 }
  0x85   : > { %1538 = vmatprep.subr.bf16.mxu1 %v5470_v31  ;;  %v5499_v31 = vld [vmem:[%s8540_s5 + $0x40] ss:$8 sps:$4 sm:$0xff]  }
  0x86   : > { %5103 = vmatmul.mubr.msk.bf16.gmra.mrb[16].mxu0 %vm735_vm1, %v5421_v23 }
  0x87   : > { %921 = vmatprep.mubr.bf16.mxu0 %v5706_v1  ;;  %5119 = vmatmul.mubr.msk.bf16.gmra.mrb[16].mxu1 %vm735_vm1, %v5446_v32  ;;  %v5501_v32 = vld [vmem:[%s8540_s5 + $0x44] ss:$8 sps:$4 sm:$0xff]  }
  0x88   : > { %1081 = vmatprep.mubr.bf16.mxu1 %v5706_v1  ;;  %1539 = vmatpush1.bf16.msra.mxu1 %v5468_v33 }
  0x89   : > { %1540 = vmatprep.subr.bf16.mxu1 %v5474_v34 }
  0x8c   : > { %1541 = vmatpush1.bf16.msra.mxu1 %v5472_v36 }
  0x8d   : > { %1542 = vmatprep.subr.bf16.mxu1 %v5478_v37 }
  0x8e   : > { %5104 = vmatmul.mubr.msk.bf16.gmra.mrb[20].mxu0 %vm735_vm1, %v5422_v29 }
  0x8f   : > { %931 = vmatprep.mubr.bf16.mxu0 %v5706_v1  ;;  %5120 = vmatmul.mubr.msk.bf16.gmra.mrb[20].mxu1 %vm735_vm1, %v5450_v38 }
  0x90   : > { %1091 = vmatprep.mubr.bf16.mxu1 %v5706_v1  ;;  %1543 = vmatpush1.bf16.msra.mxu1 %v5476_v39 }
  0x91   : > { %1544 = vmatprep.subr.bf16.mxu1 %v5482_v40 }
  0x94   : > { %1545 = vmatpush1.bf16.msra.mxu1 %v5480_v42 }
  0x95   : > { %5157 = vmatprep.subr.msk.bf16.mxu1 %vm1515_vm2, %v5156_v45 }
  0x96   : > { %5105 = vmatmul.mubr.msk.bf16.gmra.mrb[24].mxu0 %vm735_vm1, %v5423_v35 }
  0x97   : > { %941 = vmatprep.mubr.bf16.mxu0 %v5706_v1  ;;  %5121 = vmatmul.mubr.msk.bf16.gmra.mrb[24].mxu1 %vm735_vm1, %v5454_v44 }
  0x98   : > { %1101 = vmatprep.mubr.bf16.mxu1 %v5706_v1  ;;  %1547 = vmatpush1.bf16.msra.mxu1 %v1517_v55 }
  0x9e   : > { %5106 = vmatmul.mubr.msk.bf16.gmra.mrb[28].mxu0 %vm735_vm1, %v5424_v43 }
  0x9f   : > { %951 = vmatprep.mubr.bf16.mxu0 %v5706_v1  ;;  %5122 = vmatmul.mubr.msk.bf16.gmra.mrb[28].mxu1 %vm735_vm1, %v5458_v47  ;;  %v5502_v47 = vld [vmem:[%s8540_s5 + $0x50] ss:$8 sps:$4 sm:$0xff]  }
  0xa0   : > { %1111 = vmatprep.mubr.bf16.mxu1 %v5706_v1 }
  0xa6   : > { %5107 = vmatmul.mubr.msk.bf16.gmra.mrb[32].mxu0 %vm735_vm1, %v5425_v46 }
  0xa7   : > { %961 = vmatprep.mubr.bf16.mxu0 %v5706_v1  ;;  %5123 = vmatmul.mubr.msk.bf16.gmra.mrb[32].mxu1 %vm735_vm1, %v5462_v49 }
  0xa8   : > { %1121 = vmatprep.mubr.bf16.mxu1 %v5706_v1 }
  0xae   : > { %5108 = vmatmul.mubr.msk.bf16.gmra.mrb[36].mxu0 %vm735_vm1, %v5426_v48  ;;  %v5504_v48 = vld [vmem:[%s8540_s5 + $0x54] ss:$8 sps:$4 sm:$0xff]  }
  0xaf   : > { %971 = vmatprep.mubr.bf16.mxu0 %v5706_v1  ;;  %5124 = vmatmul.mubr.msk.bf16.gmra.mrb[36].mxu1 %vm735_vm1, %v5466_v51 }
  0xb0   : > { %1131 = vmatprep.mubr.bf16.mxu1 %v5706_v1 }
  0xb6   : > { %5109 = vmatmul.mubr.msk.bf16.gmra.mrb[40].mxu0 %vm735_vm1, %v5427_v50 }
  0xb7   : > { %981 = vmatprep.mubr.bf16.mxu0 %v5706_v1  ;;  %5125 = vmatmul.mubr.msk.bf16.gmra.mrb[40].mxu1 %vm735_vm1, %v5467_v54 }
  0xb8   : > { %1141 = vmatprep.mubr.bf16.mxu1 %v5706_v1 }
  0xbe   : > { %5110 = vmatmul.mubr.msk.bf16.gmra.mrb[44].mxu0 %vm735_vm1, %v5428_v52 }
  0xbf   : > { %991 = vmatprep.mubr.bf16.mxu0 %v5706_v1  ;;  %5126 = vmatmul.mubr.msk.bf16.gmra.mrb[44].mxu1 %vm735_vm1, %v5471_v57 }
  0xc0   : > { %1151 = vmatprep.mubr.bf16.mxu1 %v5706_v1 }
  0xc6   : > { %5111 = vmatmul.mubr.msk.bf16.gmra.mrb[48].mxu0 %vm735_vm1, %v5433_v56 }
  0xc7   : > { %1001 = vmatprep.mubr.bf16.mxu0 %v5706_v1  ;;  %5127 = vmatmul.mubr.msk.bf16.gmra.mrb[48].mxu1 %vm735_vm1, %v5475_v59 }
  0xc8   : > { %1161 = vmatprep.mubr.bf16.mxu1 %v5706_v1 }
  0xce   : > { %5112 = vmatmul.mubr.msk.bf16.gmra.mrb[52].mxu0 %vm735_vm1, %v5438_v58 }
  0xcf   : > { %1011 = vmatprep.mubr.bf16.mxu0 %v5706_v1  ;;  %5128 = vmatmul.mubr.msk.bf16.gmra.mrb[52].mxu1 %vm735_vm1, %v5479_v61 }
  0xd0   : > { %1171 = vmatprep.mubr.bf16.mxu1 %v5706_v1 }
  0xd6   : > { %5113 = vmatmul.mubr.msk.bf16.gmra.mrb[56].mxu0 %vm735_vm1, %v5443_v60 }
  0xd7   : > { %1021 = vmatprep.mubr.bf16.mxu0 %v5706_v1  ;;  %5129 = vmatmul.mubr.msk.bf16.gmra.mrb[56].mxu1 %vm735_vm1, %v5483_v63 }
  0xd8   : > { %1181 = vmatprep.mubr.bf16.mxu1 %v5706_v1  ;;  %v5492_v1 = vld [vmem:[%s8540_s5 + $0x14] ss:$8 sps:$4 sm:$0xff]  }
  0xd9   : > { %2333 = vmatprep.subr.bf16.mxu0 %v5492_v1 }
  0xda   : > { %2334 = vmatpush1.bf16.msra.mxu0 %v5490_v4 }
  0xdb   : > { %2335 = vmatprep.subr.bf16.mxu0 %v5495_v8 }
  0xde   : > { %5114 = vmatmul.mubr.msk.bf16.gmra.mrb[60].mxu0 %vm735_vm1, %v5445_v62 }
  0xdf   : > { %5130 = vmatmul.mubr.msk.bf16.gmra.mrb[60].mxu1 %vm735_vm1, %v5484_v0  ;;  %2336 = vmatpush1.bf16.msra.mxu0 %v5493_v7 }
  0xe0   : > { %2337 = vmatprep.subr.bf16.mxu0 %v5498_v18  ;;  %v5507_v18 = vld [vmem:[%s8540_s5 + $0x64] ss:$8 sps:$4 sm:$0xff]  }
  0xe3   : > { %2338 = vmatpush1.bf16.msra.mxu0 %v5496_v17  ;;  %v5505_v17 = vld [vmem:[%s8540_s5 + $0x60] ss:$8 sps:$4 sm:$0xff]  }
  0xe4   : > { %2339 = vmatprep.subr.bf16.mxu0 %v5501_v32 }
  0xe7   : > { %2340 = vmatpush1.bf16.msra.mxu0 %v5499_v31 }
  0xe8   : > { %2341 = vmatprep.subr.bf16.mxu0 %v5504_v48  ;;  %v5510_v48 = vld [vmem:[%s8540_s5 + $0x74] ss:$8 sps:$4 sm:$0xff]  }
  0xeb   : > { %2342 = vmatpush1.bf16.msra.mxu0 %v5502_v47  ;;  %v5508_v47 = vld [vmem:[%s8540_s5 + $0x70] ss:$8 sps:$4 sm:$0xff]  }
  0xec   : > { %2343 = vmatprep.subr.bf16.mxu0 %v5507_v18 }
  0xef   : > { %2344 = vmatpush1.bf16.msra.mxu0 %v5505_v17 }
  0xf0   : > { %2345 = vmatprep.subr.bf16.mxu0 %v5510_v48 }
  0xf3   : > { %2346 = vmatpush1.bf16.msra.mxu0 %v5508_v47 }
 0x139   : > { %v873_v12 = vpop.f32.mrb[0].mxu0 }
 0x13a   : > { %v875_v15 = vpop.f32.mrb[1].mxu0  ;;  %v6120_v23 = vadd.f32 %v873_v12, %v6102_v14  ;;  %v6127_v28 = vpop.f32.mrb[0].mxu1 }
 0x13b   : > { %v877_v16 = vpop.f32.mrb[2].mxu0  ;;  %v6114_v21 = vadd.f32 %v875_v15, %v6099_v13  ;;  %v6129_v30 = vpop.f32.mrb[1].mxu1 }
 0x13c   : > { %v6111_v19 = vadd.f32 %v877_v16, %v6102_v14  ;;  %v879_v20 = vpop.f32.mrb[3].mxu0  ;;  %8822 = vst [vmem:[#allocation15_spill] sm:$0xff] %v6120_v23  ;;  %v6140_v35 = vpop.f32.mrb[2].mxu1 }
 0x13d   : > { %8820 = vst [vmem:[#allocation13_spill] sm:$0xff] %v6114_v21  ;;  %v6117_v22 = vadd.f32 %v879_v20, %v6099_v13  ;;  %v6148_v38 = vpop.f32.mrb[3].mxu1 }
 0x13e   : > { %8819 = vst [vmem:[#allocation12_spill] sm:$0xff] %v6111_v19  ;;  %v1192_v25 = vpack.c.bf16 %v6111_v19, %v6120_v23 }
 0x13f   : > { %8821 = vst [vmem:[#allocation14_spill] sm:$0xff] %v6117_v22  ;;  %v1193_v24 = vpack.c.bf16 %v6117_v22, %v6114_v21 }
 0x141   : > { %v883_v26 = vpop.f32.mrb[4].mxu0  ;;  %5158 = vmatprep.mubr.msk.bf16.mxu1 %vm1418_vm3, %v1193_v24 }
 0x142   : > { %v885_v27 = vpop.f32.mrb[5].mxu0  ;;  %1555 = vmatmul.mubr.bf16.vlgmr.msra.gmra.mrb[64].mxu1 %v1192_v25  ;;  %v6151_v39 = vadd.f32 %v883_v26, %v6102_v14  ;;  %v6158_v44 = vpop.f32.mrb[4].mxu1 }
 0x143   : > { %v887_v29 = vpop.f32.mrb[6].mxu0  ;;  %v6143_v36 = vadd.f32 %v885_v27, %v6099_v13  ;;  %v6160_v46 = vpop.f32.mrb[5].mxu1 }
 0x144   : > { %v6138_v33 = vadd.f32 %v887_v29, %v6102_v14  ;;  %v889_v34 = vpop.f32.mrb[7].mxu0  ;;  %8826 = vst [vmem:[#allocation19_spill] sm:$0xff] %v6151_v39  ;;  %v6171_v51 = vpop.f32.mrb[6].mxu1 }
 0x145   : > { %8824 = vst [vmem:[#allocation17_spill] sm:$0xff] %v6143_v36  ;;  %v6146_v37 = vadd.f32 %v889_v34, %v6099_v13  ;;  %v6179_v54 = vpop.f32.mrb[7].mxu1 }
 0x146   : > { %8823 = vst [vmem:[#allocation16_spill] sm:$0xff] %v6138_v33  ;;  %v1194_v41 = vpack.c.bf16 %v6138_v33, %v6151_v39 }
 0x147   : > { %8825 = vst [vmem:[#allocation18_spill] sm:$0xff] %v6146_v37  ;;  %v1195_v40 = vpack.c.bf16 %v6146_v37, %v6143_v36 }
 0x149   : > { %v893_v42 = vpop.f32.mrb[8].mxu0  ;;  %5159 = vmatprep.mubr.msk.bf16.mxu1 %vm1418_vm3, %v1195_v40 }
 0x14a   : > { %v895_v43 = vpop.f32.mrb[9].mxu0  ;;  %1565 = vmatmul.mubr.bf16.gmra.mrb[68].mxu1 %v1194_v41  ;;  %v6182_v55 = vadd.f32 %v893_v42, %v6102_v14  ;;  %v6189_v60 = vpop.f32.mrb[8].mxu1 }
 0x14b   : > { %v897_v45 = vpop.f32.mrb[10].mxu0  ;;  %v6174_v52 = vadd.f32 %v895_v43, %v6099_v13  ;;  %v6191_v62 = vpop.f32.mrb[9].mxu1 }
 0x14c   : > { %v6169_v49 = vadd.f32 %v897_v45, %v6102_v14  ;;  %v899_v50 = vpop.f32.mrb[11].mxu0  ;;  %8830 = vst [vmem:[#allocation23_spill] sm:$0xff] %v6182_v55  ;;  %v6196_v2 = vpop.f32.mrb[10].mxu1 }
 0x14d   : > { %8828 = vst [vmem:[#allocation21_spill] sm:$0xff] %v6174_v52  ;;  %v6177_v53 = vadd.f32 %v899_v50, %v6099_v13  ;;  %v6204_v1 = vpop.f32.mrb[11].mxu1 }
 0x14e   : > { %8827 = vst [vmem:[#allocation20_spill] sm:$0xff] %v6169_v49  ;;  %v1196_v57 = vpack.c.bf16 %v6169_v49, %v6182_v55 }
 0x14f   : > { %8829 = vst [vmem:[#allocation22_spill] sm:$0xff] %v6177_v53  ;;  %v1197_v56 = vpack.c.bf16 %v6177_v53, %v6174_v52 }
 0x151   : > { %v903_v58 = vpop.f32.mrb[12].mxu0  ;;  %5160 = vmatprep.mubr.msk.bf16.mxu1 %vm1418_vm3, %v1197_v56 }
 0x152   : > { %v905_v59 = vpop.f32.mrb[13].mxu0  ;;  %1575 = vmatmul.mubr.bf16.gmra.mrb[72].mxu1 %v1196_v57  ;;  %v6207_v5 = vadd.f32 %v903_v58, %v6102_v14  ;;  %v6214_v12 = vpop.f32.mrb[12].mxu1 }
 0x153   : > { %v907_v61 = vpop.f32.mrb[14].mxu0  ;;  %v6199_v3 = vadd.f32 %v905_v59, %v6099_v13  ;;  %v6216_v16 = vpop.f32.mrb[13].mxu1 }
 0x154   : > { %v6194_v63 = vadd.f32 %v907_v61, %v6102_v14  ;;  %v909_v0 = vpop.f32.mrb[15].mxu0  ;;  %8834 = vst [vmem:[#allocation27_spill] sm:$0xff] %v6207_v5  ;;  %v6227_v25 = vpop.f32.mrb[14].mxu1 }
 0x155   : > { %8832 = vst [vmem:[#allocation25_spill] sm:$0xff] %v6199_v3  ;;  %v6202_v4 = vadd.f32 %v909_v0, %v6099_v13  ;;  %v6235_v29 = vpop.f32.mrb[15].mxu1 }
 0x156   : > { %8831 = vst [vmem:[#allocation24_spill] sm:$0xff] %v6194_v63  ;;  %v1198_v7 = vpack.c.bf16 %v6194_v63, %v6207_v5 }
 0x157   : > { %8833 = vst [vmem:[#allocation26_spill] sm:$0xff] %v6202_v4  ;;  %v1199_v6 = vpack.c.bf16 %v6202_v4, %v6199_v3 }
 0x159   : > { %v913_v8 = vpop.f32.mrb[16].mxu0  ;;  %5161 = vmatprep.mubr.msk.bf16.mxu1 %vm1418_vm3, %v1199_v6 }
 0x15a   : > { %v915_v10 = vpop.f32.mrb[17].mxu0  ;;  %1585 = vmatmul.mubr.bf16.gmra.mrb[76].mxu1 %v1198_v7  ;;  %v6238_v31 = vadd.f32 %v913_v8, %v6102_v14  ;;  %v6245_v42 = vpop.f32.mrb[16].mxu1 }
 0x15b   : > { %v917_v15 = vpop.f32.mrb[18].mxu0  ;;  %v6230_v26 = vadd.f32 %v915_v10, %v6099_v13  ;;  %v6247_v45 = vpop.f32.mrb[17].mxu1 }
 0x15c   : > { %v6225_v20 = vadd.f32 %v917_v15, %v6102_v14  ;;  %v919_v24 = vpop.f32.mrb[19].mxu0  ;;  %8838 = vst [vmem:[#allocation31_spill] sm:$0xff] %v6238_v31  ;;  %v6258_v57 = vpop.f32.mrb[18].mxu1 }
 0x15d   : > { %8836 = vst [vmem:[#allocation29_spill] sm:$0xff] %v6230_v26  ;;  %v6233_v27 = vadd.f32 %v919_v24, %v6099_v13  ;;  %v6266_v61 = vpop.f32.mrb[19].mxu1  ;;  %v5511_v24 = vld [vmem:[%s8540_s5 + $0x80] ss:$8 sps:$4 sm:$0xff]  }
 0x15e   : > { %8835 = vst [vmem:[#allocation28_spill] sm:$0xff] %v6225_v20  ;;  %v1200_v34 = vpack.c.bf16 %v6225_v20, %v6238_v31 }
 0x15f   : > { %8837 = vst [vmem:[#allocation30_spill] sm:$0xff] %v6233_v27  ;;  %v1201_v32 = vpack.c.bf16 %v6233_v27, %v6230_v26 }
 0x161   : > { %v923_v40 = vpop.f32.mrb[20].mxu0  ;;  %5162 = vmatprep.mubr.msk.bf16.mxu1 %vm1418_vm3, %v1201_v32  ;;  %v5513_v32 = vld [vmem:[%s8540_s5 + $0x84] ss:$8 sps:$4 sm:$0xff]  }
 0x162   : > { %v925_v41 = vpop.f32.mrb[21].mxu0  ;;  %1595 = vmatmul.mubr.bf16.gmra.mrb[80].mxu1 %v1200_v34  ;;  %v6269_v0 = vadd.f32 %v923_v40, %v6102_v14  ;;  %v6276_v15 = vpop.f32.mrb[20].mxu1  ;;  %2347 = vmatprep.subr.bf16.mxu0 %v5513_v32 }
 0x163   : > { %v927_v43 = vpop.f32.mrb[22].mxu0  ;;  %v6261_v58 = vadd.f32 %v925_v41, %v6099_v13  ;;  %v6278_v18 = vpop.f32.mrb[21].mxu1  ;;  %2348 = vmatpush1.bf16.msra.mxu0 %v5511_v24  ;;  %v5516_v24 = vld [vmem:[%s8540_s5 + $0x94] ss:$8 sps:$4 sm:$0xff]  }
 0x164   : > { %v6256_v50 = vadd.f32 %v927_v43, %v6102_v14  ;;  %v929_v56 = vpop.f32.mrb[23].mxu0  ;;  %8842 = vst [vmem:[#allocation35_spill] sm:$0xff] %v6269_v0  ;;  %v6289_v41 = vpop.f32.mrb[22].mxu1  ;;  %2349 = vmatprep.subr.bf16.mxu0 %v5516_v24 }
 0x165   : > { %8840 = vst [vmem:[#allocation33_spill] sm:$0xff] %v6261_v58  ;;  %v6264_v59 = vadd.f32 %v929_v56, %v6099_v13  ;;  %v6297_v48 = vpop.f32.mrb[23].mxu1 }
 0x166   : > { %8839 = vst [vmem:[#allocation32_spill] sm:$0xff] %v6256_v50  ;;  %v1202_v7 = vpack.c.bf16 %v6256_v50, %v6269_v0 }
 0x167   : > { %8841 = vst [vmem:[#allocation34_spill] sm:$0xff] %v6264_v59  ;;  %v1203_v6 = vpack.c.bf16 %v6264_v59, %v6261_v58 }
 0x169   : > { %v933_v8 = vpop.f32.mrb[24].mxu0  ;;  %5163 = vmatprep.mubr.msk.bf16.mxu1 %vm1418_vm3, %v1203_v6 }
 0x16a   : > { %v935_v10 = vpop.f32.mrb[25].mxu0  ;;  %1605 = vmatmul.mubr.bf16.gmra.mrb[84].mxu1 %v1202_v7  ;;  %v6300_v56 = vadd.f32 %v933_v8, %v6102_v14  ;;  %v5514_v8 = vld [vmem:[%s8540_s5 + $0x90] ss:$8 sps:$4 sm:$0xff]  }
 0x16b   : > { %v937_v17 = vpop.f32.mrb[26].mxu0  ;;  %v6292_v43 = vadd.f32 %v935_v10, %v6099_v13  ;;  %2350 = vmatpush1.bf16.msra.mxu0 %v5514_v8  ;;  %v5519_v8 = vld [vmem:[%s8542_s7 + $0x4] ss:$8 sps:$4 sm:$0xff]  }
 0x16c   : > { %v6287_v34 = vadd.f32 %v937_v17, %v6102_v14  ;;  %v939_v40 = vpop.f32.mrb[27].mxu0  ;;  %8846 = vst [vmem:[#allocation39_spill] sm:$0xff] %v6300_v56  ;;  %3140 = vmatprep.subr.bf16.mxu1 %v5519_v8  ;;  %v5520_v8 = vld [vmem:[%s8540_s5 + $0xa0] ss:$8 sps:$4 sm:$0xff]  }
 0x16d   : > { %8844 = vst [vmem:[#allocation37_spill] sm:$0xff] %v6292_v43  ;;  %v6295_v47 = vadd.f32 %v939_v40, %v6099_v13  ;;  %v6307_v40 = vpop.f32.mrb[24].mxu1 }
 0x16e   : > { %8843 = vst [vmem:[#allocation36_spill] sm:$0xff] %v6287_v34  ;;  %v1204_v7 = vpack.c.bf16 %v6287_v34, %v6300_v56  ;;  %v6309_v58 = vpop.f32.mrb[25].mxu1 }
 0x16f   : > { %8845 = vst [vmem:[#allocation38_spill] sm:$0xff] %v6295_v47  ;;  %v1205_v6 = vpack.c.bf16 %v6295_v47, %v6292_v43 }
 0x171   : > { %v943_v17 = vpop.f32.mrb[28].mxu0  ;;  %5164 = vmatprep.mubr.msk.bf16.mxu1 %vm1418_vm3, %v1205_v6  ;;  %v6320_v6 = vpop.f32.mrb[26].mxu1 }
 0x172   : > { %v945_v10 = vpop.f32.mrb[29].mxu0  ;;  %1615 = vmatmul.mubr.bf16.gmra.mrb[88].mxu1 %v1204_v7  ;;  %v6328_v34 = vpop.f32.mrb[27].mxu1  ;;  %v6331_v56 = vadd.f32 %v943_v17, %v6102_v14  ;;  %v5517_v17 = vld [vmem:[%s8542_s7] ss:$8 sps:$4 sm:$0xff]  }
 0x173   : > { %v947_v59 = vpop.f32.mrb[30].mxu0  ;;  %v6323_v7 = vadd.f32 %v945_v10, %v6099_v13  ;;  %3141 = vmatpush1.bf16.msra.mxu1 %v5517_v17 }
 0x174   : > { %v6318_v32 = vadd.f32 %v947_v59, %v6102_v14  ;;  %v949_v47 = vpop.f32.mrb[31].mxu0  ;;  %8850 = vst [vmem:[#allocation43_spill] sm:$0xff] %v6331_v56 }
 0x175   : > { %8848 = vst [vmem:[#allocation41_spill] sm:$0xff] %v6323_v7  ;;  %v6326_v43 = vadd.f32 %v949_v47, %v6099_v13  ;;  %v6338_v47 = vpop.f32.mrb[28].mxu1 }
 0x176   : > { %8847 = vst [vmem:[#allocation40_spill] sm:$0xff] %v6318_v32  ;;  %v1206_v50 = vpack.c.bf16 %v6318_v32, %v6331_v56  ;;  %v6340_v26 = vpop.f32.mrb[29].mxu1 }
 0x177   : > { %8849 = vst [vmem:[#allocation42_spill] sm:$0xff] %v6326_v43  ;;  %v1207_v59 = vpack.c.bf16 %v6326_v43, %v6323_v7 }
 0x179   : > { %v953_v0 = vpop.f32.mrb[32].mxu0  ;;  %5165 = vmatprep.mubr.msk.bf16.mxu1 %vm1418_vm3, %v1207_v59  ;;  %v6351_v59 = vpop.f32.mrb[30].mxu1 }
 0x17a   : > { %v955_v10 = vpop.f32.mrb[33].mxu0  ;;  %1625 = vmatmul.mubr.bf16.gmra.mrb[92].mxu1 %v1206_v50  ;;  %v6359_v32 = vpop.f32.mrb[31].mxu1  ;;  %v6362_v56 = vadd.f32 %v953_v0, %v6102_v14  ;;  %v5522_v0 = vld [vmem:[%s8540_s5 + $0xa4] ss:$8 sps:$4 sm:$0xff]  }
 0x17b   : > { %v957_v27 = vpop.f32.mrb[34].mxu0  ;;  %v6354_v50 = vadd.f32 %v955_v10, %v6099_v13  ;;  %2351 = vmatprep.subr.bf16.mxu0 %v5522_v0 }
 0x17c   : > { %v6349_v24 = vadd.f32 %v957_v27, %v6102_v14  ;;  %v959_v43 = vpop.f32.mrb[35].mxu0  ;;  %8854 = vst [vmem:[#allocation47_spill] sm:$0xff] %v6362_v56  ;;  %2352 = vmatpush1.bf16.msra.mxu0 %v5520_v8  ;;  %v5525_v8 = vld [vmem:[%s8540_s5 + $0xb4] ss:$8 sps:$4 sm:$0xff]  }
 0x17d   : > { %8852 = vst [vmem:[#allocation45_spill] sm:$0xff] %v6354_v50  ;;  %v6357_v7 = vadd.f32 %v959_v43, %v6099_v13  ;;  %v6369_v43 = vpop.f32.mrb[32].mxu1  ;;  %2353 = vmatprep.subr.bf16.mxu0 %v5525_v8 }
 0x17e   : > { %8851 = vst [vmem:[#allocation44_spill] sm:$0xff] %v6349_v24  ;;  %v1208_v20 = vpack.c.bf16 %v6349_v24, %v6362_v56 }
 0x17f   : > { %8853 = vst [vmem:[#allocation46_spill] sm:$0xff] %v6357_v7  ;;  %v1209_v27 = vpack.c.bf16 %v6357_v7, %v6354_v50  ;;  %v6377_v7 = vpop.f32.mrb[33].mxu1 }
 0x181   : > { %v963_v31 = vpop.f32.mrb[36].mxu0  ;;  %5166 = vmatprep.mubr.msk.bf16.mxu1 %vm1418_vm3, %v1209_v27  ;;  %v6382_v27 = vpop.f32.mrb[34].mxu1 }
 0x182   : > { %v965_v10 = vpop.f32.mrb[37].mxu0  ;;  %1635 = vmatmul.mubr.bf16.gmra.mrb[96].mxu1 %v1208_v20  ;;  %v6390_v4 = vpop.f32.mrb[35].mxu1  ;;  %v6393_v3 = vadd.f32 %v963_v31, %v6102_v14  ;;  %v5523_v31 = vld [vmem:[%s8540_s5 + $0xb0] ss:$8 sps:$4 sm:$0xff]  }
 0x183   : > { %v967_v17 = vpop.f32.mrb[38].mxu0  ;;  %v6385_v20 = vadd.f32 %v965_v10, %v6099_v13  ;;  %v6400_v0 = vpop.f32.mrb[36].mxu1  ;;  %2354 = vmatpush1.bf16.msra.mxu0 %v5523_v31 }
 0x184   : > { %v6380_v50 = vadd.f32 %v967_v17, %v6102_v14  ;;  %v969_v24 = vpop.f32.mrb[39].mxu0  ;;  %8858 = vst [vmem:[#allocation51_spill] sm:$0xff] %v6393_v3  ;;  %v6402_v53 = vpop.f32.mrb[37].mxu1 }
 0x185   : > { %8856 = vst [vmem:[#allocation49_spill] sm:$0xff] %v6385_v20  ;;  %v6388_v56 = vadd.f32 %v969_v24, %v6099_v13 }
 0x186   : > { %8855 = vst [vmem:[#allocation48_spill] sm:$0xff] %v6380_v50  ;;  %v1210_v63 = vpack.c.bf16 %v6380_v50, %v6393_v3  ;;  %v5528_v50 = vld [vmem:[%s8542_s7 + $0x14] ss:$8 sps:$4 sm:$0xff]  }
 0x187   : > { %8857 = vst [vmem:[#allocation50_spill] sm:$0xff] %v6388_v56  ;;  %v1211_v17 = vpack.c.bf16 %v6388_v56, %v6385_v20  ;;  %3142 = vmatprep.subr.bf16.mxu1 %v5528_v50 }
 0x189   : > { %v973_v5 = vpop.f32.mrb[40].mxu0  ;;  %5167 = vmatprep.mubr.msk.bf16.mxu1 %vm1418_vm3, %v1211_v17  ;;  %v6413_v17 = vpop.f32.mrb[38].mxu1 }
 0x18a   : > { %v975_v10 = vpop.f32.mrb[41].mxu0  ;;  %1645 = vmatmul.mubr.bf16.gmra.mrb[100].mxu1 %v1210_v63  ;;  %v5526_v63 = vld [vmem:[%s8542_s7 + $0x10] ss:$8 sps:$4 sm:$0xff]   ;;  %v6427_v49 = vpop.f32.mrb[39].mxu1 }
 0x18b   : > { %v977_v24 = vpop.f32.mrb[42].mxu0  ;;  %v6422_v3 = vadd.f32 %v975_v10, %v6099_v13  ;;  %3143 = vmatpush1.bf16.msra.mxu1 %v5526_v63  ;;  %v6437_v36 = vpop.f32.mrb[40].mxu1 }
 0x18c   : > { %v6411_v56 = vadd.f32 %v977_v24, %v6102_v14  ;;  %v979_v20 = vpop.f32.mrb[43].mxu0  ;;  %v6430_v24 = vadd.f32 %v973_v5, %v6102_v14  ;;  %v6439_v33 = vpop.f32.mrb[41].mxu1 }
 0x18d   : > { %8860 = vst [vmem:[#allocation53_spill] sm:$0xff] %v6422_v3  ;;  %v6425_v52 = vadd.f32 %v979_v20, %v6099_v13  ;;  %v6444_v31 = vpop.f32.mrb[42].mxu1 }
 0x18e   : > { %8859 = vst [vmem:[#allocation52_spill] sm:$0xff] %v6411_v56  ;;  %8862 = vst [vmem:[#allocation55_spill] sm:$0xff] %v6430_v24  ;;  %v1212_v37 = vpack.c.bf16 %v6411_v56, %v6430_v24 }
 0x18f   : > { %8861 = vst [vmem:[#allocation54_spill] sm:$0xff] %v6425_v52  ;;  %v1213_v55 = vpack.c.bf16 %v6425_v52, %v6422_v3 }
 0x191   : > { %v983_v10 = vpop.f32.mrb[44].mxu0  ;;  %5168 = vmatprep.mubr.msk.bf16.mxu1 %vm1418_vm3, %v1213_v55  ;;  %v6452_v55 = vpop.f32.mrb[43].mxu1 }
 0x192   : > { %v985_v20 = vpop.f32.mrb[45].mxu0  ;;  %1655 = vmatmul.mubr.bf16.gmra.mrb[104].mxu1 %v1212_v37  ;;  %v6455_v37 = vadd.f32 %v983_v10, %v6102_v14  ;;  %v6465_v24 = vpop.f32.mrb[44].mxu1 }
 0x193   : > { %v987_v8 = vpop.f32.mrb[46].mxu0  ;;  %v6447_v63 = vadd.f32 %v985_v20, %v6099_v13  ;;  %v2091_v20 = vld [vmem:[%s8540_s5 + $0xc0] sm:$0xff]  ;;  %8867 = vst [vmem:[#allocation60_spill] sm:$0xff] %v6465_v24  ;;  %v6467_v21 = vpop.f32.mrb[45].mxu1 }
 0x194   : > { %v6442_v5 = vadd.f32 %v987_v8, %v6102_v14  ;;  %v989_v50 = vpop.f32.mrb[47].mxu0  ;;  %8866 = vst [vmem:[#allocation59_spill] sm:$0xff] %v6455_v37  ;;  %v5215_v39 = vcombine.high %v2091_v20, %v2091_v20  ;;  %v5214_v10 = vcombine.low %v2091_v20, %v2091_v20 }
 0x195   : > { %8864 = vst [vmem:[#allocation57_spill] sm:$0xff] %v6447_v63  ;;  %v6450_v52 = vadd.f32 %v989_v50, %v6099_v13 }
 0x196   : > { %8863 = vst [vmem:[#allocation56_spill] sm:$0xff] %v6442_v5  ;;  %v1214_v8 = vpack.c.bf16 %v6442_v5, %v6455_v37  ;;  %v6472_v5 = vpop.f32.mrb[46].mxu1  ;;  %5216 = vmatprep.subr.msk.bf16.mxu0 %vm1515_vm2, %v5215_v39 }
 0x197   : > { %8865 = vst [vmem:[#allocation58_spill] sm:$0xff] %v6450_v52  ;;  %v1215_v3 = vpack.c.bf16 %v6450_v52, %v6447_v63  ;;  %8869 = vst [vmem:[#allocation62_spill] sm:$0xff] %v6472_v5  ;;  %v6482_v20 = vpop.f32.mrb[47].mxu1 }
 0x199   : > { %v993_v56 = vpop.f32.mrb[48].mxu0  ;;  %5169 = vmatprep.mubr.msk.bf16.mxu1 %vm1418_vm3, %v1215_v3  ;;  %v2326_v3 = vsel %vm1515_vm2, %v5214_v10, 0 }
 0x19a   : > { %v995_v50 = vpop.f32.mrb[49].mxu0  ;;  %1665 = vmatmul.mubr.bf16.gmra.mrb[108].mxu1 %v1214_v8  ;;  %2356 = vmatpush1.bf16.msra.mxu0 %v2326_v3  ;;  %v6485_v19 = vadd.f32 %v993_v56, %v6102_v14  ;;  %v6492_v10 = vpop.f32.mrb[48].mxu1 }
 0x19b   : > { %v997_v22 = vpop.f32.mrb[50].mxu0  ;;  %v6477_v37 = vadd.f32 %v995_v50, %v6099_v13  ;;  %8873 = vst [vmem:[#allocation66_spill] sm:$0xff] %v6492_v10  ;;  %v6494_v5 = vpop.f32.mrb[49].mxu1 }
 0x19c   : > { %v6470_v52 = vadd.f32 %v997_v22, %v6102_v14  ;;  %v999_v63 = vpop.f32.mrb[51].mxu0  ;;  %8872 = vst [vmem:[#allocation65_spill] sm:$0xff] %v6485_v19  ;;  %8874 = vst [vmem:[#allocation67_spill] sm:$0xff] %v6494_v5  ;;  %v6499_v24 = vpop.f32.mrb[50].mxu1 }
 0x19d   : > { %8870 = vst [vmem:[#allocation63_spill] sm:$0xff] %v6477_v37  ;;  %v6480_v8 = vadd.f32 %v999_v63, %v6099_v13  ;;  %8876 = vst [vmem:[#allocation69_spill] sm:$0xff] %v6499_v24 }
 0x19e   : > { %8868 = vst [vmem:[#allocation61_spill] sm:$0xff] %v6470_v52  ;;  %v1216_v39 = vpack.c.bf16 %v6470_v52, %v6485_v19  ;;  %v5531_v19 = vld [vmem:[%s8542_s7 + $0x20] ss:$8 sps:$4 sm:$0xff]  }
 0x19f   : > { %8871 = vst [vmem:[#allocation64_spill] sm:$0xff] %v6480_v8  ;;  %v1217_v22 = vpack.c.bf16 %v6480_v8, %v6477_v37 }
 0x1a1   : > { %v1003_v23 = vpop.f32.mrb[52].mxu0  ;;  %5170 = vmatprep.mubr.msk.bf16.mxu1 %vm1418_vm3, %v1217_v22  ;;  %v6507_v22 = vpop.f32.mrb[51].mxu1 }
 0x1a2   : > { %v1005_v50 = vpop.f32.mrb[53].mxu0  ;;  %1675 = vmatmul.mubr.bf16.gmra.mrb[112].mxu1 %v1216_v39  ;;  %8879 = vst [vmem:[#allocation72_spill] sm:$0xff] %v6507_v22  ;;  %v6510_v39 = vadd.f32 %v1003_v23, %v6102_v14  ;;  %v6523_v23 = vpop.f32.mrb[52].mxu1 }
 0x1a3   : > { %v1007_v63 = vpop.f32.mrb[54].mxu0  ;;  %v6502_v8 = vadd.f32 %v1005_v50, %v6099_v13  ;;  %v5533_v50 = vld [vmem:[%s8542_s7 + $0x24] ss:$8 sps:$4 sm:$0xff]   ;;  %8881 = vst [vmem:[#allocation74_spill] sm:$0xff] %v6523_v23 }
 0x1a4   : > { %v6497_v3 = vadd.f32 %v1007_v63, %v6102_v14  ;;  %v1009_v56 = vpop.f32.mrb[55].mxu0  ;;  %8880 = vst [vmem:[#allocation73_spill] sm:$0xff] %v6510_v39  ;;  %3144 = vmatprep.subr.bf16.mxu1 %v5533_v50 }
 0x1a5   : > { %8877 = vst [vmem:[#allocation70_spill] sm:$0xff] %v6502_v8  ;;  %v6505_v37 = vadd.f32 %v1009_v56, %v6099_v13  ;;  %3145 = vmatpush1.bf16.msra.mxu1 %v5531_v19 }
 0x1a6   : > { %8875 = vst [vmem:[#allocation68_spill] sm:$0xff] %v6497_v3  ;;  %v1218_v63 = vpack.c.bf16 %v6497_v3, %v6510_v39 }
 0x1a7   : > { %8878 = vst [vmem:[#allocation71_spill] sm:$0xff] %v6505_v37  ;;  %v1219_v52 = vpack.c.bf16 %v6505_v37, %v6502_v8  ;;  %v6525_v8 = vpop.f32.mrb[53].mxu1 }
 0x1a8   : > { %8882 = vst [vmem:[#allocation75_spill] sm:$0xff] %v6525_v8  ;;  %v6530_v10 = vpop.f32.mrb[54].mxu1 }
 0x1a9   : > { %v1013_v56 = vpop.f32.mrb[56].mxu0  ;;  %5171 = vmatprep.mubr.msk.bf16.mxu1 %vm1418_vm3, %v1219_v52  ;;  %8884 = vst [vmem:[#allocation77_spill] sm:$0xff] %v6530_v10 }
 0x1aa   : > { %v1015_v24 = vpop.f32.mrb[57].mxu0  ;;  %1685 = vmatmul.mubr.bf16.gmra.mrb[116].mxu1 %v1218_v63  ;;  %v6538_v63 = vpop.f32.mrb[55].mxu1  ;;  %v6541_v50 = vadd.f32 %v1013_v56, %v6102_v14 }
 0x1ab   : > { %v1017_v37 = vpop.f32.mrb[58].mxu0  ;;  %v6533_v22 = vadd.f32 %v1015_v24, %v6099_v13  ;;  %8887 = vst [vmem:[#allocation80_spill] sm:$0xff] %v6538_v63  ;;  %v6548_v24 = vpop.f32.mrb[56].mxu1 }
 0x1ac   : > { %v6528_v3 = vadd.f32 %v1017_v37, %v6102_v14  ;;  %v1019_v39 = vpop.f32.mrb[59].mxu0  ;;  %8888 = vst [vmem:[#allocation81_spill] sm:$0xff] %v6541_v50  ;;  %v6550_v8 = vpop.f32.mrb[57].mxu1 }
 0x1ad   : > { %8885 = vst [vmem:[#allocation78_spill] sm:$0xff] %v6533_v22  ;;  %v6536_v52 = vadd.f32 %v1019_v39, %v6099_v13  ;;  %v6555_v5 = vpop.f32.mrb[58].mxu1 }
 0x1ae   : > { %8883 = vst [vmem:[#allocation76_spill] sm:$0xff] %v6528_v3  ;;  %v1220_v37 = vpack.c.bf16 %v6528_v3, %v6541_v50  ;;  %v6571_v3 = vpop.f32.mrb[59].mxu1 }
 0x1af   : > { %8886 = vst [vmem:[#allocation79_spill] sm:$0xff] %v6536_v52  ;;  %v1221_v19 = vpack.c.bf16 %v6536_v52, %v6533_v22  ;;  %v6559_v52 = vadd.f32 %v6129_v30, %v6099_v13 }
 0x1b1   : > { %v1023_v23 = vpop.f32.mrb[60].mxu0  ;;  %5172 = vmatprep.mubr.msk.bf16.mxu1 %vm1418_vm3, %v1221_v19  ;;  %8889 = vst [vmem:[#allocation82_spill] sm:$0xff] %v6559_v52  ;;  %v6563_v19 = vadd.f32 %v6148_v38, %v6099_v13 }
 0x1b2   : > { %v1025_v10 = vpop.f32.mrb[61].mxu0  ;;  %1695 = vmatmul.mubr.bf16.gmra.mrb[120].mxu1 %v1220_v37 }
 0x1b3   : > { %v1027_v39 = vpop.f32.mrb[62].mxu0  ;;  %8890 = vst [vmem:[#allocation83_spill] sm:$0xff] %v6563_v19  ;;  %v6566_v37 = vadd.f32 %v1025_v10, %v6099_v13  ;;  %v1225_v38 = vpack.c.bf16 %v6563_v19, %v6559_v52  ;;  %v6583_v10 = vpop.f32.mrb[60].mxu1  ;;  %v6625_v52 = vadd.f32 %v6171_v51, %v6102_v14  ;;  %v6646_v51 = vadd.f32 %v6196_v2, %v6102_v14 }
 0x1b4   : > { %v6553_v63 = vadd.f32 %v1027_v39, %v6102_v14  ;;  %v1029_v56 = vpop.f32.mrb[63].mxu0  ;;  %v6574_v39 = vadd.f32 %v1023_v23, %v6102_v14  ;;  %v6590_v23 = vadd.f32 %v6127_v28, %v6102_v14  ;;  %v5534_v28 = vld [vmem:[%s8542_s7 + $0x30] ss:$8 sps:$4 sm:$0xff]  }
 0x1b5   : > { %8891 = vst [vmem:[#allocation84_spill] sm:$0xff] %v6566_v37  ;;  %v6569_v22 = vadd.f32 %v1029_v56, %v6099_v13  ;;  %v6586_v56 = vpop.f32.mrb[61].mxu1  ;;  %8896 = vst [vmem:[#allocation89_spill] sm:$0xff] %v6625_v52 }
 0x1b6   : > { %v1222_v30 = vpack.c.bf16 %v6553_v63, %v6574_v39  ;;  %8900 = vst [vmem:[#allocation93_spill] sm:$0xff] %v6646_v51 }
 0x1b7   : > { %8892 = vst [vmem:[#allocation85_spill] sm:$0xff] %v6569_v22  ;;  %v1223_v50 = vpack.c.bf16 %v6569_v22, %v6566_v37  ;;  %v6594_v22 = vadd.f32 %v6140_v35, %v6102_v14  ;;  %v6596_v37 = vpop.f32.mrb[62].mxu1  ;;  %v5536_v35 = vld [vmem:[%s8542_s7 + $0x34] ss:$8 sps:$4 sm:$0xff]  }
 0x1b8   : > { %3146 = vmatprep.subr.bf16.mxu1 %v5536_v35  ;;  %v6629_v35 = vadd.f32 %v6191_v62, %v6099_v13  ;;  %v6650_v62 = vadd.f32 %v6216_v16, %v6099_v13 }
 0x1b9   : > { %5173 = vmatprep.mubr.msk.bf16.mxu1 %vm1418_vm3, %v1223_v50  ;;  %v6600_v50 = vadd.f32 %v6160_v46, %v6099_v13  ;;  %v1224_v19 = vpack.c.bf16 %v6594_v22, %v6590_v23  ;;  %3147 = vmatpush1.bf16.msra.mxu1 %v5534_v28  ;;  %v6633_v28 = vadd.f32 %v6204_v1, %v6099_v13 }
 0x1ba   : > { %1705 = vmatmul.mubr.bf16.gmra.mrb[124].mxu1 %v1222_v30  ;;  %v6604_v30 = vadd.f32 %v6179_v54, %v6099_v13  ;;  %v6621_v54 = vadd.f32 %v6158_v44, %v6102_v14  ;;  %8897 = vst [vmem:[#allocation90_spill] sm:$0xff] %v6629_v35  ;;  %v6642_v44 = vadd.f32 %v6189_v60, %v6102_v14  ;;  %8901 = vst [vmem:[#allocation94_spill] sm:$0xff] %v6650_v62  ;;  %v5539_v60 = vld [vmem:[%s8542_s7 + $0x44] ss:$8 sps:$4 sm:$0xff]  }
 0x1bb   : > { %5174 = vmatprep.mubr.msk.bf16.mxu1 %vm1418_vm3, %v1225_v38  ;;  %8893 = vst [vmem:[#allocation86_spill] sm:$0xff] %v6600_v50  ;;  %v6606_v38 = vpop.f32.mrb[63].mxu1  ;;  %8898 = vst [vmem:[#allocation91_spill] sm:$0xff] %v6633_v28  ;;  %v6654_v1 = vadd.f32 %v6235_v29, %v6099_v13  ;;  %3148 = vmatprep.subr.bf16.mxu1 %v5539_v60  ;;  %v6669_v29 = vadd.f32 %v6214_v12, %v6102_v14 }
 0x1bc   : > { %8894 = vst [vmem:[#allocation87_spill] sm:$0xff] %v6604_v30  ;;  %v1227_v46 = vpack.c.bf16 %v6604_v30, %v6600_v50  ;;  %8895 = vst [vmem:[#allocation88_spill] sm:$0xff] %v6621_v54  ;;  %v1228_v2 = vpack.c.bf16 %v6646_v51, %v6642_v44  ;;  %v6677_v60 = vadd.f32 %v6247_v45, %v6099_v13 }
 0x1bd   : > { %8899 = vst [vmem:[#allocation92_spill] sm:$0xff] %v6642_v44  ;;  %8902 = vst [vmem:[#allocation95_spill] sm:$0xff] %v6654_v1  ;;  %v1231_v16 = vpack.c.bf16 %v6654_v1, %v6650_v62  ;;  %v6690_v12 = vadd.f32 %v6245_v42, %v6102_v14  ;;  %v6698_v45 = vadd.f32 %v6278_v18, %v6099_v13 }
 0x1be   : > { %8903 = vst [vmem:[#allocation96_spill] sm:$0xff] %v6669_v29  ;;  %8905 = vst [vmem:[#allocation98_spill] sm:$0xff] %v6677_v60  ;;  %v6711_v42 = vadd.f32 %v6276_v15, %v6102_v14  ;;  %v6719_v18 = vadd.f32 %v6309_v58, %v6099_v13  ;;  %v5542_v15 = vld [vmem:[%s8542_s7 + $0x54] ss:$8 sps:$4 sm:$0xff]  }
 0x1bf   : > { %8907 = vst [vmem:[#allocation100_spill] sm:$0xff] %v6690_v12  ;;  %8909 = vst [vmem:[#allocation102_spill] sm:$0xff] %v6698_v45 }
 0x1c0   : > { %8911 = vst [vmem:[#allocation104_spill] sm:$0xff] %v6711_v42  ;;  %8913 = vst [vmem:[#allocation106_spill] sm:$0xff] %v6719_v18 }
 0x1c2   : > { %1715 = vmatmul.mubr.bf16.gmra.mrb[128].mxu1 %v1224_v19  ;;  %v1226_v19 = vpack.c.bf16 %v6625_v52, %v6621_v54 }
 0x1c3   : > { %5175 = vmatprep.mubr.msk.bf16.mxu1 %vm1418_vm3, %v1227_v46  ;;  %v1229_v46 = vpack.c.bf16 %v6633_v28, %v6629_v35 }
 0x1ca   : > { %1725 = vmatmul.mubr.bf16.gmra.mrb[132].mxu1 %v1226_v19  ;;  %v5537_v19 = vld [vmem:[%s8542_s7 + $0x40] ss:$8 sps:$4 sm:$0xff]  }
 0x1cb   : > { %5176 = vmatprep.mubr.msk.bf16.mxu1 %vm1418_vm3, %v1229_v46  ;;  %3149 = vmatpush1.bf16.msra.mxu1 %v5537_v19  ;;  %v6673_v46 = vadd.f32 %v6227_v25, %v6102_v14  ;;  %v6681_v19 = vadd.f32 %v6266_v61, %v6099_v13  ;;  %v6694_v25 = vadd.f32 %v6258_v57, %v6102_v14 }
 0x1cc   : > { %v6702_v61 = vadd.f32 %v6297_v48, %v6099_v13  ;;  %v6715_v57 = vadd.f32 %v6289_v41, %v6102_v14  ;;  %v6723_v48 = vadd.f32 %v6328_v34, %v6099_v13  ;;  %3150 = vmatprep.subr.bf16.mxu1 %v5542_v15  ;;  %v6738_v34 = vadd.f32 %v6307_v40, %v6102_v14 }
 0x1cd   : > { %8904 = vst [vmem:[#allocation97_spill] sm:$0xff] %v6673_v46  ;;  %8906 = vst [vmem:[#allocation99_spill] sm:$0xff] %v6681_v19  ;;  %v6746_v15 = vadd.f32 %v6340_v26, %v6099_v13  ;;  %v6759_v40 = vadd.f32 %v6338_v47, %v6102_v14  ;;  %v6763_v26 = vadd.f32 %v6351_v59, %v6102_v14  ;;  %v5545_v47 = vld [vmem:[%s8542_s7 + $0x64] ss:$8 sps:$4 sm:$0xff]  }
 0x1ce   : > { %8908 = vst [vmem:[#allocation101_spill] sm:$0xff] %v6694_v25  ;;  %8910 = vst [vmem:[#allocation103_spill] sm:$0xff] %v6702_v61  ;;  %v1234_v41 = vpack.c.bf16 %v6715_v57, %v6711_v42  ;;  %v1237_v58 = vpack.c.bf16 %v6723_v48, %v6719_v18 }
 0x1cf   : > { %8912 = vst [vmem:[#allocation105_spill] sm:$0xff] %v6715_v57  ;;  %8914 = vst [vmem:[#allocation107_spill] sm:$0xff] %v6723_v48  ;;  %v1238_v59 = vpack.c.bf16 %v6763_v26, %v6759_v40 }
 0x1d0   : > { %8915 = vst [vmem:[#allocation108_spill] sm:$0xff] %v6738_v34  ;;  %8917 = vst [vmem:[#allocation110_spill] sm:$0xff] %v6746_v15 }
 0x1d1   : > { %8919 = vst [vmem:[#allocation112_spill] sm:$0xff] %v6759_v40  ;;  %8920 = vst [vmem:[#allocation113_spill] sm:$0xff] %v6763_v26 }
 0x1d2   : > { %1735 = vmatmul.mubr.bf16.gmra.mrb[136].mxu1 %v1228_v2  ;;  %v1230_v2 = vpack.c.bf16 %v6673_v46, %v6669_v29 }
 0x1d3   : > { %5177 = vmatprep.mubr.msk.bf16.mxu1 %vm1418_vm3, %v1231_v16  ;;  %v1233_v16 = vpack.c.bf16 %v6681_v19, %v6677_v60 }
 0x1da   : > { %1745 = vmatmul.mubr.bf16.gmra.mrb[140].mxu1 %v1230_v2  ;;  %v1232_v2 = vpack.c.bf16 %v6694_v25, %v6690_v12 }
 0x1db   : > { %5178 = vmatprep.mubr.msk.bf16.mxu1 %vm1418_vm3, %v1233_v16  ;;  %v1235_v16 = vpack.c.bf16 %v6702_v61, %v6698_v45 }
 0x1e2   : > { %1755 = vmatmul.mubr.bf16.gmra.mrb[144].mxu1 %v1232_v2  ;;  %v5540_v2 = vld [vmem:[%s8542_s7 + $0x50] ss:$8 sps:$4 sm:$0xff]  }
 0x1e3   : > { %5179 = vmatprep.mubr.msk.bf16.mxu1 %vm1418_vm3, %v1235_v16  ;;  %3151 = vmatpush1.bf16.msra.mxu1 %v5540_v2  ;;  %v6742_v16 = vadd.f32 %v6320_v6, %v6102_v14  ;;  %v6750_v2 = vadd.f32 %v6359_v32, %v6099_v13  ;;  %v6767_v32 = vadd.f32 %v6377_v7, %v6099_v13 }
 0x1e4   : > { %v6771_v6 = vadd.f32 %v6390_v4, %v6099_v13  ;;  %3152 = vmatprep.subr.bf16.mxu1 %v5545_v47  ;;  %v6786_v4 = vadd.f32 %v6369_v43, %v6102_v14  ;;  %v6794_v47 = vadd.f32 %v6402_v53, %v6099_v13  ;;  %v6807_v43 = vadd.f32 %v6400_v0, %v6102_v14  ;;  %v5546_v0 = vld [vmem:[%s8542_s7 + $0x70] ss:$8 sps:$4 sm:$0xff]  }
 0x1e5   : > { %8916 = vst [vmem:[#allocation109_spill] sm:$0xff] %v6742_v16  ;;  %8918 = vst [vmem:[#allocation111_spill] sm:$0xff] %v6750_v2  ;;  %v6811_v53 = vadd.f32 %v6413_v17, %v6102_v14  ;;  %v6834_v17 = vadd.f32 %v6437_v36, %v6102_v14 }
 0x1e6   : > { %8921 = vst [vmem:[#allocation114_spill] sm:$0xff] %v6767_v32  ;;  %8922 = vst [vmem:[#allocation115_spill] sm:$0xff] %v6771_v6  ;;  %v1241_v7 = vpack.c.bf16 %v6771_v6, %v6767_v32  ;;  %v8944_v6 = vld [vmem:[#allocation12_spill] sm:$0xff] }
 0x1e7   : > { %8923 = vst [vmem:[#allocation116_spill] sm:$0xff] %v6786_v4  ;;  %8925 = vst [vmem:[#allocation118_spill] sm:$0xff] %v6794_v47 }
 0x1e8   : > { %8927 = vst [vmem:[#allocation120_spill] sm:$0xff] %v6807_v43  ;;  %8928 = vst [vmem:[#allocation121_spill] sm:$0xff] %v6811_v53 }
 0x1e9   : > { %8931 = vst [vmem:[#allocation124_spill] sm:$0xff] %v6834_v17 }
 0x1ea   : > { %1765 = vmatmul.mubr.bf16.gmra.mrb[148].mxu1 %v1234_v41  ;;  %v1236_v41 = vpack.c.bf16 %v6742_v16, %v6738_v34 }
 0x1eb   : > { %5180 = vmatprep.mubr.msk.bf16.mxu1 %vm1418_vm3, %v1237_v58  ;;  %v1239_v58 = vpack.c.bf16 %v6750_v2, %v6746_v15 }
 0x1f2   : > { %1775 = vmatmul.mubr.bf16.gmra.mrb[152].mxu1 %v1236_v41  ;;  %v5543_v41 = vld [vmem:[%s8542_s7 + $0x60] ss:$8 sps:$4 sm:$0xff]  }
 0x1f3   : > { %5181 = vmatprep.mubr.msk.bf16.mxu1 %vm1418_vm3, %v1239_v58  ;;  %3153 = vmatpush1.bf16.msra.mxu1 %v5543_v41  ;;  %v6790_v58 = vadd.f32 %v6382_v27, %v6102_v14  ;;  %v6798_v41 = vadd.f32 %v6427_v49, %v6099_v13  ;;  %v6815_v49 = vadd.f32 %v6439_v33, %v6099_v13  ;;  %v5548_v33 = vld [vmem:[%s8542_s7 + $0x74] ss:$8 sps:$4 sm:$0xff]  }
 0x1f4   : > { %v6819_v27 = vadd.f32 %v6452_v55, %v6099_v13  ;;  %v6838_v55 = vadd.f32 %v6444_v31, %v6102_v14  ;;  %3154 = vmatprep.subr.bf16.mxu1 %v5548_v33 }
 0x1f5   : > { %8924 = vst [vmem:[#allocation117_spill] sm:$0xff] %v6790_v58  ;;  %8926 = vst [vmem:[#allocation119_spill] sm:$0xff] %v6798_v41 }
 0x1f6   : > { %8929 = vst [vmem:[#allocation122_spill] sm:$0xff] %v6815_v49  ;;  %8930 = vst [vmem:[#allocation123_spill] sm:$0xff] %v6819_v27  ;;  %v1244_v36 = vpack.c.bf16 %v6838_v55, %v6834_v17 }
 0x1f7   : > { %8932 = vst [vmem:[#allocation125_spill] sm:$0xff] %v6838_v55  ;;  %3155 = vmatpush1.bf16.msra.mxu1 %v5546_v0  ;;  %v8939_v55 = vld [vmem:[#allocation67_spill] sm:$0xff] }
 0x1fa   : > { %1785 = vmatmul.mubr.bf16.gmra.mrb[156].mxu1 %v1238_v59  ;;  %v1240_v59 = vpack.c.bf16 %v6790_v58, %v6786_v4 }
 0x1fb   : > { %5182 = vmatprep.mubr.msk.bf16.mxu1 %vm1418_vm3, %v1241_v7  ;;  %v1243_v7 = vpack.c.bf16 %v6798_v41, %v6794_v47 }
 0x202   : > { %1795 = vmatmul.mubr.bf16.gmra.mrb[160].mxu1 %v1240_v59  ;;  %v1242_v59 = vpack.c.bf16 %v6811_v53, %v6807_v43 }
 0x203   : > { %5183 = vmatprep.mubr.msk.bf16.mxu1 %vm1418_vm3, %v1243_v7  ;;  %v1245_v7 = vpack.c.bf16 %v6819_v27, %v6815_v49  ;;  %v6846_v27 = vadd.f32 %v6482_v20, %v6099_v13  ;;  %v8935_v20 = vld [vmem:[#allocation60_spill] sm:$0xff]  ;;  %v8937_v49 = vld [vmem:[#allocation62_spill] sm:$0xff] }
 0x204   : > { %v6864_v0 = vadd.f32 %v8935_v20, %v6102_v14  ;;  %v6868_v41 = vadd.f32 %v8937_v49, %v6102_v14 }
 0x205   : > { %8934 = vst [vmem:[#allocation127_spill] sm:$0xff] %v6846_v27 }
 0x206   : > { %8936 = vst [vmem:[#allocation60_spill] sm:$0xff] %v6864_v0  ;;  %8938 = vst [vmem:[#allocation62_spill] sm:$0xff] %v6868_v41  ;;  %v1246_v49 = vpack.c.bf16 %v6868_v41, %v6864_v0  ;;  %v8958_v0 = vld [vmem:[#allocation18_spill] sm:$0xff] }
 0x20a   : > { %1805 = vmatmul.mubr.bf16.gmra.mrb[164].mxu1 %v1242_v59  ;;  %v6842_v59 = vadd.f32 %v6467_v21, %v6099_v13 }
 0x20b   : > { %5184 = vmatprep.mubr.msk.bf16.mxu1 %vm1418_vm3, %v1245_v7  ;;  %v1281_v7 = vld [vmem:[%s8539_s4] sm:$0x3] }
 0x20c   : > { %8933 = vst [vmem:[#allocation126_spill] sm:$0xff] %v6842_v59  ;;  %v1247_v31 = vpack.c.bf16 %v6846_v27, %v6842_v59  ;;  %v6856_v33 = vrot.slane %v1281_v7, %v6096_v11  ;;  %v6860_v21 = vrot.slane %v1281_v7, %v6091_v9  ;;  %v6872_v27 = vadd.f32 %v8939_v55, %v6099_v13 }
 0x20e   : > { %8940 = vst [vmem:[#allocation67_spill] sm:$0xff] %v6872_v27 }
 0x212   : > { %1815 = vmatmul.mubr.bf16.gmra.mrb[168].mxu1 %v1244_v36  ;;  %v8941_v36 = vld [vmem:[#allocation72_spill] sm:$0xff] }
 0x213   : > { %5185 = vmatprep.mubr.msk.bf16.mxu1 %vm1418_vm3, %v1247_v31  ;;  %v6876_v59 = vadd.f32 %v8941_v36, %v6099_v13  ;;  %v8943_v36 = vld [vmem:[#allocation15_spill] sm:$0xff] }
 0x215   : > { %8942 = vst [vmem:[#allocation72_spill] sm:$0xff] %v6876_v59  ;;  %v1556_v31 = vpop.f32.mrb[64].mxu1  ;;  %v1249_v53 = vpack.c.bf16 %v6876_v59, %v6872_v27 }
 0x216   : > { %v1557_v7 = vadd.f32 %v1556_v31, %v6856_v33  ;;  %v1558_v9 = vpop.f32.mrb[65].mxu1  ;;  %v8945_v31 = vld [vmem:[#allocation13_spill] sm:$0xff] }
 0x217   : > { %v1559_v11 = vadd.f32 %v1558_v9, %v6860_v21  ;;  %v1560_v20 = vpop.f32.mrb[66].mxu1  ;;  %v8946_v9 = vld [vmem:[#allocation14_spill] sm:$0xff] }
 0x218   : > { %v1561_v17 = vadd.f32 %v1560_v20, %v6856_v33  ;;  %v1562_v47 = vpop.f32.mrb[67].mxu1  ;;  %v1875_v43 = vmul.f32 %v1557_v7, %v8943_v36  ;;  %v8947_v20 = vld [vmem:[#allocation66_spill] sm:$0xff]  ;;  %v8951_v7 = vld [vmem:[#allocation75_spill] sm:$0xff] }
 0x219   : > { %v1563_v55 = vadd.f32 %v1562_v47, %v6860_v21  ;;  %v1876_v58 = vmul.f32 %v1559_v11, %v8945_v31  ;;  %v6893_v2 = vadd.f32 %v8947_v20, %v6102_v14  ;;  %v8949_v47 = vld [vmem:[#allocation69_spill] sm:$0xff]  ;;  %v6901_v27 = vadd.f32 %v8951_v7, %v6099_v13  ;;  %v5551_v20 = vld [vmem:[%s8542_s7 + $0x84] ss:$8 sps:$4 sm:$0xff]  }
 0x21a   : > { %v1877_v32 = vmul.f32 %v1561_v17, %v8944_v6  ;;  %1825 = vmatmul.mubr.bf16.gmra.mrb[172].mxu1 %v1246_v49  ;;  %v6897_v41 = vadd.f32 %v8949_v47, %v6102_v14  ;;  %v8953_v17 = vld [vmem:[#allocation80_spill] sm:$0xff]  ;;  %3156 = vmatprep.subr.bf16.mxu1 %v5551_v20  ;;  %v8955_v31 = vld [vmem:[#allocation19_spill] sm:$0xff] }
 0x21b   : > { %v1878_v4 = vmul.f32 %v1563_v55, %v8946_v9  ;;  %5186 = vmatprep.mubr.msk.bf16.mxu1 %vm1418_vm3, %v1249_v53  ;;  %8948 = vst [vmem:[#allocation66_spill] sm:$0xff] %v6893_v2  ;;  %8952 = vst [vmem:[#allocation75_spill] sm:$0xff] %v6901_v27  ;;  %v6905_v11 = vadd.f32 %v8953_v17, %v6099_v13  ;;  %v5549_v53 = vld [vmem:[%s8542_s7 + $0x80] ss:$8 sps:$4 sm:$0xff]  }
 0x21c   : > { %8950 = vst [vmem:[#allocation69_spill] sm:$0xff] %v6897_v41  ;;  %v2003_v59 = vpack.c.bf16 %v1877_v32, %v1875_v43  ;;  %v1248_v17 = vpack.c.bf16 %v6897_v41, %v6893_v2  ;;  %3157 = vmatpush1.bf16.msra.mxu1 %v5549_v53  ;;  %v8961_v53 = vld [vmem:[#allocation77_spill] sm:$0xff] }
 0x21d   : > { %8954 = vst [vmem:[#allocation80_spill] sm:$0xff] %v6905_v11  ;;  %v2004_v49 = vpack.c.bf16 %v1878_v4, %v1876_v58  ;;  %v1566_v55 = vpop.f32.mrb[68].mxu1 }
 0x21e   : > { %v1567_v32 = vadd.f32 %v1566_v55, %v6856_v33  ;;  %v1568_v43 = vpop.f32.mrb[69].mxu1  ;;  %v1251_v55 = vpack.c.bf16 %v6905_v11, %v6901_v27 }
 0x21f   : > { %v1569_v47 = vadd.f32 %v1568_v43, %v6860_v21  ;;  %v1570_v7 = vpop.f32.mrb[70].mxu1  ;;  %5217 = vmatprep.mubr.msk.bf16.mxu0 %vm1418_vm3, %v2004_v49  ;;  %v8956_v43 = vld [vmem:[#allocation16_spill] sm:$0xff]  ;;  %v8957_v49 = vld [vmem:[#allocation17_spill] sm:$0xff] }
 0x220   : > { %v1571_v4 = vadd.f32 %v1570_v7, %v6856_v33  ;;  %v1572_v58 = vpop.f32.mrb[71].mxu1  ;;  %2364 = vmatmul.mubr.bf16.vlgmr.msra.gmra.mrb[64].mxu0 %v2003_v59  ;;  %v1879_v6 = vmul.f32 %v1567_v32, %v8955_v31  ;;  %v8959_v59 = vld [vmem:[#allocation74_spill] sm:$0xff]  ;;  %v6937_v32 = vadd.f32 %v6550_v8, %v6099_v13 }
 0x221   : > { %v1573_v9 = vadd.f32 %v1572_v58, %v6860_v21  ;;  %v1880_v20 = vmul.f32 %v1569_v47, %v8957_v49  ;;  %v6929_v41 = vadd.f32 %v8959_v59, %v6102_v14  ;;  %v6933_v58 = vadd.f32 %v8961_v53, %v6102_v14 }
 0x222   : > { %v1881_v36 = vmul.f32 %v1571_v4, %v8956_v43  ;;  %1835 = vmatmul.mubr.bf16.gmra.mrb[176].mxu1 %v1248_v17  ;;  %8963 = vst [vmem:[#allocation128_spill] sm:$0xff] %v6937_v32  ;;  %v6941_v47 = vadd.f32 %v6571_v3, %v6099_v13 }
 0x223   : > { %v1882_v7 = vmul.f32 %v1573_v9, %v8958_v0  ;;  %5187 = vmatprep.mubr.msk.bf16.mxu1 %vm1418_vm3, %v1251_v55  ;;  %8960 = vst [vmem:[#allocation74_spill] sm:$0xff] %v6929_v41  ;;  %8962 = vst [vmem:[#allocation77_spill] sm:$0xff] %v6933_v58  ;;  %v1250_v8 = vpack.c.bf16 %v6933_v58, %v6929_v41 }
 0x224   : > { %v2005_v11 = vpack.c.bf16 %v1881_v36, %v1879_v6  ;;  %8964 = vst [vmem:[#allocation129_spill] sm:$0xff] %v6941_v47 }
 0x225   : > { %v2006_v9 = vpack.c.bf16 %v1882_v7, %v1880_v20  ;;  %v1576_v4 = vpop.f32.mrb[72].mxu1  ;;  %v1253_v20 = vpack.c.bf16 %v6941_v47, %v6937_v32  ;;  %v8965_v7 = vld [vmem:[#allocation23_spill] sm:$0xff]  ;;  %v8976_v32 = vld [vmem:[#allocation26_spill] sm:$0xff] }
 0x226   : > { %v1577_v17 = vadd.f32 %v1576_v4, %v6856_v33  ;;  %v1578_v55 = vpop.f32.mrb[73].mxu1  ;;  %v8966_v4 = vld [vmem:[#allocation20_spill] sm:$0xff] }
 0x227   : > { %v1579_v59 = vadd.f32 %v1578_v55, %v6860_v21  ;;  %v1580_v27 = vpop.f32.mrb[74].mxu1  ;;  %5218 = vmatprep.mubr.msk.bf16.mxu0 %vm1418_vm3, %v2006_v9  ;;  %v8967_v55 = vld [vmem:[#allocation21_spill] sm:$0xff]  ;;  %v8968_v9 = vld [vmem:[#allocation22_spill] sm:$0xff] }
 0x228   : > { %v1581_v6 = vadd.f32 %v1580_v27, %v6856_v33  ;;  %v1582_v36 = vpop.f32.mrb[75].mxu1  ;;  %2374 = vmatmul.mubr.bf16.gmra.mrb[68].mxu0 %v2005_v11  ;;  %v1883_v53 = vmul.f32 %v1577_v17, %v8965_v7  ;;  %v6959_v27 = vadd.f32 %v6548_v24, %v6102_v14  ;;  %v6963_v11 = vadd.f32 %v6555_v5, %v6102_v14 }
 0x229   : > { %v1583_v3 = vadd.f32 %v1582_v36, %v6860_v21  ;;  %v1884_v49 = vmul.f32 %v1579_v59, %v8967_v55  ;;  %v6967_v17 = vadd.f32 %v6586_v56, %v6099_v13  ;;  %v6971_v59 = vadd.f32 %v6606_v38, %v6099_v13 }
 0x22a   : > { %v1885_v0 = vmul.f32 %v1581_v6, %v8966_v4  ;;  %1845 = vmatmul.mubr.bf16.gmra.mrb[180].mxu1 %v1250_v8  ;;  %8969 = vst [vmem:[#allocation21_spill] sm:$0xff] %v6959_v27  ;;  %8970 = vst [vmem:[#allocation130_spill] sm:$0xff] %v6963_v11  ;;  %v1252_v56 = vpack.c.bf16 %v6963_v11, %v6959_v27 }
 0x22b   : > { %v1886_v43 = vmul.f32 %v1583_v3, %v8968_v9  ;;  %5188 = vmatprep.mubr.msk.bf16.mxu1 %vm1418_vm3, %v1253_v20  ;;  %8971 = vst [vmem:[#allocation131_spill] sm:$0xff] %v6967_v17  ;;  %8972 = vst [vmem:[#allocation132_spill] sm:$0xff] %v6971_v59  ;;  %v1255_v38 = vpack.c.bf16 %v6971_v59, %v6967_v17 }
 0x22c   : > { %v2007_v36 = vpack.c.bf16 %v1885_v0, %v1883_v53  ;;  %v8974_v53 = vld [vmem:[#allocation24_spill] sm:$0xff] }
 0x22d   : > { %v2008_v6 = vpack.c.bf16 %v1886_v43, %v1884_v49  ;;  %v1586_v8 = vpop.f32.mrb[76].mxu1  ;;  %v8973_v43 = vld [vmem:[#allocation27_spill] sm:$0xff] }
 0x22e   : > { %v1587_v3 = vadd.f32 %v1586_v8, %v6856_v33  ;;  %v1588_v20 = vpop.f32.mrb[77].mxu1 }
 0x22f   : > { %v1589_v24 = vadd.f32 %v1588_v20, %v6860_v21  ;;  %v1590_v47 = vpop.f32.mrb[78].mxu1  ;;  %5219 = vmatprep.mubr.msk.bf16.mxu0 %vm1418_vm3, %v2008_v6  ;;  %v5552_v6 = vld [vmem:[%s8542_s7 + $0x90] ss:$8 sps:$4 sm:$0xff]  }
 0x230   : > { %v1591_v5 = vadd.f32 %v1590_v47, %v6856_v33  ;;  %v1592_v0 = vpop.f32.mrb[79].mxu1  ;;  %2384 = vmatmul.mubr.bf16.gmra.mrb[72].mxu0 %v2007_v36  ;;  %v1887_v49 = vmul.f32 %v1587_v3, %v8973_v43  ;;  %v5554_v47 = vld [vmem:[%s8542_s7 + $0x94] ss:$8 sps:$4 sm:$0xff]   ;;  %v6995_v3 = vadd.f32 %v6583_v10, %v6102_v14 }
 0x231   : > { %v1593_v13 = vadd.f32 %v1592_v0, %v6860_v21  ;;  %v8975_v36 = vld [vmem:[#allocation25_spill] sm:$0xff]  ;;  %3158 = vmatprep.subr.bf16.mxu1 %v5554_v47 }
 0x232   : > { %v1889_v8 = vmul.f32 %v1591_v5, %v8974_v53  ;;  %1855 = vmatmul.mubr.bf16.gmra.mrb[184].mxu1 %v1252_v56  ;;  %v1888_v20 = vmul.f32 %v1589_v24, %v8975_v36  ;;  %8977 = vst [vmem:[#allocation133_spill] sm:$0xff] %v6995_v3  ;;  %v6999_v5 = vadd.f32 %v6596_v37, %v6102_v14 }
 0x233   : > { %v1890_v0 = vmul.f32 %v1593_v13, %v8976_v32  ;;  %5189 = vmatprep.mubr.msk.bf16.mxu1 %vm1418_vm3, %v1255_v38  ;;  %3159 = vmatpush1.bf16.msra.mxu1 %v5552_v6  ;;  %v8980_v6 = vld [vmem:[#allocation28_spill] sm:$0xff] }
 0x234   : > { %8978 = vst [vmem:[#allocation134_spill] sm:$0xff] %v6999_v5  ;;  %v2009_v56 = vpack.c.bf16 %v1889_v8, %v1887_v49  ;;  %v1254_v14 = vpack.c.bf16 %v6999_v5, %v6995_v3  ;;  %v8979_v49 = vld [vmem:[#allocation31_spill] sm:$0xff] }
 0x235   : > { %v2010_v59 = vpack.c.bf16 %v1890_v0, %v1888_v20  ;;  %v1596_v17 = vpop.f32.mrb[80].mxu1  ;;  %v8982_v0 = vld [vmem:[#allocation30_spill] sm:$0xff] }
 0x236   : > { %v1597_v53 = vadd.f32 %v1596_v17, %v6856_v33  ;;  %v1598_v24 = vpop.f32.mrb[81].mxu1  ;;  %v8981_v17 = vld [vmem:[#allocation29_spill] sm:$0xff] }
 0x237   : > { %v1599_v13 = vadd.f32 %v1598_v24, %v6860_v21  ;;  %v1600_v32 = vpop.f32.mrb[82].mxu1  ;;  %5220 = vmatprep.mubr.msk.bf16.mxu0 %vm1418_vm3, %v2010_v59 }
 0x238   : > { %v1601_v10 = vadd.f32 %v1600_v32, %v6856_v33  ;;  %v1602_v38 = vpop.f32.mrb[83].mxu1  ;;  %2394 = vmatmul.mubr.bf16.gmra.mrb[76].mxu0 %v2009_v56  ;;  %v1891_v8 = vmul.f32 %v1597_v53, %v8979_v49 }
 0x239   : > { %v1603_v37 = vadd.f32 %v1602_v38, %v6860_v21  ;;  %v1892_v20 = vmul.f32 %v1599_v13, %v8981_v17  ;;  %v8983_v13 = vld [vmem:[#allocation35_spill] sm:$0xff] }
 0x23a   : > { %v1893_v47 = vmul.f32 %v1601_v10, %v8980_v6  ;;  %1865 = vmatmul.mubr.bf16.gmra.mrb[188].mxu1 %v1254_v14 }
 0x23b   : > { %v1894_v24 = vmul.f32 %v1603_v37, %v8982_v0  ;;  %v8984_v37 = vld [vmem:[#allocation32_spill] sm:$0xff] }
 0x23c   : > { %v2011_v36 = vpack.c.bf16 %v1893_v47, %v1891_v8  ;;  %v8985_v47 = vld [vmem:[#allocation33_spill] sm:$0xff] }
 0x23d   : > { %v2012_v59 = vpack.c.bf16 %v1894_v24, %v1892_v20  ;;  %v1606_v43 = vpop.f32.mrb[84].mxu1  ;;  %v8986_v24 = vld [vmem:[#allocation34_spill] sm:$0xff] }
 0x23e   : > { %v1607_v32 = vadd.f32 %v1606_v43, %v6856_v33  ;;  %v1608_v56 = vpop.f32.mrb[85].mxu1 }
 0x23f   : > { %v1609_v11 = vadd.f32 %v1608_v56, %v6860_v21  ;;  %v1610_v5 = vpop.f32.mrb[86].mxu1  ;;  %5221 = vmatprep.mubr.msk.bf16.mxu0 %vm1418_vm3, %v2012_v59  ;;  %v5555_v59 = vld [vmem:[%s8542_s7 + $0xa0] ss:$8 sps:$4 sm:$0xff]  }
 0x240   : > { %v1611_v53 = vadd.f32 %v1610_v5, %v6856_v33  ;;  %v1612_v38 = vpop.f32.mrb[87].mxu1  ;;  %2404 = vmatmul.mubr.bf16.gmra.mrb[80].mxu0 %v2011_v36  ;;  %v1895_v14 = vmul.f32 %v1607_v32, %v8983_v13  ;;  %v5557_v36 = vld [vmem:[%s8542_s7 + $0xa4] ss:$8 sps:$4 sm:$0xff]  }
 0x241   : > { %v1613_v10 = vadd.f32 %v1612_v38, %v6860_v21  ;;  %v1896_v20 = vmul.f32 %v1609_v11, %v8985_v47  ;;  %3160 = vmatprep.subr.bf16.mxu1 %v5557_v36  ;;  %v8989_v47 = vld [vmem:[#allocation37_spill] sm:$0xff] }
 0x242   : > { %v1897_v8 = vmul.f32 %v1611_v53, %v8984_v37  ;;  %3161 = vmatpush1.bf16.msra.mxu1 %v5555_v59  ;;  %v8990_v37 = vld [vmem:[#allocation38_spill] sm:$0xff] }
 0x243   : > { %v1898_v43 = vmul.f32 %v1613_v10, %v8986_v24 }
 0x244   : > { %v2013_v0 = vpack.c.bf16 %v1897_v8, %v1895_v14  ;;  %v8987_v8 = vld [vmem:[#allocation39_spill] sm:$0xff] }
 0x245   : > { %v2014_v17 = vpack.c.bf16 %v1898_v43, %v1896_v20  ;;  %v1616_v56 = vpop.f32.mrb[88].mxu1  ;;  %v8988_v43 = vld [vmem:[#allocation36_spill] sm:$0xff] }
 0x246   : > { %v1617_v5 = vadd.f32 %v1616_v56, %v6856_v33  ;;  %v1618_v32 = vpop.f32.mrb[89].mxu1 }
 0x247   : > { %v1619_v53 = vadd.f32 %v1618_v32, %v6860_v21  ;;  %v1620_v38 = vpop.f32.mrb[90].mxu1  ;;  %5222 = vmatprep.mubr.msk.bf16.mxu0 %vm1418_vm3, %v2014_v17 }
 0x248   : > { %v1621_v11 = vadd.f32 %v1620_v38, %v6856_v33  ;;  %v1622_v10 = vpop.f32.mrb[91].mxu1  ;;  %2414 = vmatmul.mubr.bf16.gmra.mrb[84].mxu0 %v2013_v0  ;;  %v1899_v20 = vmul.f32 %v1617_v5, %v8987_v8 }
 0x249   : > { %v1623_v14 = vadd.f32 %v1622_v10, %v6860_v21  ;;  %v1900_v56 = vmul.f32 %v1619_v53, %v8989_v47  ;;  %v8991_v53 = vld [vmem:[#allocation43_spill] sm:$0xff] }
 0x24a   : > { %v1901_v24 = vmul.f32 %v1621_v11, %v8988_v43 }
 0x24b   : > { %v1902_v13 = vmul.f32 %v1623_v14, %v8990_v37  ;;  %v8992_v14 = vld [vmem:[#allocation40_spill] sm:$0xff] }
 0x24c   : > { %v2015_v32 = vpack.c.bf16 %v1901_v24, %v1899_v20 }
 0x24d   : > { %v2016_v6 = vpack.c.bf16 %v1902_v13, %v1900_v56  ;;  %v1626_v49 = vpop.f32.mrb[92].mxu1  ;;  %v8993_v13 = vld [vmem:[#allocation41_spill] sm:$0xff]  ;;  %v8994_v56 = vld [vmem:[#allocation42_spill] sm:$0xff] }
 0x24e   : > { %v1627_v17 = vadd.f32 %v1626_v49, %v6856_v33  ;;  %v1628_v36 = vpop.f32.mrb[93].mxu1 }
 0x24f   : > { %v1629_v38 = vadd.f32 %v1628_v36, %v6860_v21  ;;  %v1630_v0 = vpop.f32.mrb[94].mxu1  ;;  %5223 = vmatprep.mubr.msk.bf16.mxu0 %vm1418_vm3, %v2016_v6 }
 0x250   : > { %v1631_v59 = vadd.f32 %v1630_v0, %v6856_v33  ;;  %v1632_v5 = vpop.f32.mrb[95].mxu1  ;;  %2424 = vmatmul.mubr.bf16.gmra.mrb[88].mxu0 %v2015_v32  ;;  %v1903_v10 = vmul.f32 %v1627_v17, %v8991_v53 }
 0x251   : > { %v1633_v11 = vadd.f32 %v1632_v5, %v6860_v21  ;;  %v1904_v20 = vmul.f32 %v1629_v38, %v8993_v13  ;;  %v5558_v38 = vld [vmem:[%s8542_s7 + $0xb0] ss:$8 sps:$4 sm:$0xff]   ;;  %v5560_v5 = vld [vmem:[%s8542_s7 + $0xb4] ss:$8 sps:$4 sm:$0xff]  }
 0x252   : > { %v1905_v24 = vmul.f32 %v1631_v59, %v8992_v14  ;;  %3162 = vmatprep.subr.bf16.mxu1 %v5560_v5  ;;  %v5563_v13 = vld [vmem:[#allocation7 + $0x4] ss:$8 sps:$4 sm:$0xff]   ;;  %v9000_v5 = vld [vmem:[#allocation48_spill] sm:$0xff] }
 0x253   : > { %v1906_v49 = vmul.f32 %v1633_v11, %v8994_v56  ;;  %v8995_v11 = vld [vmem:[#allocation47_spill] sm:$0xff]  ;;  %3163 = vmatpush1.bf16.msra.mxu1 %v5558_v38  ;;  %v5561_v56 = vld [vmem:[#allocation7] ss:$8 sps:$4 sm:$0xff]   ;;  %3949 = vmatprep.subr.bf16.mxu0 %v5563_v13 }
 0x254   : > { %v2017_v37 = vpack.c.bf16 %v1905_v24, %v1903_v10  ;;  %v8996_v24 = vld [vmem:[#allocation44_spill] sm:$0xff]  ;;  %3950 = vmatpush1.bf16.msra.mxu0 %v5561_v56 }
 0x255   : > { %v2018_v47 = vpack.c.bf16 %v1906_v49, %v1904_v20  ;;  %v1636_v36 = vpop.f32.mrb[96].mxu1  ;;  %v8997_v49 = vld [vmem:[#allocation45_spill] sm:$0xff] }
 0x256   : > { %v1637_v43 = vadd.f32 %v1636_v36, %v6856_v33  ;;  %v1638_v6 = vpop.f32.mrb[97].mxu1  ;;  %v8998_v36 = vld [vmem:[#allocation46_spill] sm:$0xff] }
 0x257   : > { %v1639_v0 = vadd.f32 %v1638_v6, %v6860_v21  ;;  %v1640_v8 = vpop.f32.mrb[98].mxu1  ;;  %5224 = vmatprep.mubr.msk.bf16.mxu0 %vm1418_vm3, %v2018_v47 }
 0x258   : > { %v1641_v32 = vadd.f32 %v1640_v8, %v6856_v33  ;;  %v1642_v17 = vpop.f32.mrb[99].mxu1  ;;  %2434 = vmatmul.mubr.bf16.gmra.mrb[92].mxu0 %v2017_v37  ;;  %v1907_v10 = vmul.f32 %v1637_v43, %v8995_v11 }
 0x259   : > { %v1643_v59 = vadd.f32 %v1642_v17, %v6860_v21  ;;  %v1908_v47 = vmul.f32 %v1639_v0, %v8997_v49 }
 0x25a   : > { %v1909_v20 = vmul.f32 %v1641_v32, %v8996_v24 }
 0x25b   : > { %v1910_v8 = vmul.f32 %v1643_v59, %v8998_v36  ;;  %v8999_v59 = vld [vmem:[#allocation51_spill] sm:$0xff] }
 0x25c   : > { %v2019_v37 = vpack.c.bf16 %v1909_v20, %v1907_v10  ;;  %v9001_v20 = vld [vmem:[#allocation49_spill] sm:$0xff] }
 0x25d   : > { %v2020_v6 = vpack.c.bf16 %v1910_v8, %v1908_v47  ;;  %v1646_v17 = vpop.f32.mrb[100].mxu1  ;;  %v9002_v8 = vld [vmem:[#allocation50_spill] sm:$0xff] }
 0x25e   : > { %v1647_v14 = vadd.f32 %v1646_v17, %v6856_v33  ;;  %v1648_v53 = vpop.f32.mrb[101].mxu1 }
 0x25f   : > { %v1649_v3 = vadd.f32 %v1648_v53, %v6860_v21  ;;  %v1650_v27 = vpop.f32.mrb[102].mxu1  ;;  %5225 = vmatprep.mubr.msk.bf16.mxu0 %vm1418_vm3, %v2020_v6 }
 0x260   : > { %v1651_v43 = vadd.f32 %v1650_v27, %v6856_v33  ;;  %v1652_v0 = vpop.f32.mrb[103].mxu1  ;;  %2444 = vmatmul.mubr.bf16.gmra.mrb[96].mxu0 %v2019_v37  ;;  %v1911_v38 = vmul.f32 %v1647_v14, %v8999_v59 }
 0x261   : > { %v1653_v32 = vadd.f32 %v1652_v0, %v6860_v21  ;;  %v1912_v47 = vmul.f32 %v1649_v3, %v9001_v20  ;;  %v9003_v3 = vld [vmem:[#allocation55_spill] sm:$0xff] }
 0x262   : > { %v1913_v10 = vmul.f32 %v1651_v43, %v9000_v5 }
 0x263   : > { %v1914_v17 = vmul.f32 %v1653_v32, %v9002_v8  ;;  %v9004_v32 = vld [vmem:[#allocation52_spill] sm:$0xff] }
 0x264   : > { %v2021_v53 = vpack.c.bf16 %v1913_v10, %v1911_v38  ;;  %v9005_v10 = vld [vmem:[#allocation53_spill] sm:$0xff] }
 0x265   : > { %v2022_v36 = vpack.c.bf16 %v1914_v17, %v1912_v47  ;;  %v1656_v49 = vpop.f32.mrb[104].mxu1  ;;  %v9006_v17 = vld [vmem:[#allocation54_spill] sm:$0xff] }
 0x266   : > { %v1657_v13 = vadd.f32 %v1656_v49, %v6856_v33  ;;  %v1658_v6 = vpop.f32.mrb[105].mxu1 }
 0x267   : > { %v1659_v27 = vadd.f32 %v1658_v6, %v6860_v21  ;;  %v1660_v37 = vpop.f32.mrb[106].mxu1  ;;  %5226 = vmatprep.mubr.msk.bf16.mxu0 %vm1418_vm3, %v2022_v36  ;;  %v2900_v36 = vld [vmem:[%s8542_s7 + $0xc0] sm:$0xff] }
 0x268   : > { %v1661_v56 = vadd.f32 %v1660_v37, %v6856_v33  ;;  %v1662_v14 = vpop.f32.mrb[107].mxu1  ;;  %2454 = vmatmul.mubr.bf16.gmra.mrb[100].mxu0 %v2021_v53  ;;  %v1915_v0 = vmul.f32 %v1657_v13, %v9003_v3  ;;  %v5274_v5 = vcombine.high %v2900_v36, %v2900_v36 }
 0x269   : > { %v1663_v43 = vadd.f32 %v1662_v14, %v6860_v21  ;;  %v1916_v47 = vmul.f32 %v1659_v27, %v9005_v10  ;;  %v5273_v14 = vcombine.low %v2900_v36, %v2900_v36  ;;  %v5566_v36 = vld [vmem:[#allocation7 + $0x10] ss:$8 sps:$4 sm:$0xff]  }
 0x26a   : > { %v1917_v38 = vmul.f32 %v1661_v56, %v9004_v32  ;;  %5275 = vmatprep.subr.msk.bf16.mxu1 %vm1515_vm2, %v5274_v5 }
 0x26b   : > { %v1918_v49 = vmul.f32 %v1663_v43, %v9006_v17  ;;  %v3135_v43 = vsel %vm1515_vm2, %v5273_v14, 0  ;;  %v9009_v17 = vld [vmem:[#allocation57_spill] sm:$0xff] }
 0x26c   : > { %v2023_v8 = vpack.c.bf16 %v1917_v38, %v1915_v0  ;;  %3165 = vmatpush1.bf16.msra.mxu1 %v3135_v43  ;;  %v9007_v38 = vld [vmem:[#allocation59_spill] sm:$0xff] }
 0x26d   : > { %v2024_v20 = vpack.c.bf16 %v1918_v49, %v1916_v47  ;;  %v1666_v6 = vpop.f32.mrb[108].mxu1  ;;  %v9008_v49 = vld [vmem:[#allocation56_spill] sm:$0xff] }
 0x26e   : > { %v1667_v37 = vadd.f32 %v1666_v6, %v6856_v33  ;;  %v1668_v53 = vpop.f32.mrb[109].mxu1 }
 0x26f   : > { %v1669_v13 = vadd.f32 %v1668_v53, %v6860_v21  ;;  %v1670_v3 = vpop.f32.mrb[110].mxu1  ;;  %5227 = vmatprep.mubr.msk.bf16.mxu0 %vm1418_vm3, %v2024_v20  ;;  %v5568_v53 = vld [vmem:[#allocation7 + $0x14] ss:$8 sps:$4 sm:$0xff]   ;;  %v9010_v20 = vld [vmem:[#allocation58_spill] sm:$0xff] }
 0x270   : > { %v1671_v27 = vadd.f32 %v1670_v3, %v6856_v33  ;;  %v1672_v56 = vpop.f32.mrb[111].mxu1  ;;  %2464 = vmatmul.mubr.bf16.gmra.mrb[104].mxu0 %v2023_v8  ;;  %v1919_v47 = vmul.f32 %v1667_v37, %v9007_v38  ;;  %3951 = vmatprep.subr.bf16.mxu0 %v5568_v53  ;;  %v9014_v53 = vld [vmem:[#allocation64_spill] sm:$0xff] }
 0x271   : > { %v1673_v0 = vadd.f32 %v1672_v56, %v6860_v21  ;;  %v1920_v10 = vmul.f32 %v1669_v13, %v9009_v17  ;;  %3952 = vmatpush1.bf16.msra.mxu0 %v5566_v36 }
 0x272   : > { %v1921_v6 = vmul.f32 %v1671_v27, %v9008_v49 }
 0x273   : > { %v1922_v32 = vmul.f32 %v1673_v0, %v9010_v20  ;;  %v9011_v0 = vld [vmem:[#allocation65_spill] sm:$0xff] }
 0x274   : > { %v2025_v3 = vpack.c.bf16 %v1921_v6, %v1919_v47  ;;  %v9012_v6 = vld [vmem:[#allocation61_spill] sm:$0xff] }
 0x275   : > { %v2026_v8 = vpack.c.bf16 %v1922_v32, %v1920_v10  ;;  %v1676_v59 = vpop.f32.mrb[112].mxu1  ;;  %v9013_v10 = vld [vmem:[#allocation63_spill] sm:$0xff] }
 0x276   : > { %v1677_v5 = vadd.f32 %v1676_v59, %v6856_v33  ;;  %v1678_v14 = vpop.f32.mrb[113].mxu1 }
 0x277   : > { %v1679_v56 = vadd.f32 %v1678_v14, %v6860_v21  ;;  %v1680_v43 = vpop.f32.mrb[114].mxu1  ;;  %5228 = vmatprep.mubr.msk.bf16.mxu0 %vm1418_vm3, %v2026_v8 }
 0x278   : > { %v1681_v37 = vadd.f32 %v1680_v43, %v6856_v33  ;;  %v1682_v27 = vpop.f32.mrb[115].mxu1  ;;  %2474 = vmatmul.mubr.bf16.gmra.mrb[108].mxu0 %v2025_v3  ;;  %v1923_v47 = vmul.f32 %v1677_v5, %v9011_v0  ;;  %v5569_v0 = vld [vmem:[#allocation7 + $0x20] ss:$8 sps:$4 sm:$0xff]  }
 0x279   : > { %v1683_v13 = vadd.f32 %v1682_v27, %v6860_v21  ;;  %v1924_v36 = vmul.f32 %v1679_v56, %v9013_v10  ;;  %v9015_v56 = vld [vmem:[#allocation73_spill] sm:$0xff] }
 0x27a   : > { %v1925_v32 = vmul.f32 %v1681_v37, %v9012_v6 }
 0x27b   : > { %v1926_v59 = vmul.f32 %v1683_v13, %v9014_v53  ;;  %v9016_v13 = vld [vmem:[#allocation68_spill] sm:$0xff] }
 0x27c   : > { %v2027_v20 = vpack.c.bf16 %v1925_v32, %v1923_v47  ;;  %v9017_v32 = vld [vmem:[#allocation70_spill] sm:$0xff] }
 0x27d   : > { %v2028_v17 = vpack.c.bf16 %v1926_v59, %v1924_v36  ;;  %v1686_v14 = vpop.f32.mrb[116].mxu1  ;;  %v9018_v59 = vld [vmem:[#allocation71_spill] sm:$0xff] }
 0x27e   : > { %v1687_v49 = vadd.f32 %v1686_v14, %v6856_v33  ;;  %v1688_v8 = vpop.f32.mrb[117].mxu1 }
 0x27f   : > { %v1689_v43 = vadd.f32 %v1688_v8, %v6860_v21  ;;  %v1690_v38 = vpop.f32.mrb[118].mxu1  ;;  %5229 = vmatprep.mubr.msk.bf16.mxu0 %vm1418_vm3, %v2028_v17 }
 0x280   : > { %v1691_v3 = vadd.f32 %v1690_v38, %v6856_v33  ;;  %v1692_v5 = vpop.f32.mrb[119].mxu1  ;;  %2484 = vmatmul.mubr.bf16.gmra.mrb[112].mxu0 %v2027_v20  ;;  %v1927_v27 = vmul.f32 %v1687_v49, %v9015_v56  ;;  %v5571_v38 = vld [vmem:[#allocation7 + $0x24] ss:$8 sps:$4 sm:$0xff]  }
 0x281   : > { %v1693_v37 = vadd.f32 %v1692_v5, %v6860_v21  ;;  %v1928_v36 = vmul.f32 %v1689_v43, %v9017_v32  ;;  %3953 = vmatprep.subr.bf16.mxu0 %v5571_v38  ;;  %v9019_v5 = vld [vmem:[#allocation81_spill] sm:$0xff] }
 0x282   : > { %v1929_v47 = vmul.f32 %v1691_v3, %v9016_v13  ;;  %3954 = vmatpush1.bf16.msra.mxu0 %v5569_v0 }
 0x283   : > { %v1930_v14 = vmul.f32 %v1693_v37, %v9018_v59 }
 0x284   : > { %v2029_v53 = vpack.c.bf16 %v1929_v47, %v1927_v27  ;;  %v9020_v27 = vld [vmem:[#allocation76_spill] sm:$0xff] }
 0x285   : > { %v2030_v10 = vpack.c.bf16 %v1930_v14, %v1928_v36  ;;  %v1696_v8 = vpop.f32.mrb[120].mxu1  ;;  %v9021_v36 = vld [vmem:[#allocation78_spill] sm:$0xff] }
 0x286   : > { %v1697_v6 = vadd.f32 %v1696_v8, %v6856_v33  ;;  %v1698_v17 = vpop.f32.mrb[121].mxu1  ;;  %v9022_v8 = vld [vmem:[#allocation79_spill] sm:$0xff] }
 0x287   : > { %v1699_v20 = vadd.f32 %v1698_v17, %v6860_v21  ;;  %v1700_v24 = vpop.f32.mrb[122].mxu1  ;;  %5230 = vmatprep.mubr.msk.bf16.mxu0 %vm1418_vm3, %v2030_v10 }
 0x288   : > { %v1701_v49 = vadd.f32 %v1700_v24, %v6856_v33  ;;  %v1702_v3 = vpop.f32.mrb[123].mxu1  ;;  %2494 = vmatmul.mubr.bf16.gmra.mrb[116].mxu0 %v2029_v53  ;;  %v1931_v37 = vmul.f32 %v1697_v6, %v9019_v5 }
 0x289   : > { %v1703_v43 = vadd.f32 %v1702_v3, %v6860_v21  ;;  %v1932_v14 = vmul.f32 %v1699_v20, %v9021_v36 }
 0x28a   : > { %v1933_v47 = vmul.f32 %v1701_v49, %v9020_v27 }
 0x28b   : > { %v1934_v59 = vmul.f32 %v1703_v43, %v9022_v8 }
 0x28c   : > { %v2031_v17 = vpack.c.bf16 %v1933_v47, %v1931_v37  ;;  %v9024_v37 = vld [vmem:[#allocation85_spill] sm:$0xff] }
 0x28d   : > { %v2032_v32 = vpack.c.bf16 %v1934_v59, %v1932_v14  ;;  %v1706_v13 = vpop.f32.mrb[124].mxu1  ;;  %v9023_v59 = vld [vmem:[#allocation84_spill] sm:$0xff] }
 0x28e   : > { %v1707_v10 = vadd.f32 %v1706_v13, %v6856_v33  ;;  %v1708_v24 = vpop.f32.mrb[125].mxu1 }
 0x28f   : > { %v1709_v53 = vadd.f32 %v1708_v24, %v6860_v21  ;;  %v1710_v38 = vpop.f32.mrb[126].mxu1  ;;  %5231 = vmatprep.mubr.msk.bf16.mxu0 %vm1418_vm3, %v2032_v32 }
 0x290   : > { %v1711_v0 = vadd.f32 %v1710_v38, %v6856_v33  ;;  %v1712_v6 = vpop.f32.mrb[127].mxu1  ;;  %2504 = vmatmul.mubr.bf16.gmra.mrb[120].mxu0 %v2031_v17  ;;  %v1935_v20 = vmul.f32 %v1707_v10, %v6574_v39 }
 0x291   : > { %v1713_v49 = vadd.f32 %v1712_v6, %v6860_v21  ;;  %v1936_v43 = vmul.f32 %v1709_v53, %v9023_v59 }
 0x292   : > { %v1937_v3 = vmul.f32 %v1711_v0, %v6553_v63 }
 0x293   : > { %v1938_v13 = vmul.f32 %v1713_v49, %v9024_v37  ;;  %v9025_v49 = vld [vmem:[#allocation82_spill] sm:$0xff] }
 0x294   : > { %v2033_v47 = vpack.c.bf16 %v1937_v3, %v1935_v20  ;;  %v9026_v3 = vld [vmem:[#allocation83_spill] sm:$0xff] }
 0x295   : > { %v2034_v14 = vpack.c.bf16 %v1938_v13, %v1936_v43  ;;  %v1716_v24 = vpop.f32.mrb[128].mxu1  ;;  %v5572_v13 = vld [vmem:[#allocation7 + $0x30] ss:$8 sps:$4 sm:$0xff]  }
 0x296   : > { %v1717_v8 = vadd.f32 %v1716_v24, %v6856_v33  ;;  %v1718_v32 = vpop.f32.mrb[129].mxu1  ;;  %v5574_v24 = vld [vmem:[#allocation7 + $0x34] ss:$8 sps:$4 sm:$0xff]  }
 0x297   : > { %v1719_v38 = vadd.f32 %v1718_v32, %v6860_v21  ;;  %v1720_v36 = vpop.f32.mrb[130].mxu1  ;;  %5232 = vmatprep.mubr.msk.bf16.mxu0 %vm1418_vm3, %v2034_v14  ;;  %3955 = vmatprep.subr.bf16.mxu0 %v5574_v24 }
 0x298   : > { %v1721_v17 = vadd.f32 %v1720_v36, %v6856_v33  ;;  %v1722_v10 = vpop.f32.mrb[131].mxu1  ;;  %2514 = vmatmul.mubr.bf16.gmra.mrb[124].mxu0 %v2033_v47  ;;  %v1939_v53 = vmul.f32 %v1717_v8, %v6590_v23 }
 0x299   : > { %v1723_v0 = vadd.f32 %v1722_v10, %v6860_v21  ;;  %v1940_v20 = vmul.f32 %v1719_v38, %v9025_v49  ;;  %3956 = vmatpush1.bf16.msra.mxu0 %v5572_v13 }
 0x29a   : > { %v1941_v6 = vmul.f32 %v1721_v17, %v6594_v22 }
 0x29b   : > { %v1942_v43 = vmul.f32 %v1723_v0, %v9026_v3 }
 0x29c   : > { %v2035_v32 = vpack.c.bf16 %v1941_v6, %v1939_v53 }
 0x29d   : > { %v2036_v37 = vpack.c.bf16 %v1942_v43, %v1940_v20  ;;  %v1726_v59 = vpop.f32.mrb[132].mxu1 }
 0x29e   : > { %v1727_v36 = vadd.f32 %v1726_v59, %v6856_v33  ;;  %v1728_v14 = vpop.f32.mrb[133].mxu1 }
 0x29f   : > { %v1729_v47 = vadd.f32 %v1728_v14, %v6860_v21  ;;  %v1730_v10 = vpop.f32.mrb[134].mxu1  ;;  %5233 = vmatprep.mubr.msk.bf16.mxu0 %vm1418_vm3, %v2036_v37 }
 0x2a0   : > { %v1731_v8 = vadd.f32 %v1730_v10, %v6856_v33  ;;  %v1732_v38 = vpop.f32.mrb[135].mxu1  ;;  %2524 = vmatmul.mubr.bf16.gmra.mrb[128].mxu0 %v2035_v32  ;;  %v1943_v0 = vmul.f32 %v1727_v36, %v6621_v54 }
 0x2a1   : > { %v1733_v17 = vadd.f32 %v1732_v38, %v6860_v21  ;;  %v1944_v6 = vmul.f32 %v1729_v47, %v6600_v50 }
 0x2a2   : > { %v1945_v53 = vmul.f32 %v1731_v8, %v6625_v52 }
 0x2a3   : > { %v1946_v59 = vmul.f32 %v1733_v17, %v6604_v30 }
 0x2a4   : > { %v2037_v20 = vpack.c.bf16 %v1945_v53, %v1943_v0  ;;  %v5575_v53 = vld [vmem:[#allocation7 + $0x40] ss:$8 sps:$4 sm:$0xff]  }
 0x2a5   : > { %v2038_v43 = vpack.c.bf16 %v1946_v59, %v1944_v6  ;;  %v1736_v13 = vpop.f32.mrb[136].mxu1  ;;  %v5577_v6 = vld [vmem:[#allocation7 + $0x44] ss:$8 sps:$4 sm:$0xff]  }
 0x2a6   : > { %v1737_v24 = vadd.f32 %v1736_v13, %v6856_v33  ;;  %v1738_v37 = vpop.f32.mrb[137].mxu1  ;;  %3957 = vmatprep.subr.bf16.mxu0 %v5577_v6 }
 0x2a7   : > { %v1739_v14 = vadd.f32 %v1738_v37, %v6860_v21  ;;  %v1740_v10 = vpop.f32.mrb[138].mxu1  ;;  %5234 = vmatprep.mubr.msk.bf16.mxu0 %vm1418_vm3, %v2038_v43  ;;  %3958 = vmatpush1.bf16.msra.mxu0 %v5575_v53 }
 0x2a8   : > { %v1741_v32 = vadd.f32 %v1740_v10, %v6856_v33  ;;  %v1742_v36 = vpop.f32.mrb[139].mxu1  ;;  %2534 = vmatmul.mubr.bf16.gmra.mrb[132].mxu0 %v2037_v20  ;;  %v1947_v47 = vmul.f32 %v1737_v24, %v6642_v44 }
 0x2a9   : > { %v1743_v8 = vadd.f32 %v1742_v36, %v6860_v21  ;;  %v1948_v17 = vmul.f32 %v1739_v14, %v6629_v35 }
 0x2aa   : > { %v1949_v38 = vmul.f32 %v1741_v32, %v6646_v51 }
 0x2ab   : > { %v1950_v0 = vmul.f32 %v1743_v8, %v6633_v28 }
 0x2ac   : > { %v2039_v59 = vpack.c.bf16 %v1949_v38, %v1947_v47 }
 0x2ad   : > { %v2040_v13 = vpack.c.bf16 %v1950_v0, %v1948_v17  ;;  %v1746_v37 = vpop.f32.mrb[140].mxu1 }
 0x2ae   : > { %v1747_v43 = vadd.f32 %v1746_v37, %v6856_v33  ;;  %v1748_v10 = vpop.f32.mrb[141].mxu1 }
 0x2af   : > { %v1749_v20 = vadd.f32 %v1748_v10, %v6860_v21  ;;  %v1750_v36 = vpop.f32.mrb[142].mxu1  ;;  %5235 = vmatprep.mubr.msk.bf16.mxu0 %vm1418_vm3, %v2040_v13 }
 0x2b0   : > { %v1751_v24 = vadd.f32 %v1750_v36, %v6856_v33  ;;  %v1752_v14 = vpop.f32.mrb[143].mxu1  ;;  %2544 = vmatmul.mubr.bf16.gmra.mrb[136].mxu0 %v2039_v59  ;;  %v1951_v8 = vmul.f32 %v1747_v43, %v6669_v29 }
 0x2b1   : > { %v1753_v32 = vadd.f32 %v1752_v14, %v6860_v21  ;;  %v1952_v38 = vmul.f32 %v1749_v20, %v6650_v62 }
 0x2b2   : > { %v1953_v47 = vmul.f32 %v1751_v24, %v6673_v46 }
 0x2b3   : > { %v1954_v17 = vmul.f32 %v1753_v32, %v6654_v1 }
 0x2b4   : > { %v2041_v0 = vpack.c.bf16 %v1953_v47, %v1951_v8 }
 0x2b5   : > { %v2042_v53 = vpack.c.bf16 %v1954_v17, %v1952_v38  ;;  %v1756_v6 = vpop.f32.mrb[144].mxu1 }
 0x2b6   : > { %v1757_v37 = vadd.f32 %v1756_v6, %v6856_v33  ;;  %v1758_v13 = vpop.f32.mrb[145].mxu1 }
 0x2b7   : > { %v1759_v10 = vadd.f32 %v1758_v13, %v6860_v21  ;;  %v1760_v36 = vpop.f32.mrb[146].mxu1  ;;  %5236 = vmatprep.mubr.msk.bf16.mxu0 %vm1418_vm3, %v2042_v53 }
 0x2b8   : > { %v1761_v59 = vadd.f32 %v1760_v36, %v6856_v33  ;;  %v1762_v43 = vpop.f32.mrb[147].mxu1  ;;  %2554 = vmatmul.mubr.bf16.gmra.mrb[140].mxu0 %v2041_v0  ;;  %v1955_v20 = vmul.f32 %v1757_v37, %v6690_v12 }
 0x2b9   : > { %v1763_v24 = vadd.f32 %v1762_v43, %v6860_v21  ;;  %v1956_v32 = vmul.f32 %v1759_v10, %v6677_v60 }
 0x2ba   : > { %v1957_v14 = vmul.f32 %v1761_v59, %v6694_v25 }
 0x2bb   : > { %v1958_v8 = vmul.f32 %v1763_v24, %v6681_v19 }
 0x2bc   : > { %v2043_v47 = vpack.c.bf16 %v1957_v14, %v1955_v20  ;;  %v5578_v14 = vld [vmem:[#allocation7 + $0x50] ss:$8 sps:$4 sm:$0xff]  }
 0x2bd   : > { %v2044_v38 = vpack.c.bf16 %v1958_v8, %v1956_v32  ;;  %v1766_v17 = vpop.f32.mrb[148].mxu1  ;;  %v5580_v32 = vld [vmem:[#allocation7 + $0x54] ss:$8 sps:$4 sm:$0xff]  }
 0x2be   : > { %v1767_v6 = vadd.f32 %v1766_v17, %v6856_v33  ;;  %v1768_v53 = vpop.f32.mrb[149].mxu1  ;;  %3959 = vmatprep.subr.bf16.mxu0 %v5580_v32 }
 0x2bf   : > { %v1769_v13 = vadd.f32 %v1768_v53, %v6860_v21  ;;  %v1770_v36 = vpop.f32.mrb[150].mxu1  ;;  %5237 = vmatprep.mubr.msk.bf16.mxu0 %vm1418_vm3, %v2044_v38  ;;  %3960 = vmatpush1.bf16.msra.mxu0 %v5578_v14 }
 0x2c0   : > { %v1771_v0 = vadd.f32 %v1770_v36, %v6856_v33  ;;  %v1772_v37 = vpop.f32.mrb[151].mxu1  ;;  %2564 = vmatmul.mubr.bf16.gmra.mrb[144].mxu0 %v2043_v47  ;;  %v1959_v10 = vmul.f32 %v1767_v6, %v6711_v42  ;;  %v5589_v42 = vld [vmem:[#allocation7 + $0x84] ss:$8 sps:$4 sm:$0xff]  }
 0x2c1   : > { %v1773_v59 = vadd.f32 %v1772_v37, %v6860_v21  ;;  %v1960_v24 = vmul.f32 %v1769_v13, %v6698_v45 }
 0x2c2   : > { %v1961_v43 = vmul.f32 %v1771_v0, %v6715_v57 }
 0x2c3   : > { %v1962_v20 = vmul.f32 %v1773_v59, %v6702_v61  ;;  %v9050_v61 = vld [vmem:[#allocation69_spill] sm:$0xff] }
 0x2c4   : > { %v2045_v8 = vpack.c.bf16 %v1961_v43, %v1959_v10 }
 0x2c5   : > { %v2046_v17 = vpack.c.bf16 %v1962_v20, %v1960_v24  ;;  %v1776_v53 = vpop.f32.mrb[152].mxu1 }
 0x2c6   : > { %v1777_v38 = vadd.f32 %v1776_v53, %v6856_v33  ;;  %v1778_v36 = vpop.f32.mrb[153].mxu1 }
 0x2c7   : > { %v1779_v47 = vadd.f32 %v1778_v36, %v6860_v21  ;;  %v1780_v37 = vpop.f32.mrb[154].mxu1  ;;  %5238 = vmatprep.mubr.msk.bf16.mxu0 %vm1418_vm3, %v2046_v17 }
 0x2c8   : > { %v1781_v6 = vadd.f32 %v1780_v37, %v6856_v33  ;;  %v1782_v13 = vpop.f32.mrb[155].mxu1  ;;  %2574 = vmatmul.mubr.bf16.gmra.mrb[148].mxu0 %v2045_v8  ;;  %v1963_v59 = vmul.f32 %v1777_v38, %v6738_v34 }
 0x2c9   : > { %v1783_v0 = vadd.f32 %v1782_v13, %v6860_v21  ;;  %v1964_v43 = vmul.f32 %v1779_v47, %v6719_v18 }
 0x2ca   : > { %v1965_v10 = vmul.f32 %v1781_v6, %v6742_v16 }
 0x2cb   : > { %v1966_v24 = vmul.f32 %v1783_v0, %v6723_v48 }
 0x2cc   : > { %v2047_v20 = vpack.c.bf16 %v1965_v10, %v1963_v59  ;;  %v9027_v59 = vld [vmem:[#allocation111_spill] sm:$0xff] }
 0x2cd   : > { %v2048_v14 = vpack.c.bf16 %v1966_v24, %v1964_v43  ;;  %v1786_v32 = vpop.f32.mrb[156].mxu1  ;;  %v5581_v43 = vld [vmem:[#allocation7 + $0x60] ss:$8 sps:$4 sm:$0xff]   ;;  %v5583_v24 = vld [vmem:[#allocation7 + $0x64] ss:$8 sps:$4 sm:$0xff]  }
 0x2ce   : > { %v1787_v53 = vadd.f32 %v1786_v32, %v6856_v33  ;;  %v1788_v17 = vpop.f32.mrb[157].mxu1  ;;  %3961 = vmatprep.subr.bf16.mxu0 %v5583_v24 }
 0x2cf   : > { %v1789_v36 = vadd.f32 %v1788_v17, %v6860_v21  ;;  %v1790_v37 = vpop.f32.mrb[158].mxu1  ;;  %5239 = vmatprep.mubr.msk.bf16.mxu0 %vm1418_vm3, %v2048_v14  ;;  %3962 = vmatpush1.bf16.msra.mxu0 %v5581_v43 }
 0x2d0   : > { %v1791_v8 = vadd.f32 %v1790_v37, %v6856_v33  ;;  %v1792_v38 = vpop.f32.mrb[159].mxu1  ;;  %2584 = vmatmul.mubr.bf16.gmra.mrb[152].mxu0 %v2047_v20  ;;  %v1967_v47 = vmul.f32 %v1787_v53, %v6759_v40 }
 0x2d1   : > { %v1793_v6 = vadd.f32 %v1792_v38, %v6860_v21  ;;  %v1968_v0 = vmul.f32 %v1789_v36, %v6746_v15 }
 0x2d2   : > { %v1969_v13 = vmul.f32 %v1791_v8, %v6763_v26 }
 0x2d3   : > { %v1970_v10 = vmul.f32 %v1793_v6, %v9027_v59  ;;  %v9028_v6 = vld [vmem:[#allocation116_spill] sm:$0xff] }
 0x2d4   : > { %v2049_v32 = vpack.c.bf16 %v1969_v13, %v1967_v47  ;;  %v9029_v13 = vld [vmem:[#allocation117_spill] sm:$0xff] }
 0x2d5   : > { %v2050_v17 = vpack.c.bf16 %v1970_v10, %v1968_v0  ;;  %v1796_v48 = vpop.f32.mrb[160].mxu1  ;;  %v9030_v10 = vld [vmem:[#allocation114_spill] sm:$0xff] }
 0x2d6   : > { %v1797_v14 = vadd.f32 %v1796_v48, %v6856_v33  ;;  %v1798_v37 = vpop.f32.mrb[161].mxu1  ;;  %v9031_v48 = vld [vmem:[#allocation115_spill] sm:$0xff] }
 0x2d7   : > { %v1799_v20 = vadd.f32 %v1798_v37, %v6860_v21  ;;  %v1800_v38 = vpop.f32.mrb[162].mxu1  ;;  %5240 = vmatprep.mubr.msk.bf16.mxu0 %vm1418_vm3, %v2050_v17 }
 0x2d8   : > { %v1801_v53 = vadd.f32 %v1800_v38, %v6856_v33  ;;  %v1802_v36 = vpop.f32.mrb[163].mxu1  ;;  %2594 = vmatmul.mubr.bf16.gmra.mrb[156].mxu0 %v2049_v32  ;;  %v1971_v47 = vmul.f32 %v1797_v14, %v9028_v6 }
 0x2d9   : > { %v1803_v8 = vadd.f32 %v1802_v36, %v6860_v21  ;;  %v1972_v24 = vmul.f32 %v1799_v20, %v9030_v10  ;;  %v9032_v20 = vld [vmem:[#allocation120_spill] sm:$0xff] }
 0x2da   : > { %v1973_v0 = vmul.f32 %v1801_v53, %v9029_v13 }
 0x2db   : > { %v1974_v59 = vmul.f32 %v1803_v8, %v9031_v48  ;;  %v9033_v8 = vld [vmem:[#allocation121_spill] sm:$0xff] }
 0x2dc   : > { %v2051_v43 = vpack.c.bf16 %v1973_v0, %v1971_v47 }
 0x2dd   : > { %v2052_v15 = vpack.c.bf16 %v1974_v59, %v1972_v24  ;;  %v1806_v37 = vpop.f32.mrb[164].mxu1  ;;  %v9034_v59 = vld [vmem:[#allocation118_spill] sm:$0xff]  ;;  %v9035_v24 = vld [vmem:[#allocation119_spill] sm:$0xff] }
 0x2de   : > { %v1807_v26 = vadd.f32 %v1806_v37, %v6856_v33  ;;  %v1808_v17 = vpop.f32.mrb[165].mxu1 }
 0x2df   : > { %v1809_v38 = vadd.f32 %v1808_v17, %v6860_v21  ;;  %v1810_v40 = vpop.f32.mrb[166].mxu1  ;;  %5241 = vmatprep.mubr.msk.bf16.mxu0 %vm1418_vm3, %v2052_v15 }
 0x2e0   : > { %v1811_v32 = vadd.f32 %v1810_v40, %v6856_v33  ;;  %v1812_v14 = vpop.f32.mrb[167].mxu1  ;;  %2604 = vmatmul.mubr.bf16.gmra.mrb[160].mxu0 %v2051_v43  ;;  %v1975_v36 = vmul.f32 %v1807_v26, %v9032_v20 }
 0x2e1   : > { %v1813_v53 = vadd.f32 %v1812_v14, %v6860_v21  ;;  %v1976_v0 = vmul.f32 %v1809_v38, %v9034_v59  ;;  %v5586_v14 = vld [vmem:[#allocation7 + $0x74] ss:$8 sps:$4 sm:$0xff]  }
 0x2e2   : > { %v1977_v47 = vmul.f32 %v1811_v32, %v9033_v8  ;;  %v5584_v32 = vld [vmem:[#allocation7 + $0x70] ss:$8 sps:$4 sm:$0xff]   ;;  %3963 = vmatprep.subr.bf16.mxu0 %v5586_v14 }
 0x2e3   : > { %v1978_v37 = vmul.f32 %v1813_v53, %v9035_v24  ;;  %v9036_v53 = vld [vmem:[#allocation124_spill] sm:$0xff]  ;;  %v9039_v24 = vld [vmem:[#allocation123_spill] sm:$0xff]  ;;  %3964 = vmatpush1.bf16.msra.mxu0 %v5584_v32 }
 0x2e4   : > { %v2053_v48 = vpack.c.bf16 %v1977_v47, %v1975_v36  ;;  %v9037_v47 = vld [vmem:[#allocation125_spill] sm:$0xff]  ;;  %v9040_v32 = vld [vmem:[#allocation11_spill] sm:$0xff]  ;;  %3965 = vmatprep.subr.bf16.mxu0 %v5589_v42 }
 0x2e5   : > { %v2054_v10 = vpack.c.bf16 %v1978_v37, %v1976_v0  ;;  %v1816_v17 = vpop.f32.mrb[168].mxu1  ;;  %v9038_v37 = vld [vmem:[#allocation122_spill] sm:$0xff] }
 0x2e6   : > { %v1817_v13 = vadd.f32 %v1816_v17, %v6856_v33  ;;  %v1818_v15 = vpop.f32.mrb[169].mxu1 }
 0x2e7   : > { %v1819_v40 = vadd.f32 %v1818_v15, %v6860_v21  ;;  %v1820_v6 = vpop.f32.mrb[170].mxu1  ;;  %5242 = vmatprep.mubr.msk.bf16.mxu0 %vm1418_vm3, %v2054_v10 }
 0x2e8   : > { %v1821_v43 = vadd.f32 %v1820_v6, %v6856_v33  ;;  %v1822_v26 = vpop.f32.mrb[171].mxu1  ;;  %2614 = vmatmul.mubr.bf16.gmra.mrb[164].mxu0 %v2053_v48  ;;  %v1979_v36 = vmul.f32 %v1817_v13, %v9036_v53  ;;  %v2092_v6 = vld [vmem:[%s8541_s6] sm:$0x3] }
 0x2e9   : > { %v1823_v38 = vadd.f32 %v1822_v26, %v6860_v21  ;;  %v1980_v17 = vmul.f32 %v1819_v40, %v9038_v37  ;;  %v7235_v14 = vrot.slane %v2092_v6, %v9040_v32 }
 0x2ea   : > { %v1981_v0 = vmul.f32 %v1821_v43, %v9037_v47  ;;  %v9045_v47 = vld [vmem:[#allocation127_spill] sm:$0xff] }
 0x2eb   : > { %v1982_v15 = vmul.f32 %v1823_v38, %v9039_v24 }
 0x2ec   : > { %v2055_v59 = vpack.c.bf16 %v1981_v0, %v1979_v36  ;;  %v9041_v36 = vld [vmem:[#allocation10_spill] sm:$0xff] }
 0x2ed   : > { %v2056_v10 = vpack.c.bf16 %v1982_v15, %v1980_v17  ;;  %v1826_v8 = vpop.f32.mrb[172].mxu1  ;;  %v7239_v0 = vrot.slane %v2092_v6, %v9041_v36  ;;  %v9042_v17 = vld [vmem:[#allocation60_spill] sm:$0xff]  ;;  %v9043_v15 = vld [vmem:[#allocation62_spill] sm:$0xff] }
 0x2ee   : > { %v1827_v48 = vadd.f32 %v1826_v8, %v6856_v33  ;;  %v1828_v26 = vpop.f32.mrb[173].mxu1 }
 0x2ef   : > { %v1829_v13 = vadd.f32 %v1828_v26, %v6860_v21  ;;  %v1830_v53 = vpop.f32.mrb[174].mxu1  ;;  %5243 = vmatprep.mubr.msk.bf16.mxu0 %vm1418_vm3, %v2056_v10  ;;  %v9044_v26 = vld [vmem:[#allocation126_spill] sm:$0xff] }
 0x2f0   : > { %v1831_v40 = vadd.f32 %v1830_v53, %v6856_v33  ;;  %v1832_v43 = vpop.f32.mrb[175].mxu1  ;;  %2624 = vmatmul.mubr.bf16.gmra.mrb[168].mxu0 %v2055_v59  ;;  %v1983_v8 = vmul.f32 %v1827_v48, %v9042_v17 }
 0x2f1   : > { %v1833_v38 = vadd.f32 %v1832_v43, %v6860_v21  ;;  %v1984_v37 = vmul.f32 %v1829_v13, %v9044_v26 }
 0x2f2   : > { %v1985_v24 = vmul.f32 %v1831_v40, %v9043_v15 }
 0x2f3   : > { %v1986_v10 = vmul.f32 %v1833_v38, %v9045_v47  ;;  %v2365_v20 = vpop.f32.mrb[64].mxu0 }
 0x2f4   : > { %v2366_v53 = vadd.f32 %v2365_v20, %v7235_v14  ;;  %v2367_v59 = vpop.f32.mrb[65].mxu0  ;;  %v2057_v18 = vpack.c.bf16 %v1985_v24, %v1983_v8  ;;  %v9046_v20 = vld [vmem:[#allocation15_spill] sm:$0xff] }
 0x2f5   : > { %v2058_v32 = vpack.c.bf16 %v1986_v10, %v1984_v37  ;;  %v2368_v16 = vadd.f32 %v2367_v59, %v7239_v0  ;;  %v1836_v43 = vpop.f32.mrb[176].mxu1  ;;  %v2369_v34 = vpop.f32.mrb[66].mxu0  ;;  %v9047_v37 = vld [vmem:[#allocation12_spill] sm:$0xff] }
 0x2f6   : > { %v1837_v6 = vadd.f32 %v1836_v43, %v6856_v33  ;;  %v2370_v48 = vadd.f32 %v2369_v34, %v7235_v14  ;;  %v1838_v17 = vpop.f32.mrb[177].mxu1  ;;  %v2371_v40 = vpop.f32.mrb[67].mxu0  ;;  %v2684_v24 = vmul.f32 %v2366_v53, %v9046_v20  ;;  %v9048_v43 = vld [vmem:[#allocation13_spill] sm:$0xff]  ;;  %v9049_v34 = vld [vmem:[#allocation14_spill] sm:$0xff]  ;;  %v9052_v20 = vld [vmem:[#allocation72_spill] sm:$0xff] }
 0x2f7   : > { %v1839_v13 = vadd.f32 %v1838_v17, %v6860_v21  ;;  %v2372_v38 = vadd.f32 %v2371_v40, %v7239_v0  ;;  %v1840_v47 = vpop.f32.mrb[178].mxu1  ;;  %5244 = vmatprep.mubr.msk.bf16.mxu0 %vm1418_vm3, %v2058_v32  ;;  %v2685_v26 = vmul.f32 %v2368_v16, %v9048_v43  ;;  %v9051_v32 = vld [vmem:[#allocation67_spill] sm:$0xff] }
 0x2f8   : > { %v2686_v8 = vmul.f32 %v2370_v48, %v9047_v37  ;;  %v1841_v10 = vadd.f32 %v1840_v47, %v6856_v33  ;;  %v1842_v59 = vpop.f32.mrb[179].mxu1  ;;  %2634 = vmatmul.mubr.bf16.gmra.mrb[172].mxu0 %v2057_v18  ;;  %v1987_v17 = vmul.f32 %v1837_v6, %v6893_v2  ;;  %v5587_v47 = vld [vmem:[#allocation7 + $0x80] ss:$8 sps:$4 sm:$0xff]  }
 0x2f9   : > { %v2687_v15 = vmul.f32 %v2372_v38, %v9049_v34  ;;  %v1843_v36 = vadd.f32 %v1842_v59, %v6860_v21  ;;  %v1988_v57 = vmul.f32 %v1839_v13, %v9051_v32  ;;  %3966 = vmatpush1.bf16.msra.mxu0 %v5587_v47 }
 0x2fa   : > { %v2812_v40 = vpack.c.bf16 %v2686_v8, %v2684_v24  ;;  %v1989_v45 = vmul.f32 %v1841_v10, %v9050_v61  ;;  %v9053_v8 = vld [vmem:[#allocation16_spill] sm:$0xff] }
 0x2fb   : > { %v2813_v53 = vpack.c.bf16 %v2687_v15, %v2685_v26  ;;  %v1990_v48 = vmul.f32 %v1843_v36, %v9052_v20  ;;  %v2375_v37 = vpop.f32.mrb[68].mxu0 }
 0x2fc   : > { %v2376_v18 = vadd.f32 %v2375_v37, %v7235_v14  ;;  %v2377_v16 = vpop.f32.mrb[69].mxu0  ;;  %v2059_v43 = vpack.c.bf16 %v1989_v45, %v1987_v17  ;;  %v9054_v17 = vld [vmem:[#allocation17_spill] sm:$0xff] }
 0x2fd   : > { %v2060_v38 = vpack.c.bf16 %v1990_v48, %v1988_v57  ;;  %v2378_v59 = vadd.f32 %v2377_v16, %v7239_v0  ;;  %v1846_v34 = vpop.f32.mrb[180].mxu1  ;;  %v2379_v6 = vpop.f32.mrb[70].mxu0  ;;  %5276 = vmatprep.mubr.msk.bf16.mxu1 %vm1418_vm3, %v2813_v53  ;;  %v9055_v48 = vld [vmem:[#allocation18_spill] sm:$0xff] }
 0x2fe   : > { %v1847_v13 = vadd.f32 %v1846_v34, %v6856_v33  ;;  %v2380_v15 = vadd.f32 %v2379_v6, %v7235_v14  ;;  %v1848_v36 = vpop.f32.mrb[181].mxu1  ;;  %v2381_v26 = vpop.f32.mrb[71].mxu0  ;;  %3173 = vmatmul.mubr.bf16.vlgmr.msra.gmra.mrb[192].mxu1 %v2812_v40  ;;  %v2688_v37 = vmul.f32 %v2376_v18, %v8955_v31  ;;  %v9057_v31 = vld [vmem:[#allocation80_spill] sm:$0xff] }
 0x2ff   : > { %v1849_v24 = vadd.f32 %v1848_v36, %v6860_v21  ;;  %v2382_v45 = vadd.f32 %v2381_v26, %v7239_v0  ;;  %v1850_v57 = vpop.f32.mrb[182].mxu1  ;;  %5245 = vmatprep.mubr.msk.bf16.mxu0 %vm1418_vm3, %v2060_v38  ;;  %v2689_v53 = vmul.f32 %v2378_v59, %v9054_v17  ;;  %v9056_v38 = vld [vmem:[#allocation75_spill] sm:$0xff] }
 0x300   : > { %v2690_v10 = vmul.f32 %v2380_v15, %v9053_v8  ;;  %v1851_v42 = vadd.f32 %v1850_v57, %v6856_v33  ;;  %v1852_v34 = vpop.f32.mrb[183].mxu1  ;;  %2644 = vmatmul.mubr.bf16.gmra.mrb[176].mxu0 %v2059_v43  ;;  %v1991_v16 = vmul.f32 %v1847_v13, %v6929_v41 }
 0x301   : > { %v2691_v40 = vmul.f32 %v2382_v45, %v9055_v48  ;;  %v1853_v47 = vadd.f32 %v1852_v34, %v6860_v21  ;;  %v1992_v26 = vmul.f32 %v1849_v24, %v9056_v38 }
 0x302   : > { %v1993_v6 = vmul.f32 %v1851_v42, %v6933_v58  ;;  %v2814_v36 = vpack.c.bf16 %v2690_v10, %v2688_v37 }
 0x303   : > { %v2815_v18 = vpack.c.bf16 %v2691_v40, %v2689_v53  ;;  %v1994_v15 = vmul.f32 %v1853_v47, %v9057_v31  ;;  %v2385_v8 = vpop.f32.mrb[72].mxu0 }
 0x304   : > { %v2386_v57 = vadd.f32 %v2385_v8, %v7235_v14  ;;  %v2387_v43 = vpop.f32.mrb[73].mxu0  ;;  %v2061_v20 = vpack.c.bf16 %v1993_v6, %v1991_v16 }
 0x305   : > { %v2062_v59 = vpack.c.bf16 %v1994_v15, %v1992_v26  ;;  %v2388_v45 = vadd.f32 %v2387_v43, %v7239_v0  ;;  %v1856_v48 = vpop.f32.mrb[184].mxu1  ;;  %v2389_v34 = vpop.f32.mrb[74].mxu0  ;;  %5277 = vmatprep.mubr.msk.bf16.mxu1 %vm1418_vm3, %v2815_v18  ;;  %v9058_v18 = vld [vmem:[#allocation21_spill] sm:$0xff]  ;;  %v9059_v43 = vld [vmem:[#allocation130_spill] sm:$0xff] }
 0x306   : > { %v1857_v13 = vadd.f32 %v1856_v48, %v6856_v33  ;;  %v2390_v37 = vadd.f32 %v2389_v34, %v7235_v14  ;;  %v1858_v24 = vpop.f32.mrb[185].mxu1  ;;  %v2391_v10 = vpop.f32.mrb[75].mxu0  ;;  %3183 = vmatmul.mubr.bf16.gmra.mrb[196].mxu1 %v2814_v36  ;;  %v2692_v40 = vmul.f32 %v2386_v57, %v8965_v7  ;;  %v9061_v7 = vld [vmem:[#allocation129_spill] sm:$0xff] }
 0x307   : > { %v1859_v42 = vadd.f32 %v1858_v24, %v6860_v21  ;;  %v2392_v8 = vadd.f32 %v2391_v10, %v7239_v0  ;;  %v1860_v53 = vpop.f32.mrb[186].mxu1  ;;  %5246 = vmatprep.mubr.msk.bf16.mxu0 %vm1418_vm3, %v2062_v59  ;;  %v2693_v48 = vmul.f32 %v2388_v45, %v8967_v55  ;;  %v9060_v59 = vld [vmem:[#allocation128_spill] sm:$0xff] }
 0x308   : > { %v2694_v47 = vmul.f32 %v2390_v37, %v8966_v4  ;;  %v1861_v16 = vadd.f32 %v1860_v53, %v6856_v33  ;;  %v1862_v6 = vpop.f32.mrb[187].mxu1  ;;  %2654 = vmatmul.mubr.bf16.gmra.mrb[180].mxu0 %v2061_v20  ;;  %v1995_v15 = vmul.f32 %v1857_v13, %v9058_v18  ;;  %v5592_v18 = vld [vmem:[#allocation7 + $0x94] ss:$8 sps:$4 sm:$0xff]  }
 0x309   : > { %v2695_v26 = vmul.f32 %v2392_v8, %v8968_v9  ;;  %v1863_v36 = vadd.f32 %v1862_v6, %v6860_v21  ;;  %v1996_v10 = vmul.f32 %v1859_v42, %v9060_v59  ;;  %3967 = vmatprep.subr.bf16.mxu0 %v5592_v18  ;;  %v9072_v18 = vld [vmem:[#allocation29_spill] sm:$0xff] }
 0x30a   : > { %v1997_v34 = vmul.f32 %v1861_v16, %v9059_v43  ;;  %v2816_v24 = vpack.c.bf16 %v2694_v47, %v2692_v40 }
 0x30b   : > { %v2817_v57 = vpack.c.bf16 %v2695_v26, %v2693_v48  ;;  %v1998_v37 = vmul.f32 %v1863_v36, %v9061_v7  ;;  %v2395_v4 = vpop.f32.mrb[76].mxu0  ;;  %v9062_v26 = vld [vmem:[#allocation27_spill] sm:$0xff] }
 0x30c   : > { %v2396_v53 = vadd.f32 %v2395_v4, %v7235_v14  ;;  %v2397_v20 = vpop.f32.mrb[77].mxu0  ;;  %v2063_v31 = vpack.c.bf16 %v1997_v34, %v1995_v15  ;;  %v9063_v15 = vld [vmem:[#allocation24_spill] sm:$0xff] }
 0x30d   : > { %v2064_v45 = vpack.c.bf16 %v1998_v37, %v1996_v10  ;;  %v2398_v8 = vadd.f32 %v2397_v20, %v7239_v0  ;;  %v1866_v9 = vpop.f32.mrb[188].mxu1  ;;  %v2399_v6 = vpop.f32.mrb[78].mxu0  ;;  %5278 = vmatprep.mubr.msk.bf16.mxu1 %vm1418_vm3, %v2817_v57  ;;  %v9065_v20 = vld [vmem:[#allocation26_spill] sm:$0xff] }
 0x30e   : > { %v1867_v13 = vadd.f32 %v1866_v9, %v6856_v33  ;;  %v2400_v40 = vadd.f32 %v2399_v6, %v7235_v14  ;;  %v1868_v42 = vpop.f32.mrb[189].mxu1  ;;  %v2401_v47 = vpop.f32.mrb[79].mxu0  ;;  %3193 = vmatmul.mubr.bf16.gmra.mrb[200].mxu1 %v2816_v24  ;;  %v2696_v36 = vmul.f32 %v2396_v53, %v9062_v26  ;;  %v9064_v9 = vld [vmem:[#allocation25_spill] sm:$0xff]  ;;  %v9068_v53 = vld [vmem:[#allocation131_spill] sm:$0xff] }
 0x30f   : > { %v1869_v16 = vadd.f32 %v1868_v42, %v6860_v21  ;;  %v2402_v4 = vadd.f32 %v2401_v47, %v7239_v0  ;;  %v1870_v48 = vpop.f32.mrb[190].mxu1  ;;  %5247 = vmatprep.mubr.msk.bf16.mxu0 %vm1418_vm3, %v2064_v45  ;;  %v2697_v37 = vmul.f32 %v2398_v8, %v9064_v9  ;;  %v9066_v42 = vld [vmem:[#allocation133_spill] sm:$0xff]  ;;  %v9067_v47 = vld [vmem:[#allocation134_spill] sm:$0xff]  ;;  %v5590_v45 = vld [vmem:[#allocation7 + $0x90] ss:$8 sps:$4 sm:$0xff]  }
 0x310   : > { %v2698_v34 = vmul.f32 %v2400_v40, %v9063_v15  ;;  %v1871_v10 = vadd.f32 %v1870_v48, %v6856_v33  ;;  %v1872_v57 = vpop.f32.mrb[191].mxu1  ;;  %2664 = vmatmul.mubr.bf16.gmra.mrb[184].mxu0 %v2063_v31  ;;  %v1999_v7 = vmul.f32 %v1867_v13, %v9066_v42  ;;  %v9069_v15 = vld [vmem:[#allocation132_spill] sm:$0xff] }
 0x311   : > { %v2699_v6 = vmul.f32 %v2402_v4, %v9065_v20  ;;  %v1873_v24 = vadd.f32 %v1872_v57, %v6860_v21  ;;  %v2000_v26 = vmul.f32 %v1869_v16, %v9068_v53  ;;  %3968 = vmatpush1.bf16.msra.mxu0 %v5590_v45 }
 0x312   : > { %v2001_v59 = vmul.f32 %v1871_v10, %v9067_v47  ;;  %v2818_v43 = vpack.c.bf16 %v2698_v34, %v2696_v36  ;;  %v9070_v10 = vld [vmem:[#allocation31_spill] sm:$0xff] }
 0x313   : > { %v2819_v40 = vpack.c.bf16 %v2699_v6, %v2697_v37  ;;  %v2002_v33 = vmul.f32 %v1873_v24, %v9069_v15  ;;  %v2405_v48 = vpop.f32.mrb[80].mxu0  ;;  %v9071_v37 = vld [vmem:[#allocation28_spill] sm:$0xff] }
 0x314   : > { %v2406_v31 = vadd.f32 %v2405_v48, %v7235_v14  ;;  %v2407_v8 = vpop.f32.mrb[81].mxu0  ;;  %v2065_v9 = vpack.c.bf16 %v2001_v59, %v1999_v7 }
 0x315   : > { %v2066_v4 = vpack.c.bf16 %v2002_v33, %v2000_v26  ;;  %v2408_v21 = vadd.f32 %v2407_v8, %v7239_v0  ;;  %v2409_v13 = vpop.f32.mrb[82].mxu0  ;;  %5279 = vmatprep.mubr.msk.bf16.mxu1 %vm1418_vm3, %v2819_v40  ;;  %v9073_v26 = vld [vmem:[#allocation30_spill] sm:$0xff] }
 0x316   : > { %v2410_v36 = vadd.f32 %v2409_v13, %v7235_v14  ;;  %v2411_v34 = vpop.f32.mrb[83].mxu0  ;;  %3203 = vmatmul.mubr.bf16.gmra.mrb[204].mxu1 %v2818_v43  ;;  %v2700_v57 = vmul.f32 %v2406_v31, %v9070_v10 }
 0x317   : > { %v2412_v16 = vadd.f32 %v2411_v34, %v7239_v0  ;;  %5248 = vmatprep.mubr.msk.bf16.mxu0 %vm1418_vm3, %v2066_v4  ;;  %v2701_v59 = vmul.f32 %v2408_v21, %v9072_v18  ;;  %v9074_v21 = vld [vmem:[#allocation35_spill] sm:$0xff]  ;;  %v5595_v18 = vld [vmem:[#allocation7 + $0xa4] ss:$8 sps:$4 sm:$0xff]  }
 0x318   : > { %v2702_v7 = vmul.f32 %v2410_v36, %v9071_v37  ;;  %2674 = vmatmul.mubr.bf16.gmra.mrb[188].mxu0 %v2065_v9  ;;  %v9075_v36 = vld [vmem:[#allocation32_spill] sm:$0xff]  ;;  %3969 = vmatprep.subr.bf16.mxu0 %v5595_v18 }
 0x319   : > { %v2703_v6 = vmul.f32 %v2412_v16, %v9073_v26  ;;  %v9076_v16 = vld [vmem:[#allocation33_spill] sm:$0xff] }
 0x31a   : > { %v2820_v24 = vpack.c.bf16 %v2702_v7, %v2700_v57  ;;  %v9077_v7 = vld [vmem:[#allocation34_spill] sm:$0xff] }
 0x31b   : > { %v2821_v40 = vpack.c.bf16 %v2703_v6, %v2701_v59  ;;  %v2415_v45 = vpop.f32.mrb[84].mxu0  ;;  %v5593_v26 = vld [vmem:[#allocation7 + $0xa0] ss:$8 sps:$4 sm:$0xff]  }
 0x31c   : > { %v2416_v33 = vadd.f32 %v2415_v45, %v7235_v14  ;;  %v2417_v48 = vpop.f32.mrb[85].mxu0  ;;  %3970 = vmatpush1.bf16.msra.mxu0 %v5593_v26 }
 0x31d   : > { %v2418_v43 = vadd.f32 %v2417_v48, %v7239_v0  ;;  %v2419_v8 = vpop.f32.mrb[86].mxu0  ;;  %5280 = vmatprep.mubr.msk.bf16.mxu1 %vm1418_vm3, %v2821_v40 }
 0x31e   : > { %v2420_v31 = vadd.f32 %v2419_v8, %v7235_v14  ;;  %v2421_v4 = vpop.f32.mrb[87].mxu0  ;;  %3213 = vmatmul.mubr.bf16.gmra.mrb[208].mxu1 %v2820_v24  ;;  %v2704_v13 = vmul.f32 %v2416_v33, %v9074_v21 }
 0x31f   : > { %v2422_v9 = vadd.f32 %v2421_v4, %v7239_v0  ;;  %v2705_v57 = vmul.f32 %v2418_v43, %v9076_v16  ;;  %v9078_v4 = vld [vmem:[#allocation39_spill] sm:$0xff] }
 0x320   : > { %v2706_v34 = vmul.f32 %v2420_v31, %v9075_v36 }
 0x321   : > { %v2707_v59 = vmul.f32 %v2422_v9, %v9077_v7 }
 0x322   : > { %v2822_v6 = vpack.c.bf16 %v2706_v34, %v2704_v13  ;;  %v9079_v13 = vld [vmem:[#allocation36_spill] sm:$0xff] }
 0x323   : > { %v2823_v45 = vpack.c.bf16 %v2707_v59, %v2705_v57  ;;  %v2425_v48 = vpop.f32.mrb[88].mxu0  ;;  %v9080_v57 = vld [vmem:[#allocation37_spill] sm:$0xff] }
 0x324   : > { %v2426_v40 = vadd.f32 %v2425_v48, %v7235_v14  ;;  %v2427_v8 = vpop.f32.mrb[89].mxu0  ;;  %v9081_v48 = vld [vmem:[#allocation38_spill] sm:$0xff] }
 0x325   : > { %v2428_v24 = vadd.f32 %v2427_v8, %v7239_v0  ;;  %v2429_v37 = vpop.f32.mrb[90].mxu0  ;;  %5281 = vmatprep.mubr.msk.bf16.mxu1 %vm1418_vm3, %v2823_v45 }
 0x326   : > { %v2430_v33 = vadd.f32 %v2429_v37, %v7235_v14  ;;  %v2431_v31 = vpop.f32.mrb[91].mxu0  ;;  %3223 = vmatmul.mubr.bf16.gmra.mrb[212].mxu1 %v2822_v6  ;;  %v2708_v9 = vmul.f32 %v2426_v40, %v9078_v4 }
 0x327   : > { %v2432_v43 = vadd.f32 %v2431_v31, %v7239_v0  ;;  %v2709_v59 = vmul.f32 %v2428_v24, %v9080_v57  ;;  %v9082_v24 = vld [vmem:[#allocation43_spill] sm:$0xff] }
 0x328   : > { %v2710_v34 = vmul.f32 %v2430_v33, %v9079_v13 }
 0x329   : > { %v2711_v7 = vmul.f32 %v2432_v43, %v9081_v48  ;;  %v9083_v43 = vld [vmem:[#allocation40_spill] sm:$0xff] }
 0x32a   : > { %v2824_v8 = vpack.c.bf16 %v2710_v34, %v2708_v9 }
 0x32b   : > { %v2825_v16 = vpack.c.bf16 %v2711_v7, %v2709_v59  ;;  %v2435_v36 = vpop.f32.mrb[92].mxu0  ;;  %v9084_v7 = vld [vmem:[#allocation41_spill] sm:$0xff]  ;;  %v9085_v59 = vld [vmem:[#allocation42_spill] sm:$0xff] }
 0x32c   : > { %v2436_v18 = vadd.f32 %v2435_v36, %v7235_v14  ;;  %v2437_v45 = vpop.f32.mrb[93].mxu0 }
 0x32d   : > { %v2438_v37 = vadd.f32 %v2437_v45, %v7239_v0  ;;  %v2439_v6 = vpop.f32.mrb[94].mxu0  ;;  %5282 = vmatprep.mubr.msk.bf16.mxu1 %vm1418_vm3, %v2825_v16 }
 0x32e   : > { %v2440_v26 = vadd.f32 %v2439_v6, %v7235_v14  ;;  %v2441_v40 = vpop.f32.mrb[95].mxu0  ;;  %3233 = vmatmul.mubr.bf16.gmra.mrb[216].mxu1 %v2824_v8  ;;  %v2712_v31 = vmul.f32 %v2436_v18, %v9082_v24 }
 0x32f   : > { %v2442_v33 = vadd.f32 %v2441_v40, %v7239_v0  ;;  %v2713_v34 = vmul.f32 %v2438_v37, %v9084_v7  ;;  %v5596_v37 = vld [vmem:[#allocation7 + $0xb0] ss:$8 sps:$4 sm:$0xff]   ;;  %v5598_v40 = vld [vmem:[#allocation7 + $0xb4] ss:$8 sps:$4 sm:$0xff]  }
 0x330   : > { %v2714_v9 = vmul.f32 %v2440_v26, %v9083_v43  ;;  %3971 = vmatprep.subr.bf16.mxu0 %v5598_v40 }
 0x331   : > { %v2715_v36 = vmul.f32 %v2442_v33, %v9085_v59  ;;  %3972 = vmatpush1.bf16.msra.mxu0 %v5596_v37 }
 0x332   : > { %v2826_v48 = vpack.c.bf16 %v2714_v9, %v2712_v31  ;;  %v9086_v31 = vld [vmem:[#allocation44_spill] sm:$0xff] }
 0x333   : > { %v2827_v57 = vpack.c.bf16 %v2715_v36, %v2713_v34  ;;  %v2445_v45 = vpop.f32.mrb[96].mxu0  ;;  %v9087_v34 = vld [vmem:[#allocation45_spill] sm:$0xff] }
 0x334   : > { %v2446_v13 = vadd.f32 %v2445_v45, %v7235_v14  ;;  %v2447_v16 = vpop.f32.mrb[97].mxu0  ;;  %v9088_v45 = vld [vmem:[#allocation46_spill] sm:$0xff] }
 0x335   : > { %v2448_v6 = vadd.f32 %v2447_v16, %v7239_v0  ;;  %v2449_v4 = vpop.f32.mrb[98].mxu0  ;;  %5283 = vmatprep.mubr.msk.bf16.mxu1 %vm1418_vm3, %v2827_v57 }
 0x336   : > { %v2450_v8 = vadd.f32 %v2449_v4, %v7235_v14  ;;  %v2451_v18 = vpop.f32.mrb[99].mxu0  ;;  %3243 = vmatmul.mubr.bf16.gmra.mrb[220].mxu1 %v2826_v48  ;;  %v2716_v33 = vmul.f32 %v2446_v13, %v8995_v11 }
 0x337   : > { %v2452_v26 = vadd.f32 %v2451_v18, %v7239_v0  ;;  %v2717_v36 = vmul.f32 %v2448_v6, %v9087_v34 }
 0x338   : > { %v2718_v9 = vmul.f32 %v2450_v8, %v9086_v31 }
 0x339   : > { %v2719_v59 = vmul.f32 %v2452_v26, %v9088_v45  ;;  %v9089_v26 = vld [vmem:[#allocation51_spill] sm:$0xff] }
 0x33a   : > { %v2828_v16 = vpack.c.bf16 %v2718_v9, %v2716_v33  ;;  %v9090_v33 = vld [vmem:[#allocation48_spill] sm:$0xff] }
 0x33b   : > { %v2829_v57 = vpack.c.bf16 %v2719_v59, %v2717_v36  ;;  %v2455_v7 = vpop.f32.mrb[100].mxu0  ;;  %v9091_v59 = vld [vmem:[#allocation49_spill] sm:$0xff]  ;;  %v9092_v36 = vld [vmem:[#allocation50_spill] sm:$0xff] }
 0x33c   : > { %v2456_v4 = vadd.f32 %v2455_v7, %v7235_v14  ;;  %v2457_v48 = vpop.f32.mrb[101].mxu0 }
 0x33d   : > { %v2458_v18 = vadd.f32 %v2457_v48, %v7239_v0  ;;  %v2459_v43 = vpop.f32.mrb[102].mxu0  ;;  %5284 = vmatprep.mubr.msk.bf16.mxu1 %vm1418_vm3, %v2829_v57 }
 0x33e   : > { %v2460_v13 = vadd.f32 %v2459_v43, %v7235_v14  ;;  %v2461_v8 = vpop.f32.mrb[103].mxu0  ;;  %3253 = vmatmul.mubr.bf16.gmra.mrb[224].mxu1 %v2828_v16  ;;  %v2720_v40 = vmul.f32 %v2456_v4, %v9089_v26 }
 0x33f   : > { %v2462_v6 = vadd.f32 %v2461_v8, %v7239_v0  ;;  %v2721_v9 = vmul.f32 %v2458_v18, %v9091_v59  ;;  %v9093_v18 = vld [vmem:[#allocation55_spill] sm:$0xff] }
 0x340   : > { %v2722_v37 = vmul.f32 %v2460_v13, %v9090_v33  ;;  %v3709_v33 = vld [vmem:[#allocation7 + $0xc0] sm:$0xff] }
 0x341   : > { %v2723_v7 = vmul.f32 %v2462_v6, %v9092_v36  ;;  %v9094_v6 = vld [vmem:[#allocation52_spill] sm:$0xff]  ;;  %v5332_v24 = vcombine.low %v3709_v33, %v3709_v33 }
 0x342   : > { %v2830_v45 = vpack.c.bf16 %v2722_v37, %v2720_v40  ;;  %v9095_v37 = vld [vmem:[#allocation53_spill] sm:$0xff] }
 0x343   : > { %v2831_v34 = vpack.c.bf16 %v2723_v7, %v2721_v9  ;;  %v2465_v48 = vpop.f32.mrb[104].mxu0  ;;  %v9096_v7 = vld [vmem:[#allocation54_spill] sm:$0xff] }
 0x344   : > { %v2466_v31 = vadd.f32 %v2465_v48, %v7235_v14  ;;  %v2467_v57 = vpop.f32.mrb[105].mxu0 }
 0x345   : > { %v2468_v43 = vadd.f32 %v2467_v57, %v7239_v0  ;;  %v2469_v11 = vpop.f32.mrb[106].mxu0  ;;  %5285 = vmatprep.mubr.msk.bf16.mxu1 %vm1418_vm3, %v2831_v34 }
 0x346   : > { %v2470_v16 = vadd.f32 %v2469_v11, %v7235_v14  ;;  %v2471_v4 = vpop.f32.mrb[107].mxu0  ;;  %3263 = vmatmul.mubr.bf16.gmra.mrb[228].mxu1 %v2830_v45  ;;  %v2724_v8 = vmul.f32 %v2466_v31, %v9093_v18  ;;  %v5333_v11 = vcombine.high %v3709_v33, %v3709_v33 }
 0x347   : > { %v2472_v13 = vadd.f32 %v2471_v4, %v7239_v0  ;;  %v2725_v9 = vmul.f32 %v2468_v43, %v9095_v37  ;;  %v3944_v43 = vsel %vm1515_vm2, %v5332_v24, 0 }
 0x348   : > { %v2726_v40 = vmul.f32 %v2470_v16, %v9094_v6  ;;  %5334 = vmatprep.subr.msk.bf16.mxu0 %vm1515_vm2, %v5333_v11 }
 0x349   : > { %v2727_v48 = vmul.f32 %v2472_v13, %v9096_v7  ;;  %3974 = vmatpush1.bf16.msra.mxu0 %v3944_v43 }
 0x34a   : > { %v2832_v36 = vpack.c.bf16 %v2726_v40, %v2724_v8  ;;  %v9097_v8 = vld [vmem:[#allocation59_spill] sm:$0xff] }
 0x34b   : > { %v2833_v59 = vpack.c.bf16 %v2727_v48, %v2725_v9  ;;  %v2475_v57 = vpop.f32.mrb[108].mxu0  ;;  %v9098_v9 = vld [vmem:[#allocation56_spill] sm:$0xff]  ;;  %v9099_v48 = vld [vmem:[#allocation57_spill] sm:$0xff] }
 0x34c   : > { %v2476_v34 = vadd.f32 %v2475_v57, %v7235_v14  ;;  %v2477_v26 = vpop.f32.mrb[109].mxu0  ;;  %v9100_v57 = vld [vmem:[#allocation58_spill] sm:$0xff] }
 0x34d   : > { %v2478_v45 = vadd.f32 %v2477_v26, %v7239_v0  ;;  %v2479_v4 = vpop.f32.mrb[110].mxu0  ;;  %5286 = vmatprep.mubr.msk.bf16.mxu1 %vm1418_vm3, %v2833_v59 }
 0x34e   : > { %v2480_v31 = vadd.f32 %v2479_v4, %v7235_v14  ;;  %v2481_v16 = vpop.f32.mrb[111].mxu0  ;;  %3273 = vmatmul.mubr.bf16.gmra.mrb[232].mxu1 %v2832_v36  ;;  %v2728_v40 = vmul.f32 %v2476_v34, %v9097_v8 }
 0x34f   : > { %v2482_v13 = vadd.f32 %v2481_v16, %v7239_v0  ;;  %v2729_v26 = vmul.f32 %v2478_v45, %v9099_v48  ;;  %v9101_v45 = vld [vmem:[#allocation65_spill] sm:$0xff] }
 0x350   : > { %v2730_v33 = vmul.f32 %v2480_v31, %v9098_v9 }
 0x351   : > { %v2731_v7 = vmul.f32 %v2482_v13, %v9100_v57  ;;  %v9102_v13 = vld [vmem:[#allocation61_spill] sm:$0xff] }
 0x352   : > { %v2834_v59 = vpack.c.bf16 %v2730_v33, %v2728_v40 }
 0x353   : > { %v2835_v37 = vpack.c.bf16 %v2731_v7, %v2729_v26  ;;  %v2485_v4 = vpop.f32.mrb[112].mxu0  ;;  %v9103_v7 = vld [vmem:[#allocation63_spill] sm:$0xff]  ;;  %v9104_v26 = vld [vmem:[#allocation64_spill] sm:$0xff] }
 0x354   : > { %v2486_v36 = vadd.f32 %v2485_v4, %v7235_v14  ;;  %v2487_v6 = vpop.f32.mrb[113].mxu0 }
 0x355   : > { %v2488_v11 = vadd.f32 %v2487_v6, %v7239_v0  ;;  %v2489_v24 = vpop.f32.mrb[114].mxu0  ;;  %5287 = vmatprep.mubr.msk.bf16.mxu1 %vm1418_vm3, %v2835_v37 }
 0x356   : > { %v2490_v16 = vadd.f32 %v2489_v24, %v7235_v14  ;;  %v2491_v34 = vpop.f32.mrb[115].mxu0  ;;  %3283 = vmatmul.mubr.bf16.gmra.mrb[236].mxu1 %v2834_v59  ;;  %v2732_v43 = vmul.f32 %v2486_v36, %v9101_v45 }
 0x357   : > { %v2492_v31 = vadd.f32 %v2491_v34, %v7239_v0  ;;  %v2733_v33 = vmul.f32 %v2488_v11, %v9103_v7  ;;  %v9105_v34 = vld [vmem:[#allocation68_spill] sm:$0xff] }
 0x358   : > { %v2734_v40 = vmul.f32 %v2490_v16, %v9102_v13 }
 0x359   : > { %v2735_v4 = vmul.f32 %v2492_v31, %v9104_v26 }
 0x35a   : > { %v2836_v57 = vpack.c.bf16 %v2734_v40, %v2732_v43  ;;  %v9106_v43 = vld [vmem:[#allocation70_spill] sm:$0xff] }
 0x35b   : > { %v2837_v48 = vpack.c.bf16 %v2735_v4, %v2733_v33  ;;  %v2495_v6 = vpop.f32.mrb[116].mxu0  ;;  %v9107_v33 = vld [vmem:[#allocation71_spill] sm:$0xff] }
 0x35c   : > { %v2496_v9 = vadd.f32 %v2495_v6, %v7235_v14  ;;  %v2497_v37 = vpop.f32.mrb[117].mxu0 }
 0x35d   : > { %v2498_v24 = vadd.f32 %v2497_v37, %v7239_v0  ;;  %v2499_v8 = vpop.f32.mrb[118].mxu0  ;;  %5288 = vmatprep.mubr.msk.bf16.mxu1 %vm1418_vm3, %v2837_v48 }
 0x35e   : > { %v2500_v59 = vadd.f32 %v2499_v8, %v7235_v14  ;;  %v2501_v36 = vpop.f32.mrb[119].mxu0  ;;  %3293 = vmatmul.mubr.bf16.gmra.mrb[240].mxu1 %v2836_v57  ;;  %v2736_v11 = vmul.f32 %v2496_v9, %v9015_v56 }
 0x35f   : > { %v2502_v16 = vadd.f32 %v2501_v36, %v7239_v0  ;;  %v2737_v40 = vmul.f32 %v2498_v24, %v9106_v43 }
 0x360   : > { %v2738_v31 = vmul.f32 %v2500_v59, %v9105_v34 }
 0x361   : > { %v2739_v4 = vmul.f32 %v2502_v16, %v9107_v33  ;;  %v9108_v16 = vld [vmem:[#allocation78_spill] sm:$0xff] }
 0x362   : > { %v2838_v6 = vpack.c.bf16 %v2738_v31, %v2736_v11  ;;  %v9109_v31 = vld [vmem:[#allocation79_spill] sm:$0xff] }
 0x363   : > { %v2839_v26 = vpack.c.bf16 %v2739_v4, %v2737_v40  ;;  %v2505_v37 = vpop.f32.mrb[120].mxu0 }
 0x364   : > { %v2506_v7 = vadd.f32 %v2505_v37, %v7235_v14  ;;  %v2507_v48 = vpop.f32.mrb[121].mxu0 }
 0x365   : > { %v2508_v8 = vadd.f32 %v2507_v48, %v7239_v0  ;;  %v2509_v13 = vpop.f32.mrb[122].mxu0  ;;  %5289 = vmatprep.mubr.msk.bf16.mxu1 %vm1418_vm3, %v2839_v26 }
 0x366   : > { %v2510_v57 = vadd.f32 %v2509_v13, %v7235_v14  ;;  %v2511_v9 = vpop.f32.mrb[123].mxu0  ;;  %3303 = vmatmul.mubr.bf16.gmra.mrb[244].mxu1 %v2838_v6  ;;  %v2740_v24 = vmul.f32 %v2506_v7, %v9019_v5 }
 0x367   : > { %v2512_v59 = vadd.f32 %v2511_v9, %v7239_v0  ;;  %v2741_v11 = vmul.f32 %v2508_v8, %v9108_v16 }
 0x368   : > { %v2742_v36 = vmul.f32 %v2510_v57, %v9020_v27 }
 0x369   : > { %v2743_v40 = vmul.f32 %v2512_v59, %v9109_v31  ;;  %v9110_v59 = vld [vmem:[#allocation84_spill] sm:$0xff] }
 0x36a   : > { %v2840_v4 = vpack.c.bf16 %v2742_v36, %v2740_v24  ;;  %v9111_v36 = vld [vmem:[#allocation85_spill] sm:$0xff] }
 0x36b   : > { %v2841_v37 = vpack.c.bf16 %v2743_v40, %v2741_v11  ;;  %v2515_v48 = vpop.f32.mrb[124].mxu0 }
 0x36c   : > { %v2516_v33 = vadd.f32 %v2515_v48, %v7235_v14  ;;  %v2517_v26 = vpop.f32.mrb[125].mxu0 }
 0x36d   : > { %v2518_v13 = vadd.f32 %v2517_v26, %v7239_v0  ;;  %v2519_v43 = vpop.f32.mrb[126].mxu0  ;;  %5290 = vmatprep.mubr.msk.bf16.mxu1 %vm1418_vm3, %v2841_v37 }
 0x36e   : > { %v2520_v6 = vadd.f32 %v2519_v43, %v7235_v14  ;;  %v2521_v7 = vpop.f32.mrb[127].mxu0  ;;  %3313 = vmatmul.mubr.bf16.gmra.mrb[248].mxu1 %v2840_v4  ;;  %v2744_v8 = vmul.f32 %v2516_v33, %v6574_v39 }
 0x36f   : > { %v2522_v57 = vadd.f32 %v2521_v7, %v7239_v0  ;;  %v2745_v24 = vmul.f32 %v2518_v13, %v9110_v59 }
 0x370   : > { %v2746_v9 = vmul.f32 %v2520_v6, %v6553_v63 }
 0x371   : > { %v2747_v11 = vmul.f32 %v2522_v57, %v9111_v36 }
 0x372   : > { %v2842_v40 = vpack.c.bf16 %v2746_v9, %v2744_v8 }
 0x373   : > { %v2843_v48 = vpack.c.bf16 %v2747_v11, %v2745_v24  ;;  %v2525_v26 = vpop.f32.mrb[128].mxu0 }
 0x374   : > { %v2526_v31 = vadd.f32 %v2525_v26, %v7235_v14  ;;  %v2527_v37 = vpop.f32.mrb[129].mxu0 }
 0x375   : > { %v2528_v43 = vadd.f32 %v2527_v37, %v7239_v0  ;;  %v2529_v16 = vpop.f32.mrb[130].mxu0  ;;  %5291 = vmatprep.mubr.msk.bf16.mxu1 %vm1418_vm3, %v2843_v48 }
 0x376   : > { %v2530_v4 = vadd.f32 %v2529_v16, %v7235_v14  ;;  %v2531_v33 = vpop.f32.mrb[131].mxu0  ;;  %3323 = vmatmul.mubr.bf16.gmra.mrb[252].mxu1 %v2842_v40  ;;  %v2748_v13 = vmul.f32 %v2526_v31, %v6590_v23 }
 0x377   : > { %v2532_v6 = vadd.f32 %v2531_v33, %v7239_v0  ;;  %v2749_v57 = vmul.f32 %v2528_v43, %v9025_v49 }
 0x378   : > { %v2750_v7 = vmul.f32 %v2530_v4, %v6594_v22 }
 0x379   : > { %v2751_v8 = vmul.f32 %v2532_v6, %v9026_v3 }
 0x37a   : > { %v2844_v9 = vpack.c.bf16 %v2750_v7, %v2748_v13 }
 0x37b   : > { %v2845_v24 = vpack.c.bf16 %v2751_v8, %v2749_v57  ;;  %v2535_v11 = vpop.f32.mrb[132].mxu0 }
 0x37c   : > { %v2536_v26 = vadd.f32 %v2535_v11, %v7235_v14  ;;  %v2537_v48 = vpop.f32.mrb[133].mxu0 }
 0x37d   : > { %v2538_v16 = vadd.f32 %v2537_v48, %v7239_v0  ;;  %v2539_v37 = vpop.f32.mrb[134].mxu0  ;;  %5292 = vmatprep.mubr.msk.bf16.mxu1 %vm1418_vm3, %v2845_v24 }
 0x37e   : > { %v2540_v40 = vadd.f32 %v2539_v37, %v7235_v14  ;;  %v2541_v31 = vpop.f32.mrb[135].mxu0  ;;  %3333 = vmatmul.mubr.bf16.gmra.mrb[0].mxu1 %v2844_v9  ;;  %v2752_v43 = vmul.f32 %v2536_v26, %v6621_v54 }
 0x37f   : > { %v2542_v4 = vadd.f32 %v2541_v31, %v7239_v0  ;;  %v2753_v6 = vmul.f32 %v2538_v16, %v6600_v50 }
 0x380   : > { %v2754_v33 = vmul.f32 %v2540_v40, %v6625_v52 }
 0x381   : > { %v2755_v13 = vmul.f32 %v2542_v4, %v6604_v30 }
 0x382   : > { %v2846_v7 = vpack.c.bf16 %v2754_v33, %v2752_v43 }
 0x383   : > { %v2847_v57 = vpack.c.bf16 %v2755_v13, %v2753_v6  ;;  %v2545_v8 = vpop.f32.mrb[136].mxu0 }
 0x384   : > { %v2546_v11 = vadd.f32 %v2545_v8, %v7235_v14  ;;  %v2547_v24 = vpop.f32.mrb[137].mxu0 }
 0x385   : > { %v2548_v48 = vadd.f32 %v2547_v24, %v7239_v0  ;;  %v2549_v37 = vpop.f32.mrb[138].mxu0  ;;  %5293 = vmatprep.mubr.msk.bf16.mxu1 %vm1418_vm3, %v2847_v57 }
 0x386   : > { %v2550_v9 = vadd.f32 %v2549_v37, %v7235_v14  ;;  %v2551_v26 = vpop.f32.mrb[139].mxu0  ;;  %3343 = vmatmul.mubr.bf16.gmra.mrb[4].mxu1 %v2846_v7  ;;  %v2756_v16 = vmul.f32 %v2546_v11, %v6642_v44 }
 0x387   : > { %v2552_v40 = vadd.f32 %v2551_v26, %v7239_v0  ;;  %v2757_v4 = vmul.f32 %v2548_v48, %v6629_v35 }
 0x388   : > { %v2758_v31 = vmul.f32 %v2550_v9, %v6646_v51 }
 0x389   : > { %v2759_v43 = vmul.f32 %v2552_v40, %v6633_v28 }
 0x38a   : > { %v2848_v33 = vpack.c.bf16 %v2758_v31, %v2756_v16 }
 0x38b   : > { %v2849_v6 = vpack.c.bf16 %v2759_v43, %v2757_v4  ;;  %v2555_v13 = vpop.f32.mrb[140].mxu0 }
 0x38c   : > { %v2556_v8 = vadd.f32 %v2555_v13, %v7235_v14  ;;  %v2557_v57 = vpop.f32.mrb[141].mxu0 }
 0x38d   : > { %v2558_v24 = vadd.f32 %v2557_v57, %v7239_v0  ;;  %v2559_v37 = vpop.f32.mrb[142].mxu0  ;;  %5294 = vmatprep.mubr.msk.bf16.mxu1 %vm1418_vm3, %v2849_v6 }
 0x38e   : > { %v2560_v7 = vadd.f32 %v2559_v37, %v7235_v14  ;;  %v2561_v11 = vpop.f32.mrb[143].mxu0  ;;  %3353 = vmatmul.mubr.bf16.gmra.mrb[8].mxu1 %v2848_v33  ;;  %v2760_v48 = vmul.f32 %v2556_v8, %v6669_v29 }
 0x38f   : > { %v2562_v9 = vadd.f32 %v2561_v11, %v7239_v0  ;;  %v2761_v40 = vmul.f32 %v2558_v24, %v6650_v62 }
 0x390   : > { %v2762_v26 = vmul.f32 %v2560_v7, %v6673_v46 }
 0x391   : > { %v2763_v16 = vmul.f32 %v2562_v9, %v6654_v1 }
 0x392   : > { %v2850_v31 = vpack.c.bf16 %v2762_v26, %v2760_v48 }
 0x393   : > { %v2851_v4 = vpack.c.bf16 %v2763_v16, %v2761_v40  ;;  %v2565_v43 = vpop.f32.mrb[144].mxu0 }
 0x394   : > { %v2566_v13 = vadd.f32 %v2565_v43, %v7235_v14  ;;  %v2567_v6 = vpop.f32.mrb[145].mxu0 }
 0x395   : > { %v2568_v57 = vadd.f32 %v2567_v6, %v7239_v0  ;;  %v2569_v37 = vpop.f32.mrb[146].mxu0  ;;  %5295 = vmatprep.mubr.msk.bf16.mxu1 %vm1418_vm3, %v2851_v4 }
 0x396   : > { %v2570_v33 = vadd.f32 %v2569_v37, %v7235_v14  ;;  %v2571_v8 = vpop.f32.mrb[147].mxu0  ;;  %3363 = vmatmul.mubr.bf16.gmra.mrb[12].mxu1 %v2850_v31  ;;  %v2764_v24 = vmul.f32 %v2566_v13, %v6690_v12 }
 0x397   : > { %v2572_v7 = vadd.f32 %v2571_v8, %v7239_v0  ;;  %v2765_v9 = vmul.f32 %v2568_v57, %v6677_v60  ;;  %v9112_v57 = vld [vmem:[#allocation104_spill] sm:$0xff] }
 0x398   : > { %v2766_v11 = vmul.f32 %v2570_v33, %v6694_v25 }
 0x399   : > { %v2767_v48 = vmul.f32 %v2572_v7, %v6681_v19  ;;  %v9113_v7 = vld [vmem:[#allocation105_spill] sm:$0xff] }
 0x39a   : > { %v2852_v26 = vpack.c.bf16 %v2766_v11, %v2764_v24  ;;  %v9114_v11 = vld [vmem:[#allocation102_spill] sm:$0xff] }
 0x39b   : > { %v2853_v40 = vpack.c.bf16 %v2767_v48, %v2765_v9  ;;  %v2575_v16 = vpop.f32.mrb[148].mxu0  ;;  %v9115_v48 = vld [vmem:[#allocation103_spill] sm:$0xff] }
 0x39c   : > { %v2576_v43 = vadd.f32 %v2575_v16, %v7235_v14  ;;  %v2577_v4 = vpop.f32.mrb[149].mxu0 }
 0x39d   : > { %v2578_v6 = vadd.f32 %v2577_v4, %v7239_v0  ;;  %v2579_v37 = vpop.f32.mrb[150].mxu0  ;;  %5296 = vmatprep.mubr.msk.bf16.mxu1 %vm1418_vm3, %v2853_v40 }
 0x39e   : > { %v2580_v31 = vadd.f32 %v2579_v37, %v7235_v14  ;;  %v2581_v13 = vpop.f32.mrb[151].mxu0  ;;  %3373 = vmatmul.mubr.bf16.gmra.mrb[16].mxu1 %v2852_v26  ;;  %v2768_v8 = vmul.f32 %v2576_v43, %v9112_v57 }
 0x39f   : > { %v2582_v33 = vadd.f32 %v2581_v13, %v7239_v0  ;;  %v2769_v9 = vmul.f32 %v2578_v6, %v9114_v11  ;;  %v9116_v6 = vld [vmem:[#allocation108_spill] sm:$0xff] }
 0x3a0   : > { %v2770_v24 = vmul.f32 %v2580_v31, %v9113_v7 }
 0x3a1   : > { %v2771_v16 = vmul.f32 %v2582_v33, %v9115_v48  ;;  %v9117_v33 = vld [vmem:[#allocation109_spill] sm:$0xff] }
 0x3a2   : > { %v2854_v19 = vpack.c.bf16 %v2770_v24, %v2768_v8  ;;  %v9118_v24 = vld [vmem:[#allocation106_spill] sm:$0xff] }
 0x3a3   : > { %v2855_v60 = vpack.c.bf16 %v2771_v16, %v2769_v9  ;;  %v2585_v4 = vpop.f32.mrb[152].mxu0  ;;  %v9119_v16 = vld [vmem:[#allocation107_spill] sm:$0xff] }
 0x3a4   : > { %v2586_v25 = vadd.f32 %v2585_v4, %v7235_v14  ;;  %v2587_v40 = vpop.f32.mrb[153].mxu0 }
 0x3a5   : > { %v2588_v37 = vadd.f32 %v2587_v40, %v7239_v0  ;;  %v2589_v12 = vpop.f32.mrb[154].mxu0  ;;  %5297 = vmatprep.mubr.msk.bf16.mxu1 %vm1418_vm3, %v2855_v60 }
 0x3a6   : > { %v2590_v26 = vadd.f32 %v2589_v12, %v7235_v14  ;;  %v2591_v43 = vpop.f32.mrb[155].mxu0  ;;  %3383 = vmatmul.mubr.bf16.gmra.mrb[20].mxu1 %v2854_v19  ;;  %v2772_v13 = vmul.f32 %v2586_v25, %v9116_v6 }
 0x3a7   : > { %v2592_v31 = vadd.f32 %v2591_v43, %v7239_v0  ;;  %v2773_v9 = vmul.f32 %v2588_v37, %v9118_v24  ;;  %v9120_v37 = vld [vmem:[#allocation112_spill] sm:$0xff] }
 0x3a8   : > { %v2774_v8 = vmul.f32 %v2590_v26, %v9117_v33 }
 0x3a9   : > { %v2775_v4 = vmul.f32 %v2592_v31, %v9119_v16  ;;  %v9121_v31 = vld [vmem:[#allocation113_spill] sm:$0xff] }
 0x3aa   : > { %v2856_v48 = vpack.c.bf16 %v2774_v8, %v2772_v13  ;;  %v9122_v8 = vld [vmem:[#allocation110_spill] sm:$0xff] }
 0x3ab   : > { %v2857_v11 = vpack.c.bf16 %v2775_v4, %v2773_v9  ;;  %v2595_v40 = vpop.f32.mrb[156].mxu0  ;;  %v9123_v4 = vld [vmem:[#allocation111_spill] sm:$0xff] }
 0x3ac   : > { %v2596_v7 = vadd.f32 %v2595_v40, %v7235_v14  ;;  %v2597_v60 = vpop.f32.mrb[157].mxu0 }
 0x3ad   : > { %v2598_v12 = vadd.f32 %v2597_v60, %v7239_v0  ;;  %v2599_v57 = vpop.f32.mrb[158].mxu0  ;;  %5298 = vmatprep.mubr.msk.bf16.mxu1 %vm1418_vm3, %v2857_v11 }
 0x3ae   : > { %v2600_v19 = vadd.f32 %v2599_v57, %v7235_v14  ;;  %v2601_v25 = vpop.f32.mrb[159].mxu0  ;;  %3393 = vmatmul.mubr.bf16.gmra.mrb[24].mxu1 %v2856_v48  ;;  %v2776_v43 = vmul.f32 %v2596_v7, %v9120_v37 }
 0x3af   : > { %v2602_v26 = vadd.f32 %v2601_v25, %v7239_v0  ;;  %v2777_v9 = vmul.f32 %v2598_v12, %v9122_v8  ;;  %v9124_v12 = vld [vmem:[#allocation116_spill] sm:$0xff] }
 0x3b0   : > { %v2778_v13 = vmul.f32 %v2600_v19, %v9121_v31 }
 0x3b1   : > { %v2779_v40 = vmul.f32 %v2602_v26, %v9123_v4  ;;  %v9125_v26 = vld [vmem:[#allocation117_spill] sm:$0xff] }
 0x3b2   : > { %v2858_v16 = vpack.c.bf16 %v2778_v13, %v2776_v43  ;;  %v9126_v13 = vld [vmem:[#allocation114_spill] sm:$0xff] }
 0x3b3   : > { %v2859_v24 = vpack.c.bf16 %v2779_v40, %v2777_v9  ;;  %v2605_v60 = vpop.f32.mrb[160].mxu0  ;;  %v9127_v40 = vld [vmem:[#allocation115_spill] sm:$0xff] }
 0x3b4   : > { %v2606_v33 = vadd.f32 %v2605_v60, %v7235_v14  ;;  %v2607_v11 = vpop.f32.mrb[161].mxu0 }
 0x3b5   : > { %v2608_v57 = vadd.f32 %v2607_v11, %v7239_v0  ;;  %v2609_v6 = vpop.f32.mrb[162].mxu0  ;;  %5299 = vmatprep.mubr.msk.bf16.mxu1 %vm1418_vm3, %v2859_v24 }
 0x3b6   : > { %v2610_v48 = vadd.f32 %v2609_v6, %v7235_v14  ;;  %v2611_v7 = vpop.f32.mrb[163].mxu0  ;;  %3403 = vmatmul.mubr.bf16.gmra.mrb[28].mxu1 %v2858_v16  ;;  %v2780_v25 = vmul.f32 %v2606_v33, %v9124_v12 }
 0x3b7   : > { %v2612_v19 = vadd.f32 %v2611_v7, %v7239_v0  ;;  %v2781_v9 = vmul.f32 %v2608_v57, %v9126_v13  ;;  %v9128_v57 = vld [vmem:[#allocation120_spill] sm:$0xff] }
 0x3b8   : > { %v2782_v43 = vmul.f32 %v2610_v48, %v9125_v26 }
 0x3b9   : > { %v2783_v60 = vmul.f32 %v2612_v19, %v9127_v40  ;;  %v9129_v19 = vld [vmem:[#allocation121_spill] sm:$0xff] }
 0x3ba   : > { %v2860_v4 = vpack.c.bf16 %v2782_v43, %v2780_v25  ;;  %v9130_v43 = vld [vmem:[#allocation118_spill] sm:$0xff] }
 0x3bb   : > { %v2861_v8 = vpack.c.bf16 %v2783_v60, %v2781_v9  ;;  %v2615_v11 = vpop.f32.mrb[164].mxu0  ;;  %v9131_v60 = vld [vmem:[#allocation119_spill] sm:$0xff] }
 0x3bc   : > { %v2616_v31 = vadd.f32 %v2615_v11, %v7235_v14  ;;  %v2617_v24 = vpop.f32.mrb[165].mxu0 }
 0x3bd   : > { %v2618_v6 = vadd.f32 %v2617_v24, %v7239_v0  ;;  %v2619_v37 = vpop.f32.mrb[166].mxu0  ;;  %5300 = vmatprep.mubr.msk.bf16.mxu1 %vm1418_vm3, %v2861_v8 }
 0x3be   : > { %v2620_v16 = vadd.f32 %v2619_v37, %v7235_v14  ;;  %v2621_v33 = vpop.f32.mrb[167].mxu0  ;;  %3413 = vmatmul.mubr.bf16.gmra.mrb[32].mxu1 %v2860_v4  ;;  %v2784_v7 = vmul.f32 %v2616_v31, %v9128_v57 }
 0x3bf   : > { %v2622_v48 = vadd.f32 %v2621_v33, %v7239_v0  ;;  %v2785_v9 = vmul.f32 %v2618_v6, %v9130_v43  ;;  %v9132_v6 = vld [vmem:[#allocation124_spill] sm:$0xff] }
 0x3c0   : > { %v2786_v25 = vmul.f32 %v2620_v16, %v9129_v19  ;;  %v2901_v19 = vld [vmem:[#allocation5] sm:$0x3] }
 0x3c1   : > { %v2787_v11 = vmul.f32 %v2622_v48, %v9131_v60  ;;  %v9133_v48 = vld [vmem:[#allocation125_spill] sm:$0xff] }
 0x3c2   : > { %v2862_v40 = vpack.c.bf16 %v2786_v25, %v2784_v7  ;;  %v9134_v25 = vld [vmem:[#allocation122_spill] sm:$0xff] }
 0x3c3   : > { %v2863_v13 = vpack.c.bf16 %v2787_v11, %v2785_v9  ;;  %v2625_v24 = vpop.f32.mrb[168].mxu0  ;;  %v9135_v11 = vld [vmem:[#allocation123_spill] sm:$0xff] }
 0x3c4   : > { %v2626_v26 = vadd.f32 %v2625_v24, %v7235_v14  ;;  %v2627_v8 = vpop.f32.mrb[169].mxu0 }
 0x3c5   : > { %v2628_v37 = vadd.f32 %v2627_v8, %v7239_v0  ;;  %v2629_v12 = vpop.f32.mrb[170].mxu0  ;;  %5301 = vmatprep.mubr.msk.bf16.mxu1 %vm1418_vm3, %v2863_v13 }
 0x3c6   : > { %v2630_v4 = vadd.f32 %v2629_v12, %v7235_v14  ;;  %v2631_v31 = vpop.f32.mrb[171].mxu0  ;;  %3423 = vmatmul.mubr.bf16.gmra.mrb[36].mxu1 %v2862_v40  ;;  %v2788_v33 = vmul.f32 %v2626_v26, %v9132_v6 }
 0x3c7   : > { %v2632_v16 = vadd.f32 %v2631_v31, %v7239_v0  ;;  %v2789_v9 = vmul.f32 %v2628_v37, %v9134_v25 }
 0x3c8   : > { %v2790_v7 = vmul.f32 %v2630_v4, %v9133_v48  ;;  %v9136_v4 = vld [vmem:[#allocation11_spill] sm:$0xff] }
 0x3c9   : > { %v2791_v24 = vmul.f32 %v2632_v16, %v9135_v11  ;;  %v7531_v37 = vrot.slane %v2901_v19, %v9136_v4  ;;  %v9141_v48 = vld [vmem:[#allocation127_spill] sm:$0xff] }
 0x3ca   : > { %v2864_v60 = vpack.c.bf16 %v2790_v7, %v2788_v33  ;;  %v9137_v33 = vld [vmem:[#allocation10_spill] sm:$0xff] }
 0x3cb   : > { %v2865_v43 = vpack.c.bf16 %v2791_v24, %v2789_v9  ;;  %v2635_v8 = vpop.f32.mrb[172].mxu0  ;;  %v7535_v7 = vrot.slane %v2901_v19, %v9137_v33  ;;  %v9138_v9 = vld [vmem:[#allocation60_spill] sm:$0xff] }
 0x3cc   : > { %v2636_v13 = vadd.f32 %v2635_v8, %v7235_v14  ;;  %v2637_v57 = vpop.f32.mrb[173].mxu0  ;;  %v9139_v8 = vld [vmem:[#allocation62_spill] sm:$0xff] }
 0x3cd   : > { %v2638_v12 = vadd.f32 %v2637_v57, %v7239_v0  ;;  %v2639_v40 = vpop.f32.mrb[174].mxu0  ;;  %5302 = vmatprep.mubr.msk.bf16.mxu1 %vm1418_vm3, %v2865_v43  ;;  %v9140_v57 = vld [vmem:[#allocation126_spill] sm:$0xff] }
 0x3ce   : > { %v2640_v26 = vadd.f32 %v2639_v40, %v7235_v14  ;;  %v2641_v31 = vpop.f32.mrb[175].mxu0  ;;  %3433 = vmatmul.mubr.bf16.gmra.mrb[40].mxu1 %v2864_v60  ;;  %v2792_v24 = vmul.f32 %v2636_v13, %v9138_v9 }
 0x3cf   : > { %v2642_v16 = vadd.f32 %v2641_v31, %v7239_v0  ;;  %v2793_v25 = vmul.f32 %v2638_v12, %v9140_v57 }
 0x3d0   : > { %v2794_v11 = vmul.f32 %v2640_v26, %v9139_v8 }
 0x3d1   : > { %v2795_v43 = vmul.f32 %v2642_v16, %v9141_v48  ;;  %v3174_v6 = vpop.f32.mrb[192].mxu1 }
 0x3d2   : > { %v2866_v40 = vpack.c.bf16 %v2794_v11, %v2792_v24  ;;  %v3175_v60 = vadd.f32 %v3174_v6, %v7531_v37  ;;  %v3176_v1 = vpop.f32.mrb[193].mxu1  ;;  %v9142_v6 = vld [vmem:[#allocation15_spill] sm:$0xff] }
 0x3d3   : > { %v2867_v4 = vpack.c.bf16 %v2795_v43, %v2793_v25  ;;  %v3177_v62 = vadd.f32 %v3176_v1, %v7535_v7  ;;  %v2645_v31 = vpop.f32.mrb[176].mxu0  ;;  %v3178_v46 = vpop.f32.mrb[194].mxu1  ;;  %v9143_v25 = vld [vmem:[#allocation12_spill] sm:$0xff] }
 0x3d4   : > { %v2646_v19 = vadd.f32 %v2645_v31, %v7235_v14  ;;  %v3179_v13 = vadd.f32 %v3178_v46, %v7531_v37  ;;  %v2647_v9 = vpop.f32.mrb[177].mxu0  ;;  %v3180_v26 = vpop.f32.mrb[195].mxu1  ;;  %v3493_v11 = vmul.f32 %v3175_v60, %v9142_v6  ;;  %v9144_v31 = vld [vmem:[#allocation13_spill] sm:$0xff]  ;;  %v9145_v46 = vld [vmem:[#allocation14_spill] sm:$0xff]  ;;  %v9146_v6 = vld [vmem:[#allocation72_spill] sm:$0xff] }
 0x3d5   : > { %v2648_v12 = vadd.f32 %v2647_v9, %v7239_v0  ;;  %v3181_v16 = vadd.f32 %v3180_v26, %v7535_v7  ;;  %v2649_v48 = vpop.f32.mrb[178].mxu0  ;;  %5303 = vmatprep.mubr.msk.bf16.mxu1 %vm1418_vm3, %v2867_v4  ;;  %v3494_v57 = vmul.f32 %v3177_v62, %v9144_v31 }
 0x3d6   : > { %v3495_v24 = vmul.f32 %v3179_v13, %v9143_v25  ;;  %v2650_v1 = vadd.f32 %v2649_v48, %v7235_v14  ;;  %v2651_v43 = vpop.f32.mrb[179].mxu0  ;;  %3443 = vmatmul.mubr.bf16.gmra.mrb[44].mxu1 %v2866_v40  ;;  %v2796_v9 = vmul.f32 %v2646_v19, %v6893_v2 }
 0x3d7   : > { %v3496_v8 = vmul.f32 %v3181_v16, %v9145_v46  ;;  %v2652_v33 = vadd.f32 %v2651_v43, %v7239_v0  ;;  %v2797_v4 = vmul.f32 %v2648_v12, %v9051_v32 }
 0x3d8   : > { %v3621_v26 = vpack.c.bf16 %v3495_v24, %v3493_v11  ;;  %v2798_v29 = vmul.f32 %v2650_v1, %v9050_v61  ;;  %v9148_v24 = vld [vmem:[#allocation16_spill] sm:$0xff] }
 0x3d9   : > { %v3622_v60 = vpack.c.bf16 %v3496_v8, %v3494_v57  ;;  %v2799_v13 = vmul.f32 %v2652_v33, %v9146_v6  ;;  %v3184_v25 = vpop.f32.mrb[196].mxu1 }
 0x3da   : > { %v2868_v48 = vpack.c.bf16 %v2798_v29, %v2796_v9  ;;  %v3185_v40 = vadd.f32 %v3184_v25, %v7531_v37  ;;  %v3186_v28 = vpop.f32.mrb[197].mxu1  ;;  %v9147_v25 = vld [vmem:[#allocation19_spill] sm:$0xff] }
 0x3db   : > { %v2869_v62 = vpack.c.bf16 %v2799_v13, %v2797_v4  ;;  %v3187_v16 = vadd.f32 %v3186_v28, %v7535_v7  ;;  %v2655_v46 = vpop.f32.mrb[180].mxu0  ;;  %v3188_v43 = vpop.f32.mrb[198].mxu1  ;;  %5335 = vmatprep.mubr.msk.bf16.mxu0 %vm1418_vm3, %v3622_v60  ;;  %v9149_v60 = vld [vmem:[#allocation18_spill] sm:$0xff] }
 0x3dc   : > { %v2656_v19 = vadd.f32 %v2655_v46, %v7235_v14  ;;  %v3189_v11 = vadd.f32 %v3188_v43, %v7531_v37  ;;  %v2657_v12 = vpop.f32.mrb[181].mxu0  ;;  %v3190_v8 = vpop.f32.mrb[199].mxu1  ;;  %3982 = vmatmul.mubr.bf16.vlgmr.msra.gmra.mrb[192].mxu0 %v3621_v26  ;;  %v3497_v28 = vmul.f32 %v3185_v40, %v9147_v25  ;;  %v9150_v25 = vld [vmem:[#allocation80_spill] sm:$0xff] }
 0x3dd   : > { %v2658_v33 = vadd.f32 %v2657_v12, %v7239_v0  ;;  %v3191_v29 = vadd.f32 %v3190_v8, %v7535_v7  ;;  %v2659_v57 = vpop.f32.mrb[182].mxu0  ;;  %5304 = vmatprep.mubr.msk.bf16.mxu1 %vm1418_vm3, %v2869_v62  ;;  %v3498_v46 = vmul.f32 %v3187_v16, %v9054_v17 }
 0x3de   : > { %v3499_v1 = vmul.f32 %v3189_v11, %v9148_v24  ;;  %v2660_v9 = vadd.f32 %v2659_v57, %v7235_v14  ;;  %v2661_v4 = vpop.f32.mrb[183].mxu0  ;;  %3453 = vmatmul.mubr.bf16.gmra.mrb[48].mxu1 %v2868_v48  ;;  %v2800_v43 = vmul.f32 %v2656_v19, %v6929_v41 }
 0x3df   : > { %v3500_v13 = vmul.f32 %v3191_v29, %v9149_v60  ;;  %v2662_v26 = vadd.f32 %v2661_v4, %v7239_v0  ;;  %v2801_v62 = vmul.f32 %v2658_v33, %v9056_v38 }
 0x3e0   : > { %v2802_v12 = vmul.f32 %v2660_v9, %v6933_v58  ;;  %v3623_v8 = vpack.c.bf16 %v3499_v1, %v3497_v28 }
 0x3e1   : > { %v3624_v40 = vpack.c.bf16 %v3500_v13, %v3498_v46  ;;  %v2803_v11 = vmul.f32 %v2662_v26, %v9150_v25  ;;  %v3194_v24 = vpop.f32.mrb[200].mxu1  ;;  %v9151_v13 = vld [vmem:[#allocation23_spill] sm:$0xff]  ;;  %v9152_v26 = vld [vmem:[#allocation20_spill] sm:$0xff] }
 0x3e2   : > { %v2870_v57 = vpack.c.bf16 %v2802_v12, %v2800_v43  ;;  %v3195_v48 = vadd.f32 %v3194_v24, %v7531_v37  ;;  %v3196_v6 = vpop.f32.mrb[201].mxu1 }
 0x3e3   : > { %v2871_v16 = vpack.c.bf16 %v2803_v11, %v2801_v62  ;;  %v3197_v29 = vadd.f32 %v3196_v6, %v7535_v7  ;;  %v2665_v60 = vpop.f32.mrb[184].mxu0  ;;  %v3198_v4 = vpop.f32.mrb[202].mxu1  ;;  %5336 = vmatprep.mubr.msk.bf16.mxu0 %vm1418_vm3, %v3624_v40  ;;  %v9153_v40 = vld [vmem:[#allocation22_spill] sm:$0xff] }
 0x3e4   : > { %v2666_v19 = vadd.f32 %v2665_v60, %v7235_v14  ;;  %v3199_v28 = vadd.f32 %v3198_v4, %v7531_v37  ;;  %v2667_v33 = vpop.f32.mrb[185].mxu0  ;;  %v3200_v1 = vpop.f32.mrb[203].mxu1  ;;  %3992 = vmatmul.mubr.bf16.gmra.mrb[196].mxu0 %v3623_v8  ;;  %v3501_v6 = vmul.f32 %v3195_v48, %v9151_v13  ;;  %v9154_v4 = vld [vmem:[#allocation21_spill] sm:$0xff] }
 0x3e5   : > { %v2668_v9 = vadd.f32 %v2667_v33, %v7239_v0  ;;  %v3201_v46 = vadd.f32 %v3200_v1, %v7535_v7  ;;  %v2669_v24 = vpop.f32.mrb[186].mxu0  ;;  %5305 = vmatprep.mubr.msk.bf16.mxu1 %vm1418_vm3, %v2871_v16  ;;  %v3502_v60 = vmul.f32 %v3197_v29, %v8967_v55  ;;  %v9155_v1 = vld [vmem:[#allocation130_spill] sm:$0xff]  ;;  %v9156_v16 = vld [vmem:[#allocation128_spill] sm:$0xff]  ;;  %v9157_v13 = vld [vmem:[#allocation129_spill] sm:$0xff] }
 0x3e6   : > { %v3503_v43 = vmul.f32 %v3199_v28, %v9152_v26  ;;  %v2670_v12 = vadd.f32 %v2669_v24, %v7235_v14  ;;  %v2671_v62 = vpop.f32.mrb[187].mxu0  ;;  %3463 = vmatmul.mubr.bf16.gmra.mrb[52].mxu1 %v2870_v57  ;;  %v2804_v33 = vmul.f32 %v2666_v19, %v9154_v4 }
 0x3e7   : > { %v3504_v11 = vmul.f32 %v3201_v46, %v9153_v40  ;;  %v2672_v8 = vadd.f32 %v2671_v62, %v7239_v0  ;;  %v2805_v58 = vmul.f32 %v2668_v9, %v9156_v16 }
 0x3e8   : > { %v2806_v25 = vmul.f32 %v2670_v12, %v9155_v1  ;;  %v3625_v38 = vpack.c.bf16 %v3503_v43, %v3501_v6 }
 0x3e9   : > { %v3626_v48 = vpack.c.bf16 %v3504_v11, %v3502_v60  ;;  %v2807_v28 = vmul.f32 %v2672_v8, %v9157_v13  ;;  %v3204_v26 = vpop.f32.mrb[204].mxu1  ;;  %v9159_v60 = vld [vmem:[#allocation24_spill] sm:$0xff] }
 0x3ea   : > { %v2872_v24 = vpack.c.bf16 %v2806_v25, %v2804_v33  ;;  %v3205_v57 = vadd.f32 %v3204_v26, %v7531_v37  ;;  %v3206_v41 = vpop.f32.mrb[205].mxu1 }
 0x3eb   : > { %v2873_v29 = vpack.c.bf16 %v2807_v28, %v2805_v58  ;;  %v3207_v46 = vadd.f32 %v3206_v41, %v7535_v7  ;;  %v2675_v40 = vpop.f32.mrb[188].mxu0  ;;  %v3208_v62 = vpop.f32.mrb[206].mxu1  ;;  %5337 = vmatprep.mubr.msk.bf16.mxu0 %vm1418_vm3, %v3626_v48  ;;  %v9158_v58 = vld [vmem:[#allocation27_spill] sm:$0xff] }
 0x3ec   : > { %v2676_v19 = vadd.f32 %v2675_v40, %v7235_v14  ;;  %v3209_v6 = vadd.f32 %v3208_v62, %v7531_v37  ;;  %v2677_v9 = vpop.f32.mrb[189].mxu0  ;;  %v3210_v43 = vpop.f32.mrb[207].mxu1  ;;  %4002 = vmatmul.mubr.bf16.gmra.mrb[200].mxu0 %v3625_v38  ;;  %v3505_v41 = vmul.f32 %v3205_v57, %v9158_v58  ;;  %v9160_v40 = vld [vmem:[#allocation25_spill] sm:$0xff] }
 0x3ed   : > { %v2678_v12 = vadd.f32 %v2677_v9, %v7239_v0  ;;  %v3211_v25 = vadd.f32 %v3210_v43, %v7535_v7  ;;  %v2679_v26 = vpop.f32.mrb[190].mxu0  ;;  %5306 = vmatprep.mubr.msk.bf16.mxu1 %vm1418_vm3, %v2873_v29  ;;  %v3506_v48 = vmul.f32 %v3207_v46, %v9160_v40 }
 0x3ee   : > { %v3507_v11 = vmul.f32 %v3209_v6, %v9159_v60  ;;  %v2680_v8 = vadd.f32 %v2679_v26, %v7235_v14  ;;  %v2681_v33 = vpop.f32.mrb[191].mxu0  ;;  %3473 = vmatmul.mubr.bf16.gmra.mrb[56].mxu1 %v2872_v24  ;;  %v2808_v62 = vmul.f32 %v2676_v19, %v9066_v42 }
 0x3ef   : > { %v3508_v28 = vmul.f32 %v3211_v25, %v9065_v20  ;;  %v2682_v38 = vadd.f32 %v2681_v33, %v7239_v0  ;;  %v2809_v29 = vmul.f32 %v2678_v12, %v9068_v53 }
 0x3f0   : > { %v2810_v9 = vmul.f32 %v2680_v8, %v9067_v47  ;;  %v3627_v43 = vpack.c.bf16 %v3507_v11, %v3505_v41  ;;  %v9161_v11 = vld [vmem:[#allocation28_spill] sm:$0xff] }
 0x3f1   : > { %v3628_v57 = vpack.c.bf16 %v3508_v28, %v3506_v48  ;;  %v2811_v6 = vmul.f32 %v2682_v38, %v9069_v15  ;;  %v3214_v60 = vpop.f32.mrb[208].mxu1  ;;  %v9163_v48 = vld [vmem:[#allocation30_spill] sm:$0xff] }
 0x3f2   : > { %v2874_v14 = vpack.c.bf16 %v2810_v9, %v2808_v62  ;;  %v3215_v24 = vadd.f32 %v3214_v60, %v7531_v37  ;;  %v3216_v26 = vpop.f32.mrb[209].mxu1  ;;  %v9162_v60 = vld [vmem:[#allocation29_spill] sm:$0xff] }
 0x3f3   : > { %v2875_v46 = vpack.c.bf16 %v2811_v6, %v2809_v29  ;;  %v3217_v25 = vadd.f32 %v3216_v26, %v7535_v7  ;;  %v3218_v20 = vpop.f32.mrb[210].mxu1  ;;  %5338 = vmatprep.mubr.msk.bf16.mxu0 %vm1418_vm3, %v3628_v57 }
 0x3f4   : > { %v3219_v0 = vadd.f32 %v3218_v20, %v7531_v37  ;;  %v3220_v19 = vpop.f32.mrb[211].mxu1  ;;  %4012 = vmatmul.mubr.bf16.gmra.mrb[204].mxu0 %v3627_v43  ;;  %v3509_v41 = vmul.f32 %v3215_v24, %v9070_v10 }
 0x3f5   : > { %v3221_v12 = vadd.f32 %v3220_v19, %v7535_v7  ;;  %5307 = vmatprep.mubr.msk.bf16.mxu1 %vm1418_vm3, %v2875_v46  ;;  %v3510_v33 = vmul.f32 %v3217_v25, %v9162_v60  ;;  %v9164_v46 = vld [vmem:[#allocation32_spill] sm:$0xff] }
 0x3f6   : > { %v3511_v8 = vmul.f32 %v3219_v0, %v9161_v11  ;;  %3483 = vmatmul.mubr.bf16.gmra.mrb[60].mxu1 %v2874_v14  ;;  %v9165_v0 = vld [vmem:[#allocation33_spill] sm:$0xff] }
 0x3f7   : > { %v3512_v28 = vmul.f32 %v3221_v12, %v9163_v48  ;;  %v9166_v12 = vld [vmem:[#allocation34_spill] sm:$0xff] }
 0x3f8   : > { %v3629_v38 = vpack.c.bf16 %v3511_v8, %v3509_v41 }
 0x3f9   : > { %v3630_v62 = vpack.c.bf16 %v3512_v28, %v3510_v33  ;;  %v3224_v9 = vpop.f32.mrb[212].mxu1 }
 0x3fa   : > { %v3225_v20 = vadd.f32 %v3224_v9, %v7531_v37  ;;  %v3226_v29 = vpop.f32.mrb[213].mxu1 }
 0x3fb   : > { %v3227_v43 = vadd.f32 %v3226_v29, %v7535_v7  ;;  %v3228_v57 = vpop.f32.mrb[214].mxu1  ;;  %5339 = vmatprep.mubr.msk.bf16.mxu0 %vm1418_vm3, %v3630_v62 }
 0x3fc   : > { %v3229_v6 = vadd.f32 %v3228_v57, %v7531_v37  ;;  %v3230_v24 = vpop.f32.mrb[215].mxu1  ;;  %4022 = vmatmul.mubr.bf16.gmra.mrb[208].mxu0 %v3629_v38  ;;  %v3513_v26 = vmul.f32 %v3225_v20, %v9074_v21 }
 0x3fd   : > { %v3231_v14 = vadd.f32 %v3230_v24, %v7535_v7  ;;  %v3514_v19 = vmul.f32 %v3227_v43, %v9165_v0  ;;  %v9167_v43 = vld [vmem:[#allocation39_spill] sm:$0xff] }
 0x3fe   : > { %v3515_v25 = vmul.f32 %v3229_v6, %v9164_v46 }
 0x3ff   : > { %v3516_v41 = vmul.f32 %v3231_v14, %v9166_v12  ;;  %v9168_v14 = vld [vmem:[#allocation36_spill] sm:$0xff] }
 0x400   : > { %v3631_v8 = vpack.c.bf16 %v3515_v25, %v3513_v26  ;;  %v9169_v25 = vld [vmem:[#allocation37_spill] sm:$0xff] }
 0x401   : > { %v3632_v33 = vpack.c.bf16 %v3516_v41, %v3514_v19  ;;  %v3234_v28 = vpop.f32.mrb[216].mxu1  ;;  %v9170_v41 = vld [vmem:[#allocation38_spill] sm:$0xff] }
 0x402   : > { %v3235_v9 = vadd.f32 %v3234_v28, %v7531_v37  ;;  %v3236_v62 = vpop.f32.mrb[217].mxu1 }
 0x403   : > { %v3237_v29 = vadd.f32 %v3236_v62, %v7535_v7  ;;  %v3238_v57 = vpop.f32.mrb[218].mxu1  ;;  %5340 = vmatprep.mubr.msk.bf16.mxu0 %vm1418_vm3, %v3632_v33 }
 0x404   : > { %v3239_v38 = vadd.f32 %v3238_v57, %v7531_v37  ;;  %v3240_v20 = vpop.f32.mrb[219].mxu1  ;;  %4032 = vmatmul.mubr.bf16.gmra.mrb[212].mxu0 %v3631_v8  ;;  %v3517_v24 = vmul.f32 %v3235_v9, %v9167_v43 }
 0x405   : > { %v3241_v6 = vadd.f32 %v3240_v20, %v7535_v7  ;;  %v3518_v19 = vmul.f32 %v3237_v29, %v9169_v25  ;;  %v9171_v29 = vld [vmem:[#allocation43_spill] sm:$0xff] }
 0x406   : > { %v3519_v26 = vmul.f32 %v3239_v38, %v9168_v14 }
 0x407   : > { %v3520_v28 = vmul.f32 %v3241_v6, %v9170_v41  ;;  %v9172_v6 = vld [vmem:[#allocation40_spill] sm:$0xff] }
 0x408   : > { %v3633_v12 = vpack.c.bf16 %v3519_v26, %v3517_v24  ;;  %v9173_v26 = vld [vmem:[#allocation41_spill] sm:$0xff] }
 0x409   : > { %v3634_v46 = vpack.c.bf16 %v3520_v28, %v3518_v19  ;;  %v3244_v62 = vpop.f32.mrb[220].mxu1  ;;  %v9174_v28 = vld [vmem:[#allocation42_spill] sm:$0xff] }
 0x40a   : > { %v3245_v0 = vadd.f32 %v3244_v62, %v7531_v37  ;;  %v3246_v33 = vpop.f32.mrb[221].mxu1 }
 0x40b   : > { %v3247_v57 = vadd.f32 %v3246_v33, %v7535_v7  ;;  %v3248_v21 = vpop.f32.mrb[222].mxu1  ;;  %5341 = vmatprep.mubr.msk.bf16.mxu0 %vm1418_vm3, %v3634_v46 }
 0x40c   : > { %v3249_v8 = vadd.f32 %v3248_v21, %v7531_v37  ;;  %v3250_v9 = vpop.f32.mrb[223].mxu1  ;;  %4042 = vmatmul.mubr.bf16.gmra.mrb[216].mxu0 %v3633_v12  ;;  %v3521_v20 = vmul.f32 %v3245_v0, %v9171_v29 }
 0x40d   : > { %v3251_v38 = vadd.f32 %v3250_v9, %v7535_v7  ;;  %v3522_v19 = vmul.f32 %v3247_v57, %v9173_v26  ;;  %v9175_v57 = vld [vmem:[#allocation47_spill] sm:$0xff] }
 0x40e   : > { %v3523_v24 = vmul.f32 %v3249_v8, %v9172_v6 }
 0x40f   : > { %v3524_v62 = vmul.f32 %v3251_v38, %v9174_v28  ;;  %v9176_v38 = vld [vmem:[#allocation44_spill] sm:$0xff] }
 0x410   : > { %v3635_v41 = vpack.c.bf16 %v3523_v24, %v3521_v20  ;;  %v9177_v24 = vld [vmem:[#allocation45_spill] sm:$0xff] }
 0x411   : > { %v3636_v14 = vpack.c.bf16 %v3524_v62, %v3522_v19  ;;  %v3254_v33 = vpop.f32.mrb[224].mxu1  ;;  %v9178_v62 = vld [vmem:[#allocation46_spill] sm:$0xff] }
 0x412   : > { %v3255_v25 = vadd.f32 %v3254_v33, %v7531_v37  ;;  %v3256_v46 = vpop.f32.mrb[225].mxu1 }
 0x413   : > { %v3257_v21 = vadd.f32 %v3256_v46, %v7535_v7  ;;  %v3258_v43 = vpop.f32.mrb[226].mxu1  ;;  %5342 = vmatprep.mubr.msk.bf16.mxu0 %vm1418_vm3, %v3636_v14 }
 0x414   : > { %v3259_v12 = vadd.f32 %v3258_v43, %v7531_v37  ;;  %v3260_v0 = vpop.f32.mrb[227].mxu1  ;;  %4052 = vmatmul.mubr.bf16.gmra.mrb[220].mxu0 %v3635_v41  ;;  %v3525_v9 = vmul.f32 %v3255_v25, %v9175_v57 }
 0x415   : > { %v3261_v8 = vadd.f32 %v3260_v0, %v7535_v7  ;;  %v3526_v19 = vmul.f32 %v3257_v21, %v9177_v24  ;;  %v9179_v21 = vld [vmem:[#allocation51_spill] sm:$0xff] }
 0x416   : > { %v3527_v20 = vmul.f32 %v3259_v12, %v9176_v38 }
 0x417   : > { %v3528_v33 = vmul.f32 %v3261_v8, %v9178_v62  ;;  %v9180_v8 = vld [vmem:[#allocation48_spill] sm:$0xff] }
 0x418   : > { %v3637_v28 = vpack.c.bf16 %v3527_v20, %v3525_v9  ;;  %v9181_v20 = vld [vmem:[#allocation49_spill] sm:$0xff] }
 0x419   : > { %v3638_v6 = vpack.c.bf16 %v3528_v33, %v3526_v19  ;;  %v3264_v46 = vpop.f32.mrb[228].mxu1  ;;  %v9182_v33 = vld [vmem:[#allocation50_spill] sm:$0xff] }
 0x41a   : > { %v3265_v26 = vadd.f32 %v3264_v46, %v7531_v37  ;;  %v3266_v14 = vpop.f32.mrb[229].mxu1 }
 0x41b   : > { %v3267_v43 = vadd.f32 %v3266_v14, %v7535_v7  ;;  %v3268_v29 = vpop.f32.mrb[230].mxu1  ;;  %5343 = vmatprep.mubr.msk.bf16.mxu0 %vm1418_vm3, %v3638_v6 }
 0x41c   : > { %v3269_v41 = vadd.f32 %v3268_v29, %v7531_v37  ;;  %v3270_v25 = vpop.f32.mrb[231].mxu1  ;;  %4062 = vmatmul.mubr.bf16.gmra.mrb[224].mxu0 %v3637_v28  ;;  %v3529_v0 = vmul.f32 %v3265_v26, %v9179_v21 }
 0x41d   : > { %v3271_v12 = vadd.f32 %v3270_v25, %v7535_v7  ;;  %v3530_v19 = vmul.f32 %v3267_v43, %v9181_v20  ;;  %v9183_v25 = vld [vmem:[#allocation52_spill] sm:$0xff] }
 0x41e   : > { %v3531_v9 = vmul.f32 %v3269_v41, %v9180_v8 }
 0x41f   : > { %v3532_v46 = vmul.f32 %v3271_v12, %v9182_v33 }
 0x420   : > { %v3639_v62 = vpack.c.bf16 %v3531_v9, %v3529_v0  ;;  %v9184_v0 = vld [vmem:[#allocation53_spill] sm:$0xff] }
 0x421   : > { %v3640_v38 = vpack.c.bf16 %v3532_v46, %v3530_v19  ;;  %v3274_v14 = vpop.f32.mrb[232].mxu1  ;;  %v9185_v19 = vld [vmem:[#allocation54_spill] sm:$0xff] }
 0x422   : > { %v3275_v24 = vadd.f32 %v3274_v14, %v7531_v37  ;;  %v3276_v6 = vpop.f32.mrb[233].mxu1 }
 0x423   : > { %v3277_v29 = vadd.f32 %v3276_v6, %v7535_v7  ;;  %v3278_v57 = vpop.f32.mrb[234].mxu1  ;;  %5344 = vmatprep.mubr.msk.bf16.mxu0 %vm1418_vm3, %v3640_v38 }
 0x424   : > { %v3279_v28 = vadd.f32 %v3278_v57, %v7531_v37  ;;  %v3280_v26 = vpop.f32.mrb[235].mxu1  ;;  %4072 = vmatmul.mubr.bf16.gmra.mrb[228].mxu0 %v3639_v62  ;;  %v3533_v43 = vmul.f32 %v3275_v24, %v9093_v18 }
 0x425   : > { %v3281_v41 = vadd.f32 %v3280_v26, %v7535_v7  ;;  %v3534_v9 = vmul.f32 %v3277_v29, %v9184_v0  ;;  %v9186_v29 = vld [vmem:[#allocation59_spill] sm:$0xff] }
 0x426   : > { %v3535_v12 = vmul.f32 %v3279_v28, %v9183_v25 }
 0x427   : > { %v3536_v46 = vmul.f32 %v3281_v41, %v9185_v19  ;;  %v9187_v41 = vld [vmem:[#allocation56_spill] sm:$0xff] }
 0x428   : > { %v3641_v14 = vpack.c.bf16 %v3535_v12, %v3533_v43  ;;  %v9188_v12 = vld [vmem:[#allocation57_spill] sm:$0xff] }
 0x429   : > { %v3642_v33 = vpack.c.bf16 %v3536_v46, %v3534_v9  ;;  %v3284_v6 = vpop.f32.mrb[236].mxu1  ;;  %v9189_v46 = vld [vmem:[#allocation58_spill] sm:$0xff] }
 0x42a   : > { %v3285_v8 = vadd.f32 %v3284_v6, %v7531_v37  ;;  %v3286_v38 = vpop.f32.mrb[237].mxu1 }
 0x42b   : > { %v3287_v57 = vadd.f32 %v3286_v38, %v7535_v7  ;;  %v3288_v20 = vpop.f32.mrb[238].mxu1  ;;  %5345 = vmatprep.mubr.msk.bf16.mxu0 %vm1418_vm3, %v3642_v33 }
 0x42c   : > { %v3289_v62 = vadd.f32 %v3288_v20, %v7531_v37  ;;  %v3290_v24 = vpop.f32.mrb[239].mxu1  ;;  %4082 = vmatmul.mubr.bf16.gmra.mrb[232].mxu0 %v3641_v14  ;;  %v3537_v26 = vmul.f32 %v3285_v8, %v9186_v29 }
 0x42d   : > { %v3291_v28 = vadd.f32 %v3290_v24, %v7535_v7  ;;  %v3538_v9 = vmul.f32 %v3287_v57, %v9188_v12  ;;  %v9190_v24 = vld [vmem:[#allocation61_spill] sm:$0xff] }
 0x42e   : > { %v3539_v43 = vmul.f32 %v3289_v62, %v9187_v41 }
 0x42f   : > { %v3540_v6 = vmul.f32 %v3291_v28, %v9189_v46 }
 0x430   : > { %v3643_v19 = vpack.c.bf16 %v3539_v43, %v3537_v26  ;;  %v9191_v26 = vld [vmem:[#allocation63_spill] sm:$0xff] }
 0x431   : > { %v3644_v25 = vpack.c.bf16 %v3540_v6, %v3538_v9  ;;  %v3294_v38 = vpop.f32.mrb[240].mxu1  ;;  %v9192_v9 = vld [vmem:[#allocation64_spill] sm:$0xff] }
 0x432   : > { %v3295_v0 = vadd.f32 %v3294_v38, %v7531_v37  ;;  %v3296_v33 = vpop.f32.mrb[241].mxu1 }
 0x433   : > { %v3297_v20 = vadd.f32 %v3296_v33, %v7535_v7  ;;  %v3298_v18 = vpop.f32.mrb[242].mxu1  ;;  %5346 = vmatprep.mubr.msk.bf16.mxu0 %vm1418_vm3, %v3644_v25 }
 0x434   : > { %v3299_v14 = vadd.f32 %v3298_v18, %v7531_v37  ;;  %v3300_v8 = vpop.f32.mrb[243].mxu1  ;;  %4092 = vmatmul.mubr.bf16.gmra.mrb[236].mxu0 %v3643_v19  ;;  %v3541_v57 = vmul.f32 %v3295_v0, %v9101_v45 }
 0x435   : > { %v3301_v62 = vadd.f32 %v3300_v8, %v7535_v7  ;;  %v3542_v43 = vmul.f32 %v3297_v20, %v9191_v26 }
 0x436   : > { %v3543_v28 = vmul.f32 %v3299_v14, %v9190_v24 }
 0x437   : > { %v3544_v6 = vmul.f32 %v3301_v62, %v9192_v9  ;;  %v9193_v62 = vld [vmem:[#allocation70_spill] sm:$0xff] }
 0x438   : > { %v3645_v38 = vpack.c.bf16 %v3543_v28, %v3541_v57  ;;  %v9194_v28 = vld [vmem:[#allocation71_spill] sm:$0xff] }
 0x439   : > { %v3646_v46 = vpack.c.bf16 %v3544_v6, %v3542_v43  ;;  %v3304_v33 = vpop.f32.mrb[244].mxu1 }
 0x43a   : > { %v3305_v41 = vadd.f32 %v3304_v33, %v7531_v37  ;;  %v3306_v25 = vpop.f32.mrb[245].mxu1 }
 0x43b   : > { %v3307_v18 = vadd.f32 %v3306_v25, %v7535_v7  ;;  %v3308_v12 = vpop.f32.mrb[246].mxu1  ;;  %5347 = vmatprep.mubr.msk.bf16.mxu0 %vm1418_vm3, %v3646_v46 }
 0x43c   : > { %v3309_v19 = vadd.f32 %v3308_v12, %v7531_v37  ;;  %v3310_v0 = vpop.f32.mrb[247].mxu1  ;;  %4102 = vmatmul.mubr.bf16.gmra.mrb[240].mxu0 %v3645_v38  ;;  %v3545_v20 = vmul.f32 %v3305_v41, %v9015_v56 }
 0x43d   : > { %v3311_v14 = vadd.f32 %v3310_v0, %v7535_v7  ;;  %v3546_v57 = vmul.f32 %v3307_v18, %v9193_v62 }
 0x43e   : > { %v3547_v8 = vmul.f32 %v3309_v19, %v9105_v34 }
 0x43f   : > { %v3548_v43 = vmul.f32 %v3311_v14, %v9194_v28  ;;  %v9195_v14 = vld [vmem:[#allocation78_spill] sm:$0xff] }
 0x440   : > { %v3647_v6 = vpack.c.bf16 %v3547_v8, %v3545_v20  ;;  %v9196_v8 = vld [vmem:[#allocation79_spill] sm:$0xff] }
 0x441   : > { %v3648_v33 = vpack.c.bf16 %v3548_v43, %v3546_v57  ;;  %v3314_v25 = vpop.f32.mrb[248].mxu1 }
 0x442   : > { %v3315_v9 = vadd.f32 %v3314_v25, %v7531_v37  ;;  %v3316_v46 = vpop.f32.mrb[249].mxu1 }
 0x443   : > { %v3317_v12 = vadd.f32 %v3316_v46, %v7535_v7  ;;  %v3318_v24 = vpop.f32.mrb[250].mxu1  ;;  %5348 = vmatprep.mubr.msk.bf16.mxu0 %vm1418_vm3, %v3648_v33 }
 0x444   : > { %v3319_v38 = vadd.f32 %v3318_v24, %v7531_v37  ;;  %v3320_v41 = vpop.f32.mrb[251].mxu1  ;;  %4112 = vmatmul.mubr.bf16.gmra.mrb[244].mxu0 %v3647_v6  ;;  %v3549_v18 = vmul.f32 %v3315_v9, %v9019_v5 }
 0x445   : > { %v3321_v19 = vadd.f32 %v3320_v41, %v7535_v7  ;;  %v3550_v20 = vmul.f32 %v3317_v12, %v9195_v14 }
 0x446   : > { %v3551_v0 = vmul.f32 %v3319_v38, %v9020_v27 }
 0x447   : > { %v3552_v57 = vmul.f32 %v3321_v19, %v9196_v8 }
 0x448   : > { %v3649_v43 = vpack.c.bf16 %v3551_v0, %v3549_v18 }
 0x449   : > { %v3650_v25 = vpack.c.bf16 %v3552_v57, %v3550_v20  ;;  %v3324_v46 = vpop.f32.mrb[252].mxu1 }
 0x44a   : > { %v3325_v28 = vadd.f32 %v3324_v46, %v7531_v37  ;;  %v3326_v33 = vpop.f32.mrb[253].mxu1 }
 0x44b   : > { %v3327_v24 = vadd.f32 %v3326_v33, %v7535_v7  ;;  %v3328_v34 = vpop.f32.mrb[254].mxu1  ;;  %5349 = vmatprep.mubr.msk.bf16.mxu0 %vm1418_vm3, %v3650_v25 }
 0x44c   : > { %v3329_v6 = vadd.f32 %v3328_v34, %v7531_v37  ;;  %v3330_v9 = vpop.f32.mrb[255].mxu1  ;;  %4122 = vmatmul.mubr.bf16.gmra.mrb[248].mxu0 %v3649_v43  ;;  %v3553_v12 = vmul.f32 %v3325_v28, %v6574_v39 }
 0x44d   : > { %v3331_v38 = vadd.f32 %v3330_v9, %v7535_v7  ;;  %v3554_v19 = vmul.f32 %v3327_v24, %v9110_v59 }
 0x44e   : > { %v3555_v41 = vmul.f32 %v3329_v6, %v6553_v63 }
 0x44f   : > { %v3556_v18 = vmul.f32 %v3331_v38, %v9111_v36 }
 0x450   : > { %v3651_v0 = vpack.c.bf16 %v3555_v41, %v3553_v12 }
 0x451   : > { %v3652_v20 = vpack.c.bf16 %v3556_v18, %v3554_v19  ;;  %v3334_v57 = vpop.f32.mrb[0].mxu1 }
 0x452   : > { %v3335_v46 = vadd.f32 %v3334_v57, %v7531_v37  ;;  %v3336_v25 = vpop.f32.mrb[1].mxu1 }
 0x453   : > { %v3337_v34 = vadd.f32 %v3336_v25, %v7535_v7  ;;  %v3338_v33 = vpop.f32.mrb[2].mxu1  ;;  %5350 = vmatprep.mubr.msk.bf16.mxu0 %vm1418_vm3, %v3652_v20 }
 0x454   : > { %v3339_v43 = vadd.f32 %v3338_v33, %v7531_v37  ;;  %v3340_v28 = vpop.f32.mrb[3].mxu1  ;;  %4132 = vmatmul.mubr.bf16.gmra.mrb[252].mxu0 %v3651_v0  ;;  %v3557_v24 = vmul.f32 %v3335_v46, %v6590_v23 }
 0x455   : > { %v3341_v6 = vadd.f32 %v3340_v28, %v7535_v7  ;;  %v3558_v38 = vmul.f32 %v3337_v34, %v9025_v49 }
 0x456   : > { %v3559_v9 = vmul.f32 %v3339_v43, %v6594_v22 }
 0x457   : > { %v3560_v12 = vmul.f32 %v3341_v6, %v9026_v3 }
 0x458   : > { %v3653_v41 = vpack.c.bf16 %v3559_v9, %v3557_v24 }
 0x459   : > { %v3654_v19 = vpack.c.bf16 %v3560_v12, %v3558_v38  ;;  %v3344_v18 = vpop.f32.mrb[4].mxu1 }
 0x45a   : > { %v3345_v57 = vadd.f32 %v3344_v18, %v7531_v37  ;;  %v3346_v20 = vpop.f32.mrb[5].mxu1 }
 0x45b   : > { %v3347_v25 = vadd.f32 %v3346_v20, %v7535_v7  ;;  %v3348_v33 = vpop.f32.mrb[6].mxu1  ;;  %5351 = vmatprep.mubr.msk.bf16.mxu0 %vm1418_vm3, %v3654_v19 }
 0x45c   : > { %v3349_v0 = vadd.f32 %v3348_v33, %v7531_v37  ;;  %v3350_v46 = vpop.f32.mrb[7].mxu1  ;;  %4142 = vmatmul.mubr.bf16.gmra.mrb[0].mxu0 %v3653_v41  ;;  %v3561_v34 = vmul.f32 %v3345_v57, %v6621_v54 }
 0x45d   : > { %v3351_v43 = vadd.f32 %v3350_v46, %v7535_v7  ;;  %v3562_v6 = vmul.f32 %v3347_v25, %v6600_v50 }
 0x45e   : > { %v3563_v28 = vmul.f32 %v3349_v0, %v6625_v52 }
 0x45f   : > { %v3564_v24 = vmul.f32 %v3351_v43, %v6604_v30 }
 0x460   : > { %v3655_v9 = vpack.c.bf16 %v3563_v28, %v3561_v34  ;;  %v9197_v34 = vld [vmem:[#allocation91_spill] sm:$0xff] }
 0x461   : > { %v3656_v38 = vpack.c.bf16 %v3564_v24, %v3562_v6  ;;  %v3354_v12 = vpop.f32.mrb[8].mxu1 }
 0x462   : > { %v3355_v18 = vadd.f32 %v3354_v12, %v7531_v37  ;;  %v3356_v19 = vpop.f32.mrb[9].mxu1 }
 0x463   : > { %v3357_v20 = vadd.f32 %v3356_v19, %v7535_v7  ;;  %v3358_v33 = vpop.f32.mrb[10].mxu1  ;;  %5352 = vmatprep.mubr.msk.bf16.mxu0 %vm1418_vm3, %v3656_v38 }
 0x464   : > { %v3359_v41 = vadd.f32 %v3358_v33, %v7531_v37  ;;  %v3360_v57 = vpop.f32.mrb[11].mxu1  ;;  %4152 = vmatmul.mubr.bf16.gmra.mrb[4].mxu0 %v3655_v9  ;;  %v3565_v25 = vmul.f32 %v3355_v18, %v6642_v44 }
 0x465   : > { %v3361_v0 = vadd.f32 %v3360_v57, %v7535_v7  ;;  %v3566_v43 = vmul.f32 %v3357_v20, %v6629_v35  ;;  %v9198_v20 = vld [vmem:[#allocation96_spill] sm:$0xff] }
 0x466   : > { %v3567_v46 = vmul.f32 %v3359_v41, %v6646_v51 }
 0x467   : > { %v3568_v28 = vmul.f32 %v3361_v0, %v9197_v34  ;;  %v9199_v0 = vld [vmem:[#allocation97_spill] sm:$0xff] }
 0x468   : > { %v3657_v6 = vpack.c.bf16 %v3567_v46, %v3565_v25  ;;  %v9200_v46 = vld [vmem:[#allocation94_spill] sm:$0xff] }
 0x469   : > { %v3658_v24 = vpack.c.bf16 %v3568_v28, %v3566_v43  ;;  %v3364_v12 = vpop.f32.mrb[12].mxu1  ;;  %v9201_v28 = vld [vmem:[#allocation95_spill] sm:$0xff] }
 0x46a   : > { %v3365_v19 = vadd.f32 %v3364_v12, %v7531_v37  ;;  %v3366_v38 = vpop.f32.mrb[13].mxu1 }
 0x46b   : > { %v3367_v33 = vadd.f32 %v3366_v38, %v7535_v7  ;;  %v3368_v30 = vpop.f32.mrb[14].mxu1  ;;  %5353 = vmatprep.mubr.msk.bf16.mxu0 %vm1418_vm3, %v3658_v24 }
 0x46c   : > { %v3369_v9 = vadd.f32 %v3368_v30, %v7531_v37  ;;  %v3370_v18 = vpop.f32.mrb[15].mxu1  ;;  %4162 = vmatmul.mubr.bf16.gmra.mrb[8].mxu0 %v3657_v6  ;;  %v3569_v57 = vmul.f32 %v3365_v19, %v9198_v20 }
 0x46d   : > { %v3371_v41 = vadd.f32 %v3370_v18, %v7535_v7  ;;  %v3570_v43 = vmul.f32 %v3367_v33, %v9200_v46  ;;  %v9202_v33 = vld [vmem:[#allocation100_spill] sm:$0xff] }
 0x46e   : > { %v3571_v25 = vmul.f32 %v3369_v9, %v9199_v0 }
 0x46f   : > { %v3572_v12 = vmul.f32 %v3371_v41, %v9201_v28  ;;  %v9203_v41 = vld [vmem:[#allocation101_spill] sm:$0xff] }
 0x470   : > { %v3659_v34 = vpack.c.bf16 %v3571_v25, %v3569_v57  ;;  %v9204_v25 = vld [vmem:[#allocation98_spill] sm:$0xff] }
 0x471   : > { %v3660_v51 = vpack.c.bf16 %v3572_v12, %v3570_v43  ;;  %v3374_v38 = vpop.f32.mrb[16].mxu1  ;;  %v9205_v12 = vld [vmem:[#allocation99_spill] sm:$0xff] }
 0x472   : > { %v3375_v35 = vadd.f32 %v3374_v38, %v7531_v37  ;;  %v3376_v24 = vpop.f32.mrb[17].mxu1 }
 0x473   : > { %v3377_v30 = vadd.f32 %v3376_v24, %v7535_v7  ;;  %v3378_v44 = vpop.f32.mrb[18].mxu1  ;;  %5354 = vmatprep.mubr.msk.bf16.mxu0 %vm1418_vm3, %v3660_v51 }
 0x474   : > { %v3379_v6 = vadd.f32 %v3378_v44, %v7531_v37  ;;  %v3380_v19 = vpop.f32.mrb[19].mxu1  ;;  %4172 = vmatmul.mubr.bf16.gmra.mrb[12].mxu0 %v3659_v34  ;;  %v3573_v18 = vmul.f32 %v3375_v35, %v9202_v33 }
 0x475   : > { %v3381_v9 = vadd.f32 %v3380_v19, %v7535_v7  ;;  %v3574_v43 = vmul.f32 %v3377_v30, %v9204_v25  ;;  %v9206_v30 = vld [vmem:[#allocation104_spill] sm:$0xff] }
 0x476   : > { %v3575_v57 = vmul.f32 %v3379_v6, %v9203_v41 }
 0x477   : > { %v3576_v38 = vmul.f32 %v3381_v9, %v9205_v12  ;;  %v9207_v9 = vld [vmem:[#allocation105_spill] sm:$0xff] }
 0x478   : > { %v3661_v28 = vpack.c.bf16 %v3575_v57, %v3573_v18  ;;  %v9208_v57 = vld [vmem:[#allocation102_spill] sm:$0xff] }
 0x479   : > { %v3662_v0 = vpack.c.bf16 %v3576_v38, %v3574_v43  ;;  %v3384_v24 = vpop.f32.mrb[20].mxu1  ;;  %v9209_v38 = vld [vmem:[#allocation103_spill] sm:$0xff] }
 0x47a   : > { %v3385_v46 = vadd.f32 %v3384_v24, %v7531_v37  ;;  %v3386_v51 = vpop.f32.mrb[21].mxu1 }
 0x47b   : > { %v3387_v44 = vadd.f32 %v3386_v51, %v7535_v7  ;;  %v3388_v20 = vpop.f32.mrb[22].mxu1  ;;  %5355 = vmatprep.mubr.msk.bf16.mxu0 %vm1418_vm3, %v3662_v0 }
 0x47c   : > { %v3389_v34 = vadd.f32 %v3388_v20, %v7531_v37  ;;  %v3390_v35 = vpop.f32.mrb[23].mxu1  ;;  %4182 = vmatmul.mubr.bf16.gmra.mrb[16].mxu0 %v3661_v28  ;;  %v3577_v19 = vmul.f32 %v3385_v46, %v9206_v30 }
 0x47d   : > { %v3391_v6 = vadd.f32 %v3390_v35, %v7535_v7  ;;  %v3578_v43 = vmul.f32 %v3387_v44, %v9208_v57  ;;  %v9210_v44 = vld [vmem:[#allocation108_spill] sm:$0xff] }
 0x47e   : > { %v3579_v18 = vmul.f32 %v3389_v34, %v9207_v9 }
 0x47f   : > { %v3580_v24 = vmul.f32 %v3391_v6, %v9209_v38  ;;  %v9211_v6 = vld [vmem:[#allocation109_spill] sm:$0xff] }
 0x480   : > { %v3663_v12 = vpack.c.bf16 %v3579_v18, %v3577_v19  ;;  %v9212_v18 = vld [vmem:[#allocation106_spill] sm:$0xff] }
 0x481   : > { %v3664_v41 = vpack.c.bf16 %v3580_v24, %v3578_v43  ;;  %v3394_v51 = vpop.f32.mrb[24].mxu1  ;;  %v9213_v24 = vld [vmem:[#allocation107_spill] sm:$0xff] }
 0x482   : > { %v3395_v25 = vadd.f32 %v3394_v51, %v7531_v37  ;;  %v3396_v0 = vpop.f32.mrb[25].mxu1 }
 0x483   : > { %v3397_v20 = vadd.f32 %v3396_v0, %v7535_v7  ;;  %v3398_v33 = vpop.f32.mrb[26].mxu1  ;;  %5356 = vmatprep.mubr.msk.bf16.mxu0 %vm1418_vm3, %v3664_v41 }
 0x484   : > { %v3399_v28 = vadd.f32 %v3398_v33, %v7531_v37  ;;  %v3400_v46 = vpop.f32.mrb[27].mxu1  ;;  %4192 = vmatmul.mubr.bf16.gmra.mrb[20].mxu0 %v3663_v12  ;;  %v3581_v35 = vmul.f32 %v3395_v25, %v9210_v44 }
 0x485   : > { %v3401_v34 = vadd.f32 %v3400_v46, %v7535_v7  ;;  %v3582_v43 = vmul.f32 %v3397_v20, %v9212_v18  ;;  %v9214_v20 = vld [vmem:[#allocation112_spill] sm:$0xff] }
 0x486   : > { %v3583_v19 = vmul.f32 %v3399_v28, %v9211_v6 }
 0x487   : > { %v3584_v51 = vmul.f32 %v3401_v34, %v9213_v24  ;;  %v9215_v34 = vld [vmem:[#allocation113_spill] sm:$0xff] }
 0x488   : > { %v3665_v38 = vpack.c.bf16 %v3583_v19, %v3581_v35  ;;  %v9216_v19 = vld [vmem:[#allocation110_spill] sm:$0xff] }
 0x489   : > { %v3666_v9 = vpack.c.bf16 %v3584_v51, %v3582_v43  ;;  %v3404_v0 = vpop.f32.mrb[28].mxu1  ;;  %v9217_v51 = vld [vmem:[#allocation111_spill] sm:$0xff] }
 0x48a   : > { %v3405_v57 = vadd.f32 %v3404_v0, %v7531_v37  ;;  %v3406_v41 = vpop.f32.mrb[29].mxu1 }
 0x48b   : > { %v3407_v33 = vadd.f32 %v3406_v41, %v7535_v7  ;;  %v3408_v30 = vpop.f32.mrb[30].mxu1  ;;  %5357 = vmatprep.mubr.msk.bf16.mxu0 %vm1418_vm3, %v3666_v9 }
 0x48c   : > { %v3409_v12 = vadd.f32 %v3408_v30, %v7531_v37  ;;  %v3410_v25 = vpop.f32.mrb[31].mxu1  ;;  %4202 = vmatmul.mubr.bf16.gmra.mrb[24].mxu0 %v3665_v38  ;;  %v3585_v46 = vmul.f32 %v3405_v57, %v9214_v20 }
 0x48d   : > { %v3411_v28 = vadd.f32 %v3410_v25, %v7535_v7  ;;  %v3586_v43 = vmul.f32 %v3407_v33, %v9216_v19  ;;  %v9218_v33 = vld [vmem:[#allocation116_spill] sm:$0xff] }
 0x48e   : > { %v3587_v35 = vmul.f32 %v3409_v12, %v9215_v34 }
 0x48f   : > { %v3588_v0 = vmul.f32 %v3411_v28, %v9217_v51  ;;  %v9219_v28 = vld [vmem:[#allocation117_spill] sm:$0xff] }
 0x490   : > { %v3667_v24 = vpack.c.bf16 %v3587_v35, %v3585_v46  ;;  %v9220_v35 = vld [vmem:[#allocation114_spill] sm:$0xff] }
 0x491   : > { %v3668_v6 = vpack.c.bf16 %v3588_v0, %v3586_v43  ;;  %v3414_v41 = vpop.f32.mrb[32].mxu1  ;;  %v9221_v0 = vld [vmem:[#allocation115_spill] sm:$0xff] }
 0x492   : > { %v3415_v18 = vadd.f32 %v3414_v41, %v7531_v37  ;;  %v3416_v9 = vpop.f32.mrb[33].mxu1 }
 0x493   : > { %v3417_v30 = vadd.f32 %v3416_v9, %v7535_v7  ;;  %v3418_v44 = vpop.f32.mrb[34].mxu1  ;;  %5358 = vmatprep.mubr.msk.bf16.mxu0 %vm1418_vm3, %v3668_v6 }
 0x494   : > { %v3419_v38 = vadd.f32 %v3418_v44, %v7531_v37  ;;  %v3420_v57 = vpop.f32.mrb[35].mxu1  ;;  %4212 = vmatmul.mubr.bf16.gmra.mrb[28].mxu0 %v3667_v24  ;;  %v3589_v25 = vmul.f32 %v3415_v18, %v9218_v33 }
 0x495   : > { %v3421_v12 = vadd.f32 %v3420_v57, %v7535_v7  ;;  %v3590_v43 = vmul.f32 %v3417_v30, %v9220_v35  ;;  %v9222_v30 = vld [vmem:[#allocation120_spill] sm:$0xff] }
 0x496   : > { %v3591_v46 = vmul.f32 %v3419_v38, %v9219_v28 }
 0x497   : > { %v3592_v41 = vmul.f32 %v3421_v12, %v9221_v0  ;;  %v9223_v12 = vld [vmem:[#allocation121_spill] sm:$0xff] }
 0x498   : > { %v3669_v51 = vpack.c.bf16 %v3591_v46, %v3589_v25  ;;  %v9224_v46 = vld [vmem:[#allocation118_spill] sm:$0xff] }
 0x499   : > { %v3670_v34 = vpack.c.bf16 %v3592_v41, %v3590_v43  ;;  %v3424_v9 = vpop.f32.mrb[36].mxu1  ;;  %v9225_v41 = vld [vmem:[#allocation119_spill] sm:$0xff] }
 0x49a   : > { %v3425_v19 = vadd.f32 %v3424_v9, %v7531_v37  ;;  %v3426_v6 = vpop.f32.mrb[37].mxu1 }
 0x49b   : > { %v3427_v44 = vadd.f32 %v3426_v6, %v7535_v7  ;;  %v3428_v20 = vpop.f32.mrb[38].mxu1  ;;  %5359 = vmatprep.mubr.msk.bf16.mxu0 %vm1418_vm3, %v3670_v34 }
 0x49c   : > { %v3429_v24 = vadd.f32 %v3428_v20, %v7531_v37  ;;  %v3430_v18 = vpop.f32.mrb[39].mxu1  ;;  %4222 = vmatmul.mubr.bf16.gmra.mrb[32].mxu0 %v3669_v51  ;;  %v3593_v57 = vmul.f32 %v3425_v19, %v9222_v30 }
 0x49d   : > { %v3431_v38 = vadd.f32 %v3430_v18, %v7535_v7  ;;  %v3594_v43 = vmul.f32 %v3427_v44, %v9224_v46  ;;  %v9226_v44 = vld [vmem:[#allocation124_spill] sm:$0xff] }
 0x49e   : > { %v3595_v25 = vmul.f32 %v3429_v24, %v9223_v12 }
 0x49f   : > { %v3596_v9 = vmul.f32 %v3431_v38, %v9225_v41  ;;  %v9227_v38 = vld [vmem:[#allocation125_spill] sm:$0xff] }
 0x4a0   : > { %v3671_v0 = vpack.c.bf16 %v3595_v25, %v3593_v57  ;;  %v9228_v25 = vld [vmem:[#allocation122_spill] sm:$0xff] }
 0x4a1   : > { %v3672_v28 = vpack.c.bf16 %v3596_v9, %v3594_v43  ;;  %v3434_v6 = vpop.f32.mrb[40].mxu1  ;;  %v9229_v9 = vld [vmem:[#allocation123_spill] sm:$0xff] }
 0x4a2   : > { %v3435_v35 = vadd.f32 %v3434_v6, %v7531_v37  ;;  %v3436_v34 = vpop.f32.mrb[41].mxu1 }
 0x4a3   : > { %v3437_v20 = vadd.f32 %v3436_v34, %v7535_v7  ;;  %v3438_v33 = vpop.f32.mrb[42].mxu1  ;;  %5360 = vmatprep.mubr.msk.bf16.mxu0 %vm1418_vm3, %v3672_v28  ;;  %v3710_v28 = vld [vmem:[%s8545_s10] sm:$0x3] }
 0x4a4   : > { %v3439_v51 = vadd.f32 %v3438_v33, %v7531_v37  ;;  %v3440_v19 = vpop.f32.mrb[43].mxu1  ;;  %4232 = vmatmul.mubr.bf16.gmra.mrb[36].mxu0 %v3671_v0  ;;  %v3597_v18 = vmul.f32 %v3435_v35, %v9226_v44 }
 0x4a5   : > { %v3441_v24 = vadd.f32 %v3440_v19, %v7535_v7  ;;  %v3598_v43 = vmul.f32 %v3437_v20, %v9228_v25  ;;  %v9235_v25 = vld [vmem:[#allocation127_spill] sm:$0xff] }
 0x4a6   : > { %v3599_v57 = vmul.f32 %v3439_v51, %v9227_v38  ;;  %v9230_v51 = vld [vmem:[#allocation11_spill] sm:$0xff] }
 0x4a7   : > { %v3600_v6 = vmul.f32 %v3441_v24, %v9229_v9  ;;  %v7828_v24 = vrot.slane %v3710_v28, %v9230_v51  ;;  %v9233_v9 = vld [vmem:[#allocation62_spill] sm:$0xff] }
 0x4a8   : > { %v3673_v41 = vpack.c.bf16 %v3599_v57, %v3597_v18  ;;  %v9231_v57 = vld [vmem:[#allocation10_spill] sm:$0xff] }
 0x4a9   : > { %v3674_v12 = vpack.c.bf16 %v3600_v6, %v3598_v43  ;;  %v3444_v34 = vpop.f32.mrb[44].mxu1  ;;  %v7832_v43 = vrot.slane %v3710_v28, %v9231_v57  ;;  %v9232_v6 = vld [vmem:[#allocation60_spill] sm:$0xff] }
 0x4aa   : > { %v3445_v33 = vadd.f32 %v3444_v34, %v7531_v37  ;;  %v3446_v0 = vpop.f32.mrb[45].mxu1 }
 0x4ab   : > { %v3447_v19 = vadd.f32 %v3446_v0, %v7535_v7  ;;  %v3448_v46 = vpop.f32.mrb[46].mxu1  ;;  %5361 = vmatprep.mubr.msk.bf16.mxu0 %vm1418_vm3, %v3674_v12  ;;  %v4430_v12 = vld [vmem:[%s8546_s11] sm:$0x3] }
 0x4ac   : > { %v3449_v35 = vadd.f32 %v3448_v46, %v7531_v37  ;;  %v3450_v20 = vpop.f32.mrb[47].mxu1  ;;  %4242 = vmatmul.mubr.bf16.gmra.mrb[40].mxu0 %v3673_v41  ;;  %v3601_v34 = vmul.f32 %v3445_v33, %v9232_v6  ;;  %v9234_v0 = vld [vmem:[#allocation126_spill] sm:$0xff] }
 0x4ad   : > { %v3451_v18 = vadd.f32 %v3450_v20, %v7535_v7  ;;  %v3602_v46 = vmul.f32 %v3447_v19, %v9234_v0 }
 0x4ae   : > { %v3603_v38 = vmul.f32 %v3449_v35, %v9233_v9  ;;  %v7844_v35 = vrot.slane %v4430_v12, %v9231_v57  ;;  %v9236_v9 = vld [vmem:[#allocation15_spill] sm:$0xff]  ;;  %v9237_v57 = vld [vmem:[#allocation12_spill] sm:$0xff] }
 0x4af   : > { %v3604_v41 = vmul.f32 %v3451_v18, %v9235_v25  ;;  %v3983_v44 = vpop.f32.mrb[192].mxu0 }
 0x4b0   : > { %v3675_v30 = vpack.c.bf16 %v3603_v38, %v3601_v34  ;;  %v3984_v52 = vadd.f32 %v3983_v44, %v7828_v24  ;;  %v3985_v20 = vpop.f32.mrb[193].mxu0  ;;  %v7850_v38 = vrot.slane %v4430_v12, %v9230_v51 }
 0x4b1   : > { %v3676_v50 = vpack.c.bf16 %v3604_v41, %v3602_v46  ;;  %v3986_v28 = vadd.f32 %v3985_v20, %v7832_v43  ;;  %v3454_v54 = vpop.f32.mrb[48].mxu1  ;;  %v3987_v33 = vpop.f32.mrb[194].mxu0  ;;  %v9238_v20 = vld [vmem:[#allocation14_spill] sm:$0xff] }
 0x4b2   : > { %v4302_v6 = vmul.f32 %v3984_v52, %v9236_v9  ;;  %v3455_v3 = vadd.f32 %v3454_v54, %v7531_v37  ;;  %v3988_v19 = vadd.f32 %v3987_v33, %v7828_v24  ;;  %v3456_v18 = vpop.f32.mrb[49].mxu1  ;;  %v3989_v25 = vpop.f32.mrb[195].mxu0 }
 0x4b3   : > { %v4303_v44 = vmul.f32 %v3986_v28, %v9144_v31  ;;  %v3457_v34 = vadd.f32 %v3456_v18, %v7535_v7  ;;  %v3990_v46 = vadd.f32 %v3989_v25, %v7832_v43  ;;  %v3458_v41 = vpop.f32.mrb[50].mxu1  ;;  %5362 = vmatprep.mubr.msk.bf16.mxu0 %vm1418_vm3, %v3676_v50  ;;  %v9239_v18 = vld [vmem:[#allocation72_spill] sm:$0xff] }
 0x4b4   : > { %v4304_v52 = vmul.f32 %v3988_v19, %v9237_v57  ;;  %v3459_v54 = vadd.f32 %v3458_v41, %v7531_v37  ;;  %v3460_v9 = vpop.f32.mrb[51].mxu1  ;;  %4252 = vmatmul.mubr.bf16.gmra.mrb[44].mxu0 %v3675_v30  ;;  %v3605_v31 = vmul.f32 %v3455_v3, %v6893_v2  ;;  %v4442_v25 = vmul.f32 %v7850_v38, %v4302_v6 }
 0x4b5   : > { %v4305_v33 = vmul.f32 %v3990_v46, %v9238_v20  ;;  %v3461_v51 = vadd.f32 %v3460_v9, %v7535_v7  ;;  %v4443_v12 = vmul.f32 %v7844_v35, %v4303_v44  ;;  %v3606_v50 = vmul.f32 %v3457_v34, %v9051_v32 }
 0x4b6   : > { %v3607_v28 = vmul.f32 %v3459_v54, %v9050_v61  ;;  %v4444_v3 = vmul.f32 %v7850_v38, %v4304_v52 }
 0x4b7   : > { %v3608_v19 = vmul.f32 %v3461_v51, %v9239_v18  ;;  %v3993_v57 = vpop.f32.mrb[196].mxu0  ;;  %v4570_v41 = vsel %vm1418_vm3, %v4443_v12, 0.0  ;;  %v4445_v30 = vmul.f32 %v7844_v35, %v4305_v33  ;;  %v9240_v51 = vld [vmem:[#allocation19_spill] sm:$0xff] }
 0x4b8   : > { %v3677_v46 = vpack.c.bf16 %v3607_v28, %v3605_v31  ;;  %v3994_v9 = vadd.f32 %v3993_v57, %v7828_v24  ;;  %v3995_v20 = vpop.f32.mrb[197].mxu0  ;;  %v4571_v44 = vadd.f32 %v4570_v41, %v4442_v25  ;;  %v9241_v41 = vld [vmem:[#allocation16_spill] sm:$0xff] }
 0x4b9   : > { %v3678_v2 = vpack.c.bf16 %v3608_v19, %v3606_v50  ;;  %v3996_v54 = vadd.f32 %v3995_v20, %v7832_v43  ;;  %v3464_v6 = vpop.f32.mrb[52].mxu1  ;;  %v3997_v61 = vpop.f32.mrb[198].mxu0  ;;  %v4574_v34 = vsel %vm1418_vm3, %v4445_v30, 0.0 }
 0x4ba   : > { %v4306_v18 = vmul.f32 %v3994_v9, %v9240_v51  ;;  %v3465_v12 = vadd.f32 %v3464_v6, %v7531_v37  ;;  %v3998_v33 = vadd.f32 %v3997_v61, %v7828_v24  ;;  %v3466_v31 = vpop.f32.mrb[53].mxu1  ;;  %v3999_v28 = vpop.f32.mrb[199].mxu0  ;;  %4572 = vadd.xlane.f32.xlu0 %v4571_v44  ;;  %v4575_v57 = vadd.f32 %v4574_v34, %v4444_v3  ;;  %v9242_v61 = vld [vmem:[#allocation18_spill] sm:$0xff]  ;;  %v9244_v34 = vld [vmem:[#allocation77_spill] sm:$0xff] }
 0x4bb   : > { %v4307_v25 = vmul.f32 %v3996_v54, %v9054_v17  ;;  %v3467_v52 = vadd.f32 %v3466_v31, %v7535_v7  ;;  %v4000_v50 = vadd.f32 %v3999_v28, %v7832_v43  ;;  %v3468_v19 = vpop.f32.mrb[54].mxu1  ;;  %5363 = vmatprep.mubr.msk.bf16.mxu0 %vm1418_vm3, %v3678_v2  ;;  %v9243_v17 = vld [vmem:[#allocation74_spill] sm:$0xff]  ;;  %v9245_v2 = vld [vmem:[#allocation75_spill] sm:$0xff] }
 0x4bc   : > { %v4308_v30 = vmul.f32 %v3998_v33, %v9241_v41  ;;  %v3469_v9 = vadd.f32 %v3468_v19, %v7531_v37  ;;  %v3470_v20 = vpop.f32.mrb[55].mxu1  ;;  %4262 = vmatmul.mubr.bf16.gmra.mrb[48].mxu0 %v3677_v46  ;;  %v3609_v54 = vmul.f32 %v3465_v12, %v9243_v17  ;;  %v4446_v31 = vmul.f32 %v7850_v38, %v4306_v18  ;;  %v9246_v33 = vld [vmem:[#allocation80_spill] sm:$0xff] }
 0x4bd   : > { %v4309_v6 = vmul.f32 %v4000_v50, %v9242_v61  ;;  %v3471_v44 = vadd.f32 %v3470_v20, %v7535_v7  ;;  %v4447_v3 = vmul.f32 %v7844_v35, %v4307_v25  ;;  %v3610_v28 = vmul.f32 %v3467_v52, %v9245_v2 }
 0x4be   : > { %v3611_v51 = vmul.f32 %v3469_v9, %v9244_v34  ;;  %4576 = vadd.xlane.f32.xlu0 %v4575_v57  ;;  %v4448_v12 = vmul.f32 %v7850_v38, %v4308_v30 }
 0x4bf   : > { %v3612_v41 = vmul.f32 %v3471_v44, %v9246_v33  ;;  %v4003_v19 = vpop.f32.mrb[200].mxu0  ;;  %v4578_v46 = vsel %vm1418_vm3, %v4447_v3, 0.0  ;;  %v4449_v50 = vmul.f32 %v7844_v35, %v4309_v6  ;;  %v9247_v44 = vld [vmem:[#allocation23_spill] sm:$0xff] }
 0x4c0   : > { %v3679_v61 = vpack.c.bf16 %v3611_v51, %v3609_v54  ;;  %v4004_v20 = vadd.f32 %v4003_v19, %v7828_v24  ;;  %v4005_v25 = vpop.f32.mrb[201].mxu0  ;;  %v4579_v32 = vadd.f32 %v4578_v46, %v4446_v31  ;;  %v9248_v46 = vld [vmem:[#allocation20_spill] sm:$0xff] }
 0x4c1   : > { %v3680_v9 = vpack.c.bf16 %v3612_v41, %v3610_v28  ;;  %v4006_v57 = vadd.f32 %v4005_v25, %v7832_v43  ;;  %v3474_v18 = vpop.f32.mrb[56].mxu1  ;;  %v4007_v34 = vpop.f32.mrb[202].mxu0  ;;  %v4582_v52 = vsel %vm1418_vm3, %v4449_v50, 0.0 }
 0x4c2   : > { %v4310_v33 = vmul.f32 %v4004_v20, %v9247_v44  ;;  %v3475_v3 = vadd.f32 %v3474_v18, %v7531_v37  ;;  %v4008_v6 = vadd.f32 %v4007_v34, %v7828_v24  ;;  %v3476_v54 = vpop.f32.mrb[57].mxu1  ;;  %v4009_v51 = vpop.f32.mrb[203].mxu0  ;;  %4580 = vadd.xlane.f32.xlu1 %v4579_v32  ;;  %v4583_v19 = vadd.f32 %v4582_v52, %v4448_v12  ;;  %v9249_v34 = vld [vmem:[#allocation22_spill] sm:$0xff] }
 0x4c3   : > { %v4311_v31 = vmul.f32 %v4006_v57, %v8967_v55  ;;  %v3477_v30 = vadd.f32 %v3476_v54, %v7535_v7  ;;  %v4010_v28 = vadd.f32 %v4009_v51, %v7832_v43  ;;  %v3478_v41 = vpop.f32.mrb[58].mxu1  ;;  %5364 = vmatprep.mubr.msk.bf16.mxu0 %vm1418_vm3, %v3680_v9 }
 0x4c4   : > { %v4312_v50 = vmul.f32 %v4008_v6, %v9248_v46  ;;  %v3479_v20 = vadd.f32 %v3478_v41, %v7531_v37  ;;  %v3480_v25 = vpop.f32.mrb[59].mxu1  ;;  %4272 = vmatmul.mubr.bf16.gmra.mrb[52].mxu0 %v3679_v61  ;;  %v3613_v55 = vmul.f32 %v3475_v3, %v9154_v4  ;;  %v4450_v52 = vmul.f32 %v7850_v38, %v4310_v33 }
 0x4c5   : > { %v4313_v18 = vmul.f32 %v4010_v28, %v9249_v34  ;;  %v3481_v32 = vadd.f32 %v3480_v25, %v7535_v7  ;;  %v4451_v12 = vmul.f32 %v7844_v35, %v4311_v31  ;;  %v3614_v9 = vmul.f32 %v3477_v30, %v9156_v16 }
 0x4c6   : > { %v3615_v57 = vmul.f32 %v3479_v20, %v9155_v1  ;;  %4584 = vadd.xlane.f32.xlu1 %v4583_v19  ;;  %v4452_v3 = vmul.f32 %v7850_v38, %v4312_v50 }
 0x4c7   : > { %v3616_v44 = vmul.f32 %v3481_v32, %v9157_v13  ;;  %v4013_v6 = vpop.f32.mrb[204].mxu0  ;;  %v4586_v61 = vsel %vm1418_vm3, %v4451_v12, 0.0  ;;  %v4453_v54 = vmul.f32 %v7844_v35, %v4313_v18 }
 0x4c8   : > { %v3681_v51 = vpack.c.bf16 %v3615_v57, %v3613_v55  ;;  %v4014_v28 = vadd.f32 %v4013_v6, %v7828_v24  ;;  %v4015_v31 = vpop.f32.mrb[205].mxu0  ;;  %v4587_v41 = vadd.f32 %v4586_v61, %v4450_v52 }
 0x4c9   : > { %v3682_v46 = vpack.c.bf16 %v3616_v44, %v3614_v9  ;;  %v4016_v19 = vadd.f32 %v4015_v31, %v7832_v43  ;;  %v3484_v33 = vpop.f32.mrb[60].mxu1  ;;  %v4017_v20 = vpop.f32.mrb[206].mxu0  ;;  %v4590_v30 = vsel %vm1418_vm3, %v4453_v54, 0.0  ;;  %v9250_v44 = vld [vmem:[#allocation24_spill] sm:$0xff]  ;;  %v9251_v31 = vld [vmem:[#allocation26_spill] sm:$0xff] }
 0x4ca   : > { %v3485_v25 = vadd.f32 %v3484_v33, %v7531_v37  ;;  %v4018_v34 = vadd.f32 %v4017_v20, %v7828_v24  ;;  %v3486_v32 = vpop.f32.mrb[61].mxu1  ;;  %v4019_v18 = vpop.f32.mrb[207].mxu0  ;;  %4588 = vadd.xlane.f32.xlu0 %v4587_v41  ;;  %v4591_v12 = vadd.f32 %v4590_v30, %v4452_v3  ;;  %v4314_v55 = vmul.f32 %v4014_v28, %v9158_v58 }
 0x4cb   : > { %v4315_v57 = vmul.f32 %v4016_v19, %v9160_v40  ;;  %v3487_v50 = vadd.f32 %v3486_v32, %v7535_v7  ;;  %v4020_v52 = vadd.f32 %v4019_v18, %v7832_v43  ;;  %v3488_v9 = vpop.f32.mrb[62].mxu1  ;;  %5365 = vmatprep.mubr.msk.bf16.mxu0 %vm1418_vm3, %v3682_v46 }
 0x4cc   : > { %v4316_v6 = vmul.f32 %v4018_v34, %v9250_v44  ;;  %v3489_v61 = vadd.f32 %v3488_v9, %v7531_v37  ;;  %v3490_v54 = vpop.f32.mrb[63].mxu1  ;;  %4282 = vmatmul.mubr.bf16.gmra.mrb[56].mxu0 %v3681_v51  ;;  %4592 = vadd.xlane.f32.xlu1 %v4591_v12  ;;  %v3617_v40 = vmul.f32 %v3485_v25, %v9066_v42 }
 0x4cd   : > { %v4317_v41 = vmul.f32 %v4020_v52, %v9251_v31  ;;  %v3491_v58 = vadd.f32 %v3490_v54, %v7535_v7  ;;  %v4455_v3 = vmul.f32 %v7844_v35, %v4315_v57  ;;  %v3618_v19 = vmul.f32 %v3487_v50, %v9068_v53 }
 0x4ce   : > { %v3619_v28 = vmul.f32 %v3489_v61, %v9067_v47  ;;  %v4454_v37 = vmul.f32 %v7850_v38, %v4314_v55  ;;  %v4456_v25 = vmul.f32 %v7850_v38, %v4316_v6 }
 0x4cf   : > { %v3620_v46 = vmul.f32 %v3491_v58, %v9069_v15  ;;  %v4023_v33 = vpop.f32.mrb[208].mxu0  ;;  %v4457_v51 = vmul.f32 %v7844_v35, %v4317_v41  ;;  %v4594_v7 = vsel %vm1418_vm3, %v4455_v3, 0.0 }
 0x4d0   : > { %v3683_v20 = vpack.c.bf16 %v3619_v28, %v3617_v40  ;;  %v4024_v30 = vadd.f32 %v4023_v33, %v7828_v24  ;;  %v4025_v34 = vpop.f32.mrb[209].mxu0  ;;  %v4595_v57 = vadd.f32 %v4594_v7, %v4454_v37  ;;  %v9252_v37 = vld [vmem:[#allocation35_spill] sm:$0xff]  ;;  %v9253_v7 = vld [vmem:[#allocation33_spill] sm:$0xff] }
 0x4d1   : > { %v3684_v32 = vpack.c.bf16 %v3620_v46, %v3618_v19  ;;  %v4026_v18 = vadd.f32 %v4025_v34, %v7832_v43  ;;  %v4027_v12 = vpop.f32.mrb[210].mxu0  ;;  %v4598_v50 = vsel %vm1418_vm3, %v4457_v51, 0.0 }
 0x4d2   : > { %v4318_v52 = vmul.f32 %v4024_v30, %v9070_v10  ;;  %v4028_v55 = vadd.f32 %v4027_v12, %v7828_v24  ;;  %v4029_v9 = vpop.f32.mrb[211].mxu0  ;;  %v4599_v44 = vadd.f32 %v4598_v50, %v4456_v25  ;;  %4596 = vadd.xlane.f32.xlu0 %v4595_v57  ;;  %v9255_v57 = vld [vmem:[#allocation34_spill] sm:$0xff] }
 0x4d3   : > { %v4319_v61 = vmul.f32 %v4026_v18, %v9162_v60  ;;  %v4030_v54 = vadd.f32 %v4029_v9, %v7832_v43  ;;  %5366 = vmatprep.mubr.msk.bf16.mxu0 %vm1418_vm3, %v3684_v32  ;;  %v9254_v18 = vld [vmem:[#allocation32_spill] sm:$0xff] }
 0x4d4   : > { %v4320_v6 = vmul.f32 %v4028_v55, %v9161_v11  ;;  %4292 = vmatmul.mubr.bf16.gmra.mrb[60].mxu0 %v3683_v20  ;;  %4600 = vadd.xlane.f32.xlu1 %v4599_v44  ;;  %v4458_v10 = vmul.f32 %v7850_v38, %v4318_v52 }
 0x4d5   : > { %v4321_v31 = vmul.f32 %v4030_v54, %v9163_v48  ;;  %v4459_v41 = vmul.f32 %v7844_v35, %v4319_v61 }
 0x4d6   : > { %v4460_v46 = vmul.f32 %v7850_v38, %v4320_v6 }
 0x4d7   : > { %v4033_v58 = vpop.f32.mrb[212].mxu0  ;;  %v4602_v40 = vsel %vm1418_vm3, %v4459_v41, 0.0  ;;  %v4461_v60 = vmul.f32 %v7844_v35, %v4321_v31 }
 0x4d8   : > { %v4034_v28 = vadd.f32 %v4033_v58, %v7828_v24  ;;  %v4035_v3 = vpop.f32.mrb[213].mxu0  ;;  %v4603_v19 = vadd.f32 %v4602_v40, %v4458_v10 }
 0x4d9   : > { %v4036_v11 = vadd.f32 %v4035_v3, %v7832_v43  ;;  %v4037_v33 = vpop.f32.mrb[214].mxu0  ;;  %v4606_v48 = vsel %vm1418_vm3, %v4461_v60, 0.0  ;;  %v9256_v60 = vld [vmem:[#allocation39_spill] sm:$0xff] }
 0x4da   : > { %v4322_v51 = vmul.f32 %v4034_v28, %v9252_v37  ;;  %v4038_v20 = vadd.f32 %v4037_v33, %v7828_v24  ;;  %v4039_v30 = vpop.f32.mrb[215].mxu0  ;;  %4604 = vadd.xlane.f32.xlu0 %v4603_v19  ;;  %v4607_v34 = vadd.f32 %v4606_v48, %v4460_v46  ;;  %v9258_v37 = vld [vmem:[#allocation36_spill] sm:$0xff] }
 0x4db   : > { %v4323_v25 = vmul.f32 %v4036_v11, %v9253_v7  ;;  %v4040_v32 = vadd.f32 %v4039_v30, %v7832_v43  ;;  %v9257_v11 = vld [vmem:[#allocation37_spill] sm:$0xff] }
 0x4dc   : > { %v4324_v12 = vmul.f32 %v4038_v20, %v9254_v18  ;;  %4608 = vadd.xlane.f32.xlu1 %v4607_v34  ;;  %v4462_v55 = vmul.f32 %v7850_v38, %v4322_v51  ;;  %v9259_v20 = vld [vmem:[#allocation38_spill] sm:$0xff] }
 0x4dd   : > { %v4325_v50 = vmul.f32 %v4040_v32, %v9255_v57  ;;  %v4463_v52 = vmul.f32 %v7844_v35, %v4323_v25 }
 0x4de   : > { %v4464_v41 = vmul.f32 %v7850_v38, %v4324_v12 }
 0x4df   : > { %v4043_v9 = vpop.f32.mrb[216].mxu0  ;;  %v4610_v44 = vsel %vm1418_vm3, %v4463_v52, 0.0  ;;  %v4465_v61 = vmul.f32 %v7844_v35, %v4325_v50 }
 0x4e0   : > { %v4044_v54 = vadd.f32 %v4043_v9, %v7828_v24  ;;  %v4045_v6 = vpop.f32.mrb[217].mxu0  ;;  %v4611_v31 = vadd.f32 %v4610_v44, %v4462_v55 }
 0x4e1   : > { %v4046_v10 = vadd.f32 %v4045_v6, %v7832_v43  ;;  %v4047_v58 = vpop.f32.mrb[218].mxu0  ;;  %v4614_v40 = vsel %vm1418_vm3, %v4465_v61, 0.0  ;;  %v9260_v61 = vld [vmem:[#allocation43_spill] sm:$0xff] }
 0x4e2   : > { %v4326_v28 = vmul.f32 %v4044_v54, %v9256_v60  ;;  %v4048_v3 = vadd.f32 %v4047_v58, %v7828_v24  ;;  %v4049_v19 = vpop.f32.mrb[219].mxu0  ;;  %4612 = vadd.xlane.f32.xlu0 %v4611_v31  ;;  %v4615_v46 = vadd.f32 %v4614_v40, %v4464_v41  ;;  %v9262_v60 = vld [vmem:[#allocation40_spill] sm:$0xff] }
 0x4e3   : > { %v4327_v33 = vmul.f32 %v4046_v10, %v9257_v11  ;;  %v4050_v48 = vadd.f32 %v4049_v19, %v7832_v43  ;;  %v9261_v10 = vld [vmem:[#allocation41_spill] sm:$0xff] }
 0x4e4   : > { %v4328_v51 = vmul.f32 %v4048_v3, %v9258_v37  ;;  %4616 = vadd.xlane.f32.xlu1 %v4615_v46  ;;  %v4466_v7 = vmul.f32 %v7850_v38, %v4326_v28  ;;  %v9263_v3 = vld [vmem:[#allocation42_spill] sm:$0xff] }
 0x4e5   : > { %v4329_v30 = vmul.f32 %v4050_v48, %v9259_v20  ;;  %v4467_v34 = vmul.f32 %v7844_v35, %v4327_v33 }
 0x4e6   : > { %v4468_v52 = vmul.f32 %v7850_v38, %v4328_v51 }
 0x4e7   : > { %v4053_v25 = vpop.f32.mrb[220].mxu0  ;;  %v4618_v32 = vsel %vm1418_vm3, %v4467_v34, 0.0  ;;  %v4469_v18 = vmul.f32 %v7844_v35, %v4329_v30 }
 0x4e8   : > { %v4054_v12 = vadd.f32 %v4053_v25, %v7828_v24  ;;  %v4055_v57 = vpop.f32.mrb[221].mxu0  ;;  %v4619_v50 = vadd.f32 %v4618_v32, %v4466_v7 }
 0x4e9   : > { %v4056_v55 = vadd.f32 %v4055_v57, %v7832_v43  ;;  %v4057_v9 = vpop.f32.mrb[222].mxu0  ;;  %v4622_v44 = vsel %vm1418_vm3, %v4469_v18, 0.0  ;;  %v9264_v18 = vld [vmem:[#allocation47_spill] sm:$0xff] }
 0x4ea   : > { %v4330_v54 = vmul.f32 %v4054_v12, %v9260_v61  ;;  %v4058_v6 = vadd.f32 %v4057_v9, %v7828_v24  ;;  %v4059_v31 = vpop.f32.mrb[223].mxu0  ;;  %4620 = vadd.xlane.f32.xlu0 %v4619_v50  ;;  %v4623_v41 = vadd.f32 %v4622_v44, %v4468_v52  ;;  %v9266_v61 = vld [vmem:[#allocation44_spill] sm:$0xff] }
 0x4eb   : > { %v4331_v58 = vmul.f32 %v4056_v55, %v9261_v10  ;;  %v4060_v40 = vadd.f32 %v4059_v31, %v7832_v43  ;;  %v9265_v55 = vld [vmem:[#allocation45_spill] sm:$0xff] }
 0x4ec   : > { %v4332_v28 = vmul.f32 %v4058_v6, %v9262_v60  ;;  %4624 = vadd.xlane.f32.xlu1 %v4623_v41  ;;  %v4470_v11 = vmul.f32 %v7850_v38, %v4330_v54  ;;  %v9267_v6 = vld [vmem:[#allocation46_spill] sm:$0xff] }
 0x4ed   : > { %v4333_v19 = vmul.f32 %v4060_v40, %v9263_v3  ;;  %v4471_v46 = vmul.f32 %v7844_v35, %v4331_v58 }
 0x4ee   : > { %v4472_v34 = vmul.f32 %v7850_v38, %v4332_v28 }
 0x4ef   : > { %v4063_v33 = vpop.f32.mrb[224].mxu0  ;;  %v4626_v48 = vsel %vm1418_vm3, %v4471_v46, 0.0  ;;  %v4473_v37 = vmul.f32 %v7844_v35, %v4333_v19 }
 0x4f0   : > { %v4064_v51 = vadd.f32 %v4063_v33, %v7828_v24  ;;  %v4065_v20 = vpop.f32.mrb[225].mxu0  ;;  %v4627_v30 = vadd.f32 %v4626_v48, %v4470_v11 }
 0x4f1   : > { %v4066_v7 = vadd.f32 %v4065_v20, %v7832_v43  ;;  %v4067_v25 = vpop.f32.mrb[226].mxu0  ;;  %v4630_v32 = vsel %vm1418_vm3, %v4473_v37, 0.0 }
 0x4f2   : > { %v4334_v12 = vmul.f32 %v4064_v51, %v9264_v18  ;;  %v4068_v57 = vadd.f32 %v4067_v25, %v7828_v24  ;;  %v4069_v50 = vpop.f32.mrb[227].mxu0  ;;  %4628 = vadd.xlane.f32.xlu0 %v4627_v30  ;;  %v4631_v52 = vadd.f32 %v4630_v32, %v4472_v34  ;;  %v9268_v34 = vld [vmem:[#allocation49_spill] sm:$0xff]  ;;  %v9269_v32 = vld [vmem:[#allocation48_spill] sm:$0xff] }
 0x4f3   : > { %v4335_v9 = vmul.f32 %v4066_v7, %v9265_v55  ;;  %v4070_v44 = vadd.f32 %v4069_v50, %v7832_v43 }
 0x4f4   : > { %v4336_v54 = vmul.f32 %v4068_v57, %v9266_v61  ;;  %4632 = vadd.xlane.f32.xlu1 %v4631_v52  ;;  %v4474_v10 = vmul.f32 %v7850_v38, %v4334_v12  ;;  %v9270_v12 = vld [vmem:[#allocation50_spill] sm:$0xff] }
 0x4f5   : > { %v4337_v31 = vmul.f32 %v4070_v44, %v9267_v6  ;;  %v4475_v41 = vmul.f32 %v7844_v35, %v4335_v9 }
 0x4f6   : > { %v4476_v46 = vmul.f32 %v7850_v38, %v4336_v54 }
 0x4f7   : > { %v4073_v58 = vpop.f32.mrb[228].mxu0  ;;  %v4634_v40 = vsel %vm1418_vm3, %v4475_v41, 0.0  ;;  %v4477_v60 = vmul.f32 %v7844_v35, %v4337_v31 }
 0x4f8   : > { %v4074_v28 = vadd.f32 %v4073_v58, %v7828_v24  ;;  %v4075_v3 = vpop.f32.mrb[229].mxu0  ;;  %v4635_v19 = vadd.f32 %v4634_v40, %v4474_v10  ;;  %v9271_v58 = vld [vmem:[#allocation55_spill] sm:$0xff] }
 0x4f9   : > { %v4076_v11 = vadd.f32 %v4075_v3, %v7832_v43  ;;  %v4077_v33 = vpop.f32.mrb[230].mxu0  ;;  %v4638_v48 = vsel %vm1418_vm3, %v4477_v60, 0.0 }
 0x4fa   : > { %v4338_v37 = vmul.f32 %v4074_v28, %v9179_v21  ;;  %v4078_v51 = vadd.f32 %v4077_v33, %v7828_v24  ;;  %v4079_v20 = vpop.f32.mrb[231].mxu0  ;;  %4636 = vadd.xlane.f32.xlu0 %v4635_v19  ;;  %v4639_v30 = vadd.f32 %v4638_v48, %v4476_v46  ;;  %v9272_v19 = vld [vmem:[#allocation53_spill] sm:$0xff]  ;;  %v9273_v33 = vld [vmem:[#allocation52_spill] sm:$0xff] }
 0x4fb   : > { %v4339_v7 = vmul.f32 %v4076_v11, %v9268_v34  ;;  %v4080_v25 = vadd.f32 %v4079_v20, %v7832_v43 }
 0x4fc   : > { %v4340_v18 = vmul.f32 %v4078_v51, %v9269_v32  ;;  %4640 = vadd.xlane.f32.xlu1 %v4639_v30  ;;  %v4478_v52 = vmul.f32 %v7850_v38, %v4338_v37  ;;  %v9274_v37 = vld [vmem:[#allocation54_spill] sm:$0xff] }
 0x4fd   : > { %v4341_v57 = vmul.f32 %v4080_v25, %v9270_v12  ;;  %v4479_v50 = vmul.f32 %v7844_v35, %v4339_v7 }
 0x4fe   : > { %v4480_v6 = vmul.f32 %v7850_v38, %v4340_v18 }
 0x4ff   : > { %v4083_v55 = vpop.f32.mrb[232].mxu0  ;;  %v4642_v21 = vsel %vm1418_vm3, %v4479_v50, 0.0  ;;  %v4481_v9 = vmul.f32 %v7844_v35, %v4341_v57 }
 0x500   : > { %v4084_v44 = vadd.f32 %v4083_v55, %v7828_v24  ;;  %v4085_v61 = vpop.f32.mrb[233].mxu0  ;;  %v4643_v54 = vadd.f32 %v4642_v21, %v4478_v52 }
 0x501   : > { %v4086_v31 = vadd.f32 %v4085_v61, %v7832_v43  ;;  %v4087_v41 = vpop.f32.mrb[234].mxu0  ;;  %v4646_v10 = vsel %vm1418_vm3, %v4481_v9, 0.0 }
 0x502   : > { %v4342_v40 = vmul.f32 %v4084_v44, %v9271_v58  ;;  %v4088_v60 = vadd.f32 %v4087_v41, %v7828_v24  ;;  %v4089_v28 = vpop.f32.mrb[235].mxu0  ;;  %4644 = vadd.xlane.f32.xlu0 %v4643_v54  ;;  %v4647_v3 = vadd.f32 %v4646_v10, %v4480_v6  ;;  %v9275_v54 = vld [vmem:[#allocation57_spill] sm:$0xff]  ;;  %v9276_v41 = vld [vmem:[#allocation56_spill] sm:$0xff]  ;;  %v9277_v58 = vld [vmem:[#allocation58_spill] sm:$0xff] }
 0x503   : > { %v4343_v46 = vmul.f32 %v4086_v31, %v9272_v19  ;;  %v4090_v11 = vadd.f32 %v4089_v28, %v7832_v43 }
 0x504   : > { %v4344_v48 = vmul.f32 %v4088_v60, %v9273_v33  ;;  %4648 = vadd.xlane.f32.xlu1 %v4647_v3  ;;  %v4482_v30 = vmul.f32 %v7850_v38, %v4342_v40 }
 0x505   : > { %v4345_v51 = vmul.f32 %v4090_v11, %v9274_v37  ;;  %v4483_v20 = vmul.f32 %v7844_v35, %v4343_v46 }
 0x506   : > { %v4484_v57 = vmul.f32 %v7850_v38, %v4344_v48 }
 0x507   : > { %v4093_v34 = vpop.f32.mrb[236].mxu0  ;;  %v4650_v7 = vsel %vm1418_vm3, %v4483_v20, 0.0  ;;  %v4485_v25 = vmul.f32 %v7844_v35, %v4345_v51 }
 0x508   : > { %v4094_v32 = vadd.f32 %v4093_v34, %v7828_v24  ;;  %v4095_v18 = vpop.f32.mrb[237].mxu0  ;;  %v4651_v12 = vadd.f32 %v4650_v7, %v4482_v30 }
 0x509   : > { %v4096_v50 = vadd.f32 %v4095_v18, %v7832_v43  ;;  %v4097_v52 = vpop.f32.mrb[238].mxu0  ;;  %v4654_v55 = vsel %vm1418_vm3, %v4485_v25, 0.0 }
 0x50a   : > { %v4346_v21 = vmul.f32 %v4094_v32, %v9186_v29  ;;  %v4098_v9 = vadd.f32 %v4097_v52, %v7828_v24  ;;  %v4099_v44 = vpop.f32.mrb[239].mxu0  ;;  %4652 = vadd.xlane.f32.xlu0 %v4651_v12  ;;  %v4655_v61 = vadd.f32 %v4654_v55, %v4484_v57  ;;  %v9278_v12 = vld [vmem:[#allocation61_spill] sm:$0xff] }
 0x50b   : > { %v4347_v6 = vmul.f32 %v4096_v50, %v9275_v54  ;;  %v4100_v31 = vadd.f32 %v4099_v44, %v7832_v43  ;;  %v9279_v50 = vld [vmem:[#allocation64_spill] sm:$0xff] }
 0x50c   : > { %v4348_v10 = vmul.f32 %v4098_v9, %v9276_v41  ;;  %4656 = vadd.xlane.f32.xlu1 %v4655_v61  ;;  %v4486_v28 = vmul.f32 %v7850_v38, %v4346_v21 }
 0x50d   : > { %v4349_v40 = vmul.f32 %v4100_v31, %v9277_v58  ;;  %v4487_v60 = vmul.f32 %v7844_v35, %v4347_v6 }
 0x50e   : > { %v4488_v48 = vmul.f32 %v7850_v38, %v4348_v10 }
 0x50f   : > { %v4103_v3 = vpop.f32.mrb[240].mxu0  ;;  %v4658_v29 = vsel %vm1418_vm3, %v4487_v60, 0.0  ;;  %v4489_v19 = vmul.f32 %v7844_v35, %v4349_v40 }
 0x510   : > { %v4104_v46 = vadd.f32 %v4103_v3, %v7828_v24  ;;  %v4105_v11 = vpop.f32.mrb[241].mxu0  ;;  %v4659_v33 = vadd.f32 %v4658_v29, %v4486_v28 }
 0x511   : > { %v4106_v37 = vadd.f32 %v4105_v11, %v7832_v43  ;;  %v4107_v51 = vpop.f32.mrb[242].mxu0  ;;  %v4662_v20 = vsel %vm1418_vm3, %v4489_v19, 0.0  ;;  %v9280_v19 = vld [vmem:[#allocation68_spill] sm:$0xff]  ;;  %v9281_v11 = vld [vmem:[#allocation71_spill] sm:$0xff] }
 0x512   : > { %v4350_v30 = vmul.f32 %v4104_v46, %v9101_v45  ;;  %v4108_v34 = vadd.f32 %v4107_v51, %v7828_v24  ;;  %v4109_v7 = vpop.f32.mrb[243].mxu0  ;;  %4660 = vadd.xlane.f32.xlu0 %v4659_v33  ;;  %v4663_v25 = vadd.f32 %v4662_v20, %v4488_v48 }
 0x513   : > { %v4351_v32 = vmul.f32 %v4106_v37, %v9191_v26  ;;  %v4110_v18 = vadd.f32 %v4109_v7, %v7832_v43 }
 0x514   : > { %v4352_v57 = vmul.f32 %v4108_v34, %v9278_v12  ;;  %4664 = vadd.xlane.f32.xlu1 %v4663_v25  ;;  %v4490_v21 = vmul.f32 %v7850_v38, %v4350_v30 }
 0x515   : > { %v4353_v52 = vmul.f32 %v4110_v18, %v9279_v50  ;;  %v4491_v55 = vmul.f32 %v7844_v35, %v4351_v32 }
 0x516   : > { %v4492_v6 = vmul.f32 %v7850_v38, %v4352_v57 }
 0x517   : > { %v4113_v9 = vpop.f32.mrb[244].mxu0  ;;  %v4666_v45 = vsel %vm1418_vm3, %v4491_v55, 0.0  ;;  %v4493_v44 = vmul.f32 %v7844_v35, %v4353_v52 }
 0x518   : > { %v4114_v61 = vadd.f32 %v4113_v9, %v7828_v24  ;;  %v4115_v54 = vpop.f32.mrb[245].mxu0  ;;  %v4667_v26 = vadd.f32 %v4666_v45, %v4490_v21 }
 0x519   : > { %v4116_v31 = vadd.f32 %v4115_v54, %v7832_v43  ;;  %v4117_v41 = vpop.f32.mrb[246].mxu0  ;;  %v4670_v10 = vsel %vm1418_vm3, %v4493_v44, 0.0 }
 0x51a   : > { %v4354_v58 = vmul.f32 %v4114_v61, %v9015_v56  ;;  %v4118_v40 = vadd.f32 %v4117_v41, %v7828_v24  ;;  %v4119_v60 = vpop.f32.mrb[247].mxu0  ;;  %4668 = vadd.xlane.f32.xlu0 %v4667_v26  ;;  %v4671_v28 = vadd.f32 %v4670_v10, %v4492_v6 }
 0x51b   : > { %v4355_v3 = vmul.f32 %v4116_v31, %v9193_v62  ;;  %v4120_v29 = vadd.f32 %v4119_v60, %v7832_v43 }
 0x51c   : > { %v4356_v46 = vmul.f32 %v4118_v40, %v9280_v19  ;;  %4672 = vadd.xlane.f32.xlu1 %v4671_v28  ;;  %v4494_v37 = vmul.f32 %v7850_v38, %v4354_v58 }
 0x51d   : > { %v4357_v33 = vmul.f32 %v4120_v29, %v9281_v11  ;;  %v4495_v48 = vmul.f32 %v7844_v35, %v4355_v3 }
 0x51e   : > { %v4496_v7 = vmul.f32 %v7850_v38, %v4356_v46 }
 0x51f   : > { %v4123_v51 = vpop.f32.mrb[248].mxu0  ;;  %v4674_v56 = vsel %vm1418_vm3, %v4495_v48, 0.0  ;;  %v4497_v20 = vmul.f32 %v7844_v35, %v4357_v33 }
 0x520   : > { %v4124_v30 = vadd.f32 %v4123_v51, %v7828_v24  ;;  %v4125_v34 = vpop.f32.mrb[249].mxu0  ;;  %v4675_v62 = vadd.f32 %v4674_v56, %v4494_v37 }
 0x521   : > { %v4126_v25 = vadd.f32 %v4125_v34, %v7832_v43  ;;  %v4127_v32 = vpop.f32.mrb[250].mxu0  ;;  %v4678_v18 = vsel %vm1418_vm3, %v4497_v20, 0.0 }
 0x522   : > { %v4358_v12 = vmul.f32 %v4124_v30, %v9019_v5  ;;  %v4128_v57 = vadd.f32 %v4127_v32, %v7828_v24  ;;  %v4129_v50 = vpop.f32.mrb[251].mxu0  ;;  %4676 = vadd.xlane.f32.xlu0 %v4675_v62  ;;  %v4679_v52 = vadd.f32 %v4678_v18, %v4496_v7 }
 0x523   : > { %v4359_v55 = vmul.f32 %v4126_v25, %v9195_v14  ;;  %v4130_v21 = vadd.f32 %v4129_v50, %v7832_v43 }
 0x524   : > { %v4360_v9 = vmul.f32 %v4128_v57, %v9020_v27  ;;  %4680 = vadd.xlane.f32.xlu1 %v4679_v52  ;;  %v4498_v61 = vmul.f32 %v7850_v38, %v4358_v12  ;;  %v9282_v57 = vld [vmem:[#allocation83_spill] sm:$0xff] }
 0x525   : > { %v4361_v45 = vmul.f32 %v4130_v21, %v9196_v8  ;;  %v4499_v44 = vmul.f32 %v7844_v35, %v4359_v55 }
 0x526   : > { %v4500_v41 = vmul.f32 %v7850_v38, %v4360_v9 }
 0x527   : > { %v4133_v54 = vpop.f32.mrb[252].mxu0  ;;  %v4682_v5 = vsel %vm1418_vm3, %v4499_v44, 0.0  ;;  %v4501_v26 = vmul.f32 %v7844_v35, %v4361_v45 }
 0x528   : > { %v4134_v6 = vadd.f32 %v4133_v54, %v7828_v24  ;;  %v4135_v31 = vpop.f32.mrb[253].mxu0  ;;  %v4683_v14 = vadd.f32 %v4682_v5, %v4498_v61 }
 0x529   : > { %v4136_v27 = vadd.f32 %v4135_v31, %v7832_v43  ;;  %v4137_v10 = vpop.f32.mrb[254].mxu0  ;;  %v4686_v8 = vsel %vm1418_vm3, %v4501_v26, 0.0  ;;  %v9283_v26 = vld [vmem:[#allocation88_spill] sm:$0xff] }
 0x52a   : > { %v4362_v58 = vmul.f32 %v4134_v6, %v6574_v39  ;;  %v4138_v40 = vadd.f32 %v4137_v10, %v7828_v24  ;;  %v4139_v60 = vpop.f32.mrb[255].mxu0  ;;  %4684 = vadd.xlane.f32.xlu0 %v4683_v14  ;;  %v4687_v28 = vadd.f32 %v4686_v8, %v4500_v41 }
 0x52b   : > { %v4363_v3 = vmul.f32 %v4136_v27, %v9110_v59  ;;  %v4140_v29 = vadd.f32 %v4139_v60, %v7832_v43  ;;  %v9284_v27 = vld [vmem:[#allocation86_spill] sm:$0xff]  ;;  %v9286_v60 = vld [vmem:[#allocation87_spill] sm:$0xff] }
 0x52c   : > { %v4364_v19 = vmul.f32 %v4138_v40, %v6553_v63  ;;  %4688 = vadd.xlane.f32.xlu1 %v4687_v28  ;;  %v4502_v33 = vmul.f32 %v7850_v38, %v4362_v58  ;;  %v9285_v58 = vld [vmem:[#allocation89_spill] sm:$0xff] }
 0x52d   : > { %v4365_v46 = vmul.f32 %v4140_v29, %v9111_v36  ;;  %v4503_v11 = vmul.f32 %v7844_v35, %v4363_v3 }
 0x52e   : > { %v4504_v20 = vmul.f32 %v7850_v38, %v4364_v19 }
 0x52f   : > { %v4143_v48 = vpop.f32.mrb[0].mxu0  ;;  %v4690_v39 = vsel %vm1418_vm3, %v4503_v11, 0.0  ;;  %v4505_v37 = vmul.f32 %v7844_v35, %v4365_v46 }
 0x530   : > { %v4144_v51 = vadd.f32 %v4143_v48, %v7828_v24  ;;  %v4145_v56 = vpop.f32.mrb[1].mxu0  ;;  %v4691_v59 = vadd.f32 %v4690_v39, %v4502_v33 }
 0x531   : > { %v4146_v63 = vadd.f32 %v4145_v56, %v7832_v43  ;;  %v4147_v30 = vpop.f32.mrb[2].mxu0  ;;  %v4694_v36 = vsel %vm1418_vm3, %v4505_v37, 0.0 }
 0x532   : > { %v4366_v34 = vmul.f32 %v4144_v51, %v6590_v23  ;;  %v4148_v62 = vadd.f32 %v4147_v30, %v7828_v24  ;;  %v4149_v7 = vpop.f32.mrb[3].mxu0  ;;  %4692 = vadd.xlane.f32.xlu0 %v4691_v59  ;;  %v4695_v25 = vadd.f32 %v4694_v36, %v4504_v20  ;;  %v9287_v20 = vld [vmem:[#allocation92_spill] sm:$0xff] }
 0x533   : > { %v4367_v32 = vmul.f32 %v4146_v63, %v9025_v49  ;;  %v4150_v18 = vadd.f32 %v4149_v7, %v7832_v43 }
 0x534   : > { %v4368_v12 = vmul.f32 %v4148_v62, %v6594_v22  ;;  %4696 = vadd.xlane.f32.xlu1 %v4695_v25  ;;  %v4506_v55 = vmul.f32 %v7850_v38, %v4366_v34  ;;  %v9288_v62 = vld [vmem:[#allocation90_spill] sm:$0xff] }
 0x535   : > { %v4369_v50 = vmul.f32 %v4150_v18, %v9282_v57  ;;  %v4507_v52 = vmul.f32 %v7844_v35, %v4367_v32  ;;  %v9289_v32 = vld [vmem:[#allocation93_spill] sm:$0xff] }
 0x536   : > { %v4508_v61 = vmul.f32 %v7850_v38, %v4368_v12  ;;  %v9290_v12 = vld [vmem:[#allocation91_spill] sm:$0xff] }
 0x537   : > { %v4153_v21 = vpop.f32.mrb[4].mxu0  ;;  %v4698_v23 = vsel %vm1418_vm3, %v4507_v52, 0.0  ;;  %v4509_v9 = vmul.f32 %v7844_v35, %v4369_v50  ;;  %v8145_v50 = vld [vmem:[#allocation2] ss:$0 sm:$0xff] }
 0x538   : > { %v4154_v45 = vadd.f32 %v4153_v21, %v7828_v24  ;;  %v4155_v44 = vpop.f32.mrb[5].mxu0  ;;  %v4699_v49 = vadd.f32 %v4698_v23, %v4506_v55 }
 0x539   : > { %v4156_v22 = vadd.f32 %v4155_v44, %v7832_v43  ;;  %v4157_v54 = vpop.f32.mrb[6].mxu0  ;;  %v4702_v5 = vsel %vm1418_vm3, %v4509_v9, 0.0 }
 0x53a   : > { %v4370_v6 = vmul.f32 %v4154_v45, %v9283_v26  ;;  %v4158_v31 = vadd.f32 %v4157_v54, %v7828_v24  ;;  %v4159_v14 = vpop.f32.mrb[7].mxu0  ;;  %4700 = vadd.xlane.f32.xlu0 %v4699_v49  ;;  %v4703_v41 = vadd.f32 %v4702_v5, %v4508_v61 }
 0x53b   : > { %v4371_v10 = vmul.f32 %v4156_v22, %v9284_v27  ;;  %v4160_v8 = vadd.f32 %v4159_v14, %v7832_v43 }
 0x53c   : > { %v4372_v40 = vmul.f32 %v4158_v31, %v9285_v58  ;;  %4704 = vadd.xlane.f32.xlu1 %v4703_v41  ;;  %v4510_v29 = vmul.f32 %v7850_v38, %v4370_v6  ;;  %v9291_v31 = vld [vmem:[#allocation96_spill] sm:$0xff] }
 0x53d   : > { %v4373_v28 = vmul.f32 %v4160_v8, %v9286_v60  ;;  %v4511_v3 = vmul.f32 %v7844_v35, %v4371_v10  ;;  %v9292_v8 = vld [vmem:[#allocation94_spill] sm:$0xff] }
 0x53e   : > { %v4512_v37 = vmul.f32 %v7850_v38, %v4372_v40 }
 0x53f   : > { %v4163_v19 = vpop.f32.mrb[8].mxu0  ;;  %v4706_v46 = vsel %vm1418_vm3, %v4511_v3, 0.0  ;;  %v4513_v11 = vmul.f32 %v7844_v35, %v4373_v28  ;;  %v9293_v28 = vld [vmem:[#allocation97_spill] sm:$0xff] }
 0x540   : > { %v4164_v33 = vadd.f32 %v4163_v19, %v7828_v24  ;;  %v4165_v48 = vpop.f32.mrb[9].mxu0  ;;  %v4707_v39 = vadd.f32 %v4706_v46, %v4510_v29  ;;  %v9294_v19 = vld [vmem:[#allocation95_spill] sm:$0xff] }
 0x541   : > { %v4166_v51 = vadd.f32 %v4165_v48, %v7832_v43  ;;  %v4167_v56 = vpop.f32.mrb[10].mxu0  ;;  %v4710_v59 = vsel %vm1418_vm3, %v4513_v11, 0.0 }
 0x542   : > { %v4374_v63 = vmul.f32 %v4164_v33, %v9287_v20  ;;  %v4168_v30 = vadd.f32 %v4167_v56, %v7828_v24  ;;  %v4169_v36 = vpop.f32.mrb[11].mxu0  ;;  %4708 = vadd.xlane.f32.xlu0 %v4707_v39  ;;  %v4711_v34 = vadd.f32 %v4710_v59, %v4512_v37 }
 0x543   : > { %v4375_v7 = vmul.f32 %v4166_v51, %v9288_v62  ;;  %v4170_v25 = vadd.f32 %v4169_v36, %v7832_v43 }
 0x544   : > { %v4376_v18 = vmul.f32 %v4168_v30, %v9289_v32  ;;  %4712 = vadd.xlane.f32.xlu1 %v4711_v34  ;;  %v4514_v55 = vmul.f32 %v7850_v38, %v4374_v63 }
 0x545   : > { %v4377_v57 = vmul.f32 %v4170_v25, %v9290_v12  ;;  %v4515_v52 = vmul.f32 %v7844_v35, %v4375_v7  ;;  %v9295_v7 = vld [vmem:[#allocation100_spill] sm:$0xff] }
 0x546   : > { %v4516_v54 = vmul.f32 %v7850_v38, %v4376_v18 }
 0x547   : > { %v4173_v21 = vpop.f32.mrb[12].mxu0  ;;  %v4573_v23 = vpop.xlane.xlu0 %4572  ;;  %v4714_v9 = vsel %vm1418_vm3, %v4515_v52, 0.0  ;;  %v4517_v45 = vmul.f32 %v7844_v35, %v4377_v57  ;;  %v9296_v57 = vld [vmem:[#allocation98_spill] sm:$0xff] }
 0x548   : > { %v4174_v44 = vadd.f32 %v4173_v21, %v7828_v24  ;;  %v4833_v49 = vadd.f32 %v8145_v50, %v4573_v23  ;;  %v4175_v61 = vpop.f32.mrb[13].mxu0  ;;  %v4715_v22 = vadd.f32 %v4714_v9, %v4514_v55  ;;  %v9297_v23 = vld [vmem:[#allocation101_spill] sm:$0xff] }
 0x549   : > { %v4176_v5 = vadd.f32 %v4175_v61, %v7832_v43  ;;  %v4177_v26 = vpop.f32.mrb[14].mxu0  ;;  %v4718_v6 = vsel %vm1418_vm3, %v4517_v45, 0.0 }
 0x54a   : > { %v4378_v14 = vmul.f32 %v4174_v44, %v9291_v31  ;;  %4898 = vst.msk [vmem:[%s8152_s15] sm:$0xff] %vm4897_vm4, %v4833_v49  ;;  %v4178_v41 = vadd.f32 %v4177_v26, %v7828_v24  ;;  %v4179_v27 = vpop.f32.mrb[15].mxu0  ;;  %4716 = vadd.xlane.f32.xlu0 %v4715_v22  ;;  %v4719_v10 = vadd.f32 %v4718_v6, %v4516_v54  ;;  %v9298_v44 = vld [vmem:[#allocation99_spill] sm:$0xff] }
 0x54b   : > { %v4379_v58 = vmul.f32 %v4176_v5, %v9292_v8  ;;  %v4180_v40 = vadd.f32 %v4179_v27, %v7832_v43  ;;  %v4577_v60 = vpop.xlane.xlu0 %4576 }
 0x54c   : > { %v4380_v3 = vmul.f32 %v4178_v41, %v9293_v28  ;;  %v4834_v29 = vadd.f32 %v8145_v50, %v4577_v60  ;;  %4720 = vadd.xlane.f32.xlu1 %v4719_v10  ;;  %v4518_v33 = vmul.f32 %v7850_v38, %v4378_v14  ;;  %v9299_v28 = vld [vmem:[#allocation104_spill] sm:$0xff] }
 0x54d   : > { %v4381_v46 = vmul.f32 %v4180_v40, %v9294_v19  ;;  %v4519_v11 = vmul.f32 %v7844_v35, %v4379_v58 }
 0x54e   : > { %4899 = vst.msk [vmem:[%s8152_s15 + $0x8] sm:$0xff] %vm4897_vm4, %v4834_v29  ;;  %v4520_v30 = vmul.f32 %v7850_v38, %v4380_v3 }
 0x54f   : > { %v4183_v48 = vpop.f32.mrb[16].mxu0  ;;  %v4581_v39 = vpop.xlane.xlu1 %4580  ;;  %v4722_v37 = vsel %vm1418_vm3, %v4519_v11, 0.0  ;;  %v4521_v51 = vmul.f32 %v7844_v35, %v4381_v46 }
 0x550   : > { %v4184_v56 = vadd.f32 %v4183_v48, %v7828_v24  ;;  %v4835_v59 = vadd.f32 %v8145_v50, %v4581_v39  ;;  %v4185_v20 = vpop.f32.mrb[17].mxu0  ;;  %v4723_v63 = vadd.f32 %v4722_v37, %v4518_v33  ;;  %v9300_v33 = vld [vmem:[#allocation102_spill] sm:$0xff]  ;;  %v9301_v37 = vld [vmem:[#allocation105_spill] sm:$0xff] }
 0x551   : > { %v4186_v36 = vadd.f32 %v4185_v20, %v7832_v43  ;;  %v4187_v34 = vpop.f32.mrb[18].mxu0  ;;  %v4726_v62 = vsel %vm1418_vm3, %v4521_v51, 0.0 }
 0x552   : > { %v4382_v25 = vmul.f32 %v4184_v56, %v9295_v7  ;;  %4900 = vst.msk [vmem:[%s8152_s15 + $0x10] sm:$0xff] %vm4897_vm4, %v4835_v59  ;;  %v4188_v32 = vadd.f32 %v4187_v34, %v7828_v24  ;;  %v4189_v18 = vpop.f32.mrb[19].mxu0  ;;  %4724 = vadd.xlane.f32.xlu0 %v4723_v63  ;;  %v4727_v12 = vadd.f32 %v4726_v62, %v4520_v30  ;;  %v9302_v56 = vld [vmem:[#allocation103_spill] sm:$0xff] }
 0x553   : > { %v4383_v52 = vmul.f32 %v4186_v36, %v9296_v57  ;;  %v4190_v55 = vadd.f32 %v4189_v18, %v7832_v43  ;;  %v4585_v21 = vpop.xlane.xlu1 %4584 }
 0x554   : > { %v4384_v9 = vmul.f32 %v4188_v32, %v9297_v23  ;;  %v4836_v45 = vadd.f32 %v8145_v50, %v4585_v21  ;;  %4728 = vadd.xlane.f32.xlu1 %v4727_v12  ;;  %v4522_v22 = vmul.f32 %v7850_v38, %v4382_v25  ;;  %v9303_v23 = vld [vmem:[#allocation108_spill] sm:$0xff] }
 0x555   : > { %v4385_v49 = vmul.f32 %v4190_v55, %v9298_v44  ;;  %v4523_v61 = vmul.f32 %v7844_v35, %v4383_v52 }
 0x556   : > { %4901 = vst.msk [vmem:[%s8152_s15 + $0x18] sm:$0xff] %vm4897_vm4, %v4836_v45  ;;  %v4524_v10 = vmul.f32 %v7850_v38, %v4384_v9 }
 0x557   : > { %v4193_v54 = vpop.f32.mrb[20].mxu0  ;;  %v4589_v5 = vpop.xlane.xlu0 %4588  ;;  %v4730_v26 = vsel %vm1418_vm3, %v4523_v61, 0.0  ;;  %v4525_v6 = vmul.f32 %v7844_v35, %v4385_v49 }
 0x558   : > { %v4194_v31 = vadd.f32 %v4193_v54, %v7828_v24  ;;  %v4837_v14 = vadd.f32 %v8145_v50, %v4589_v5  ;;  %v4195_v41 = vpop.f32.mrb[21].mxu0  ;;  %v4731_v27 = vadd.f32 %v4730_v26, %v4522_v22  ;;  %v9304_v22 = vld [vmem:[#allocation106_spill] sm:$0xff]  ;;  %v9305_v26 = vld [vmem:[#allocation109_spill] sm:$0xff] }
 0x559   : > { %v4196_v8 = vadd.f32 %v4195_v41, %v7832_v43  ;;  %v4197_v58 = vpop.f32.mrb[22].mxu0  ;;  %v4593_v40 = vpop.xlane.xlu1 %4592  ;;  %v4734_v60 = vsel %vm1418_vm3, %v4525_v6, 0.0 }
 0x55a   : > { %v4386_v3 = vmul.f32 %v4194_v31, %v9299_v28  ;;  %4902 = vst.msk [vmem:[%s8152_s15 + $0x20] sm:$0xff] %vm4897_vm4, %v4837_v14  ;;  %v4198_v29 = vadd.f32 %v4197_v58, %v7828_v24  ;;  %v4838_v19 = vadd.f32 %v8145_v50, %v4593_v40  ;;  %v4199_v46 = vpop.f32.mrb[23].mxu0  ;;  %4732 = vadd.xlane.f32.xlu0 %v4731_v27  ;;  %v9306_v31 = vld [vmem:[#allocation107_spill] sm:$0xff] }
 0x55b   : > { %v4735_v11 = vadd.f32 %v4734_v60, %v4524_v10  ;;  %v4387_v48 = vmul.f32 %v4196_v8, %v9300_v33  ;;  %v4200_v39 = vadd.f32 %v4199_v46, %v7832_v43 }
 0x55c   : > { %v4388_v51 = vmul.f32 %v4198_v29, %v9301_v37  ;;  %4903 = vst.msk [vmem:[%s8152_s15 + $0x28] sm:$0xff] %vm4897_vm4, %v4838_v19  ;;  %v4526_v63 = vmul.f32 %v7850_v38, %v4386_v3 }
 0x55d   : > { %4736 = vadd.xlane.f32.xlu1 %v4735_v11  ;;  %v4389_v59 = vmul.f32 %v4200_v39, %v9302_v56  ;;  %v4527_v20 = vmul.f32 %v7844_v35, %v4387_v48  ;;  %v9307_v39 = vld [vmem:[#allocation112_spill] sm:$0xff] }
 0x55e   : > { %v4528_v18 = vmul.f32 %v7850_v38, %v4388_v51 }
 0x55f   : > { %v4203_v30 = vpop.f32.mrb[24].mxu0  ;;  %v4738_v36 = vsel %vm1418_vm3, %v4527_v20, 0.0  ;;  %v4529_v34 = vmul.f32 %v7844_v35, %v4389_v59  ;;  %v4597_v7 = vpop.xlane.xlu0 %4596 }
 0x560   : > { %v4204_v62 = vadd.f32 %v4203_v30, %v7828_v24  ;;  %v4205_v25 = vpop.f32.mrb[25].mxu0  ;;  %v4739_v32 = vadd.f32 %v4738_v36, %v4526_v63  ;;  %v4839_v12 = vadd.f32 %v8145_v50, %v4597_v7  ;;  %v9308_v63 = vld [vmem:[#allocation110_spill] sm:$0xff]  ;;  %v9310_v7 = vld [vmem:[#allocation111_spill] sm:$0xff] }
 0x561   : > { %v4206_v57 = vadd.f32 %v4205_v25, %v7832_v43  ;;  %v4207_v52 = vpop.f32.mrb[26].mxu0  ;;  %v4601_v55 = vpop.xlane.xlu1 %4600  ;;  %v4742_v21 = vsel %vm1418_vm3, %v4529_v34, 0.0  ;;  %v9309_v34 = vld [vmem:[#allocation113_spill] sm:$0xff] }
 0x562   : > { %v4390_v9 = vmul.f32 %v4204_v62, %v9303_v23  ;;  %v4208_v45 = vadd.f32 %v4207_v52, %v7828_v24  ;;  %v4840_v44 = vadd.f32 %v8145_v50, %v4601_v55  ;;  %v4209_v49 = vpop.f32.mrb[27].mxu0  ;;  %4740 = vadd.xlane.f32.xlu0 %v4739_v32  ;;  %v4743_v61 = vadd.f32 %v4742_v21, %v4528_v18 }
 0x563   : > { %4904 = vst.msk [vmem:[%s8152_s15 + $0x30] sm:$0xff] %vm4897_vm4, %v4839_v12  ;;  %v4391_v54 = vmul.f32 %v4206_v57, %v9304_v22  ;;  %v4210_v5 = vadd.f32 %v4209_v49, %v7832_v43 }
 0x564   : > { %v4392_v6 = vmul.f32 %v4208_v45, %v9305_v26  ;;  %4905 = vst.msk [vmem:[%s8152_s15 + $0x38] sm:$0xff] %vm4897_vm4, %v4840_v44  ;;  %4744 = vadd.xlane.f32.xlu1 %v4743_v61  ;;  %v4530_v27 = vmul.f32 %v7850_v38, %v4390_v9 }
 0x565   : > { %v4393_v14 = vmul.f32 %v4210_v5, %v9306_v31  ;;  %v4531_v41 = vmul.f32 %v7844_v35, %v4391_v54  ;;  %v9311_v5 = vld [vmem:[#allocation116_spill] sm:$0xff] }
 0x566   : > { %v4532_v19 = vmul.f32 %v7850_v38, %v4392_v6 }
 0x567   : > { %v4213_v10 = vpop.f32.mrb[28].mxu0  ;;  %v4605_v8 = vpop.xlane.xlu0 %4604  ;;  %v4746_v58 = vsel %vm1418_vm3, %v4531_v41, 0.0  ;;  %v4533_v40 = vmul.f32 %v7844_v35, %v4393_v14 }
 0x568   : > { %v4214_v60 = vadd.f32 %v4213_v10, %v7828_v24  ;;  %v4841_v28 = vadd.f32 %v8145_v50, %v4605_v8  ;;  %v4215_v3 = vpop.f32.mrb[29].mxu0  ;;  %v4747_v29 = vadd.f32 %v4746_v58, %v4530_v27  ;;  %v9312_v27 = vld [vmem:[#allocation114_spill] sm:$0xff]  ;;  %v9313_v58 = vld [vmem:[#allocation117_spill] sm:$0xff] }
 0x569   : > { %v4216_v46 = vadd.f32 %v4215_v3, %v7832_v43  ;;  %v4217_v11 = vpop.f32.mrb[30].mxu0  ;;  %v4609_v33 = vpop.xlane.xlu1 %4608  ;;  %v4750_v48 = vsel %vm1418_vm3, %v4533_v40, 0.0 }
 0x56a   : > { %v4394_v37 = vmul.f32 %v4214_v60, %v9307_v39  ;;  %4906 = vst.msk [vmem:[%s8152_s15 + $0x40] sm:$0xff] %vm4897_vm4, %v4841_v28  ;;  %v4218_v51 = vadd.f32 %v4217_v11, %v7828_v24  ;;  %v4842_v56 = vadd.f32 %v8145_v50, %v4609_v33  ;;  %v4219_v59 = vpop.f32.mrb[31].mxu0  ;;  %4748 = vadd.xlane.f32.xlu0 %v4747_v29  ;;  %v9314_v60 = vld [vmem:[#allocation115_spill] sm:$0xff] }
 0x56b   : > { %v4751_v20 = vadd.f32 %v4750_v48, %v4532_v19  ;;  %v4395_v30 = vmul.f32 %v4216_v46, %v9308_v63  ;;  %v4220_v36 = vadd.f32 %v4219_v59, %v7832_v43 }
 0x56c   : > { %v4396_v62 = vmul.f32 %v4218_v51, %v9309_v34  ;;  %4907 = vst.msk [vmem:[%s8152_s15 + $0x48] sm:$0xff] %vm4897_vm4, %v4842_v56  ;;  %v4534_v18 = vmul.f32 %v7850_v38, %v4394_v37 }
 0x56d   : > { %4752 = vadd.xlane.f32.xlu1 %v4751_v20  ;;  %v4397_v25 = vmul.f32 %v4220_v36, %v9310_v7  ;;  %v4535_v32 = vmul.f32 %v7844_v35, %v4395_v30  ;;  %v9315_v36 = vld [vmem:[#allocation120_spill] sm:$0xff] }
 0x56e   : > { %v4536_v44 = vmul.f32 %v7850_v38, %v4396_v62 }
 0x56f   : > { %v4223_v12 = vpop.f32.mrb[32].mxu0  ;;  %v4613_v57 = vpop.xlane.xlu0 %4612  ;;  %v4754_v52 = vsel %vm1418_vm3, %v4535_v32, 0.0  ;;  %v4537_v55 = vmul.f32 %v7844_v35, %v4397_v25 }
 0x570   : > { %v4224_v21 = vadd.f32 %v4223_v12, %v7828_v24  ;;  %v4843_v23 = vadd.f32 %v8145_v50, %v4613_v57  ;;  %v4225_v9 = vpop.f32.mrb[33].mxu0  ;;  %v4755_v45 = vadd.f32 %v4754_v52, %v4534_v18  ;;  %v9316_v18 = vld [vmem:[#allocation118_spill] sm:$0xff]  ;;  %v9317_v52 = vld [vmem:[#allocation121_spill] sm:$0xff] }
 0x571   : > { %v4226_v49 = vadd.f32 %v4225_v9, %v7832_v43  ;;  %v4227_v61 = vpop.f32.mrb[34].mxu0  ;;  %v4617_v22 = vpop.xlane.xlu1 %4616  ;;  %v4758_v54 = vsel %vm1418_vm3, %v4537_v55, 0.0 }
 0x572   : > { %v4398_v26 = vmul.f32 %v4224_v21, %v9311_v5  ;;  %4908 = vst.msk [vmem:[%s8152_s15 + $0x50] sm:$0xff] %vm4897_vm4, %v4843_v23  ;;  %v4228_v6 = vadd.f32 %v4227_v61, %v7828_v24  ;;  %v4844_v31 = vadd.f32 %v8145_v50, %v4617_v22  ;;  %v4229_v14 = vpop.f32.mrb[35].mxu0  ;;  %4756 = vadd.xlane.f32.xlu0 %v4755_v45  ;;  %v9318_v21 = vld [vmem:[#allocation119_spill] sm:$0xff] }
 0x573   : > { %v4759_v41 = vadd.f32 %v4758_v54, %v4536_v44  ;;  %v4399_v10 = vmul.f32 %v4226_v49, %v9312_v27  ;;  %v4230_v8 = vadd.f32 %v4229_v14, %v7832_v43 }
 0x574   : > { %v4400_v40 = vmul.f32 %v4228_v6, %v9313_v58  ;;  %4909 = vst.msk [vmem:[%s8152_s15 + $0x58] sm:$0xff] %vm4897_vm4, %v4844_v31  ;;  %v4538_v29 = vmul.f32 %v7850_v38, %v4398_v26 }
 0x575   : > { %4760 = vadd.xlane.f32.xlu1 %v4759_v41  ;;  %v4401_v28 = vmul.f32 %v4230_v8, %v9314_v60  ;;  %v4539_v3 = vmul.f32 %v7844_v35, %v4399_v10  ;;  %v9319_v8 = vld [vmem:[#allocation124_spill] sm:$0xff] }
 0x576   : > { %v4540_v56 = vmul.f32 %v7850_v38, %v4400_v40 }
 0x577   : > { %v4233_v19 = vpop.f32.mrb[36].mxu0  ;;  %v4621_v46 = vpop.xlane.xlu0 %4620  ;;  %v4762_v11 = vsel %vm1418_vm3, %v4539_v3, 0.0  ;;  %v4541_v33 = vmul.f32 %v7844_v35, %v4401_v28 }
 0x578   : > { %v4234_v48 = vadd.f32 %v4233_v19, %v7828_v24  ;;  %v4845_v39 = vadd.f32 %v8145_v50, %v4621_v46  ;;  %v4235_v37 = vpop.f32.mrb[37].mxu0  ;;  %v4763_v51 = vadd.f32 %v4762_v11, %v4538_v29  ;;  %v9320_v29 = vld [vmem:[#allocation122_spill] sm:$0xff]  ;;  %v9321_v11 = vld [vmem:[#allocation125_spill] sm:$0xff] }
 0x579   : > { %v4236_v59 = vadd.f32 %v4235_v37, %v7832_v43  ;;  %v4237_v20 = vpop.f32.mrb[38].mxu0  ;;  %v4625_v63 = vpop.xlane.xlu1 %4624  ;;  %v4766_v30 = vsel %vm1418_vm3, %v4541_v33, 0.0 }
 0x57a   : > { %v4402_v34 = vmul.f32 %v4234_v48, %v9315_v36  ;;  %4910 = vst.msk [vmem:[%s8152_s15 + $0x60] sm:$0xff] %vm4897_vm4, %v4845_v39  ;;  %v4238_v62 = vadd.f32 %v4237_v20, %v7828_v24  ;;  %v4846_v7 = vadd.f32 %v8145_v50, %v4625_v63  ;;  %v4239_v25 = vpop.f32.mrb[39].mxu0  ;;  %4764 = vadd.xlane.f32.xlu0 %v4763_v51  ;;  %v9322_v48 = vld [vmem:[#allocation123_spill] sm:$0xff] }
 0x57b   : > { %v4767_v32 = vadd.f32 %v4766_v30, %v4540_v56  ;;  %v4403_v12 = vmul.f32 %v4236_v59, %v9316_v18  ;;  %v4240_v57 = vadd.f32 %v4239_v25, %v7832_v43 }
 0x57c   : > { %v4404_v55 = vmul.f32 %v4238_v62, %v9317_v52  ;;  %4911 = vst.msk [vmem:[%s8152_s15 + $0x68] sm:$0xff] %vm4897_vm4, %v4846_v7  ;;  %v4542_v45 = vmul.f32 %v7850_v38, %v4402_v34 }
 0x57d   : > { %4768 = vadd.xlane.f32.xlu1 %v4767_v32  ;;  %v4405_v23 = vmul.f32 %v4240_v57, %v9318_v21  ;;  %v4543_v9 = vmul.f32 %v7844_v35, %v4403_v12  ;;  %v9323_v57 = vld [vmem:[#allocation60_spill] sm:$0xff] }
 0x57e   : > { %v4544_v31 = vmul.f32 %v7850_v38, %v4404_v55 }
 0x57f   : > { %v4243_v44 = vpop.f32.mrb[40].mxu0  ;;  %v4629_v49 = vpop.xlane.xlu0 %4628  ;;  %v4770_v61 = vsel %vm1418_vm3, %v4543_v9, 0.0  ;;  %v4545_v22 = vmul.f32 %v7844_v35, %v4405_v23 }
 0x580   : > { %v4244_v54 = vadd.f32 %v4243_v44, %v7828_v24  ;;  %v4847_v5 = vadd.f32 %v8145_v50, %v4629_v49  ;;  %v4245_v26 = vpop.f32.mrb[41].mxu0  ;;  %v4771_v6 = vadd.f32 %v4770_v61, %v4542_v45  ;;  %v9324_v49 = vld [vmem:[#allocation62_spill] sm:$0xff] }
 0x581   : > { %v4246_v14 = vadd.f32 %v4245_v26, %v7832_v43  ;;  %v4247_v41 = vpop.f32.mrb[42].mxu0  ;;  %v4633_v27 = vpop.xlane.xlu1 %4632  ;;  %v4774_v10 = vsel %vm1418_vm3, %v4545_v22, 0.0  ;;  %v9325_v22 = vld [vmem:[#allocation127_spill] sm:$0xff] }
 0x582   : > { %v4406_v58 = vmul.f32 %v4244_v54, %v9319_v8  ;;  %4912 = vst.msk [vmem:[%s8152_s15 + $0x70] sm:$0xff] %vm4897_vm4, %v4847_v5  ;;  %v4248_v40 = vadd.f32 %v4247_v41, %v7828_v24  ;;  %v4848_v60 = vadd.f32 %v8145_v50, %v4633_v27  ;;  %v4249_v28 = vpop.f32.mrb[43].mxu0  ;;  %4772 = vadd.xlane.f32.xlu0 %v4771_v6 }
 0x583   : > { %v4775_v3 = vadd.f32 %v4774_v10, %v4544_v31  ;;  %v4407_v19 = vmul.f32 %v4246_v14, %v9320_v29  ;;  %v4250_v46 = vadd.f32 %v4249_v28, %v7832_v43  ;;  %v9326_v29 = vld [vmem:[#allocation66_spill] sm:$0xff] }
 0x584   : > { %v4408_v33 = vmul.f32 %v4248_v40, %v9321_v11  ;;  %4913 = vst.msk [vmem:[%s8152_s15 + $0x78] sm:$0xff] %vm4897_vm4, %v4848_v60  ;;  %v4546_v51 = vmul.f32 %v7850_v38, %v4406_v58 }
 0x585   : > { %4776 = vadd.xlane.f32.xlu1 %v4775_v3  ;;  %v4409_v39 = vmul.f32 %v4250_v46, %v9322_v48  ;;  %v4547_v37 = vmul.f32 %v7844_v35, %v4407_v19 }
 0x586   : > { %v4548_v7 = vmul.f32 %v7850_v38, %v4408_v33 }
 0x587   : > { %v4253_v56 = vpop.f32.mrb[44].mxu0  ;;  %v4637_v59 = vpop.xlane.xlu0 %4636  ;;  %v4778_v20 = vsel %vm1418_vm3, %v4547_v37, 0.0  ;;  %v4549_v63 = vmul.f32 %v7844_v35, %v4409_v39  ;;  %v9327_v39 = vld [vmem:[#allocation67_spill] sm:$0xff] }
 0x588   : > { %v4254_v30 = vadd.f32 %v4253_v56, %v7828_v24  ;;  %v4849_v36 = vadd.f32 %v8145_v50, %v4637_v59  ;;  %v4255_v34 = vpop.f32.mrb[45].mxu0  ;;  %v4779_v62 = vadd.f32 %v4778_v20, %v4546_v51  ;;  %v9328_v56 = vld [vmem:[#allocation69_spill] sm:$0xff]  ;;  %v9329_v20 = vld [vmem:[#allocation72_spill] sm:$0xff] }
 0x589   : > { %v4256_v25 = vadd.f32 %v4255_v34, %v7832_v43  ;;  %v4257_v32 = vpop.f32.mrb[46].mxu0  ;;  %v4641_v18 = vpop.xlane.xlu1 %4640  ;;  %v4782_v12 = vsel %vm1418_vm3, %v4549_v63, 0.0 }
 0x58a   : > { %v4410_v52 = vmul.f32 %v4254_v30, %v9323_v57  ;;  %4914 = vst.msk [vmem:[%s8152_s15 + $0x80] sm:$0xff] %vm4897_vm4, %v4849_v36  ;;  %v4258_v55 = vadd.f32 %v4257_v32, %v7828_v24  ;;  %v4850_v21 = vadd.f32 %v8145_v50, %v4641_v18  ;;  %v4259_v23 = vpop.f32.mrb[47].mxu0  ;;  %4780 = vadd.xlane.f32.xlu0 %v4779_v62 }
 0x58b   : > { %v4783_v9 = vadd.f32 %v4782_v12, %v4548_v7  ;;  %v4411_v45 = vmul.f32 %v4256_v25, %v9234_v0  ;;  %v4260_v44 = vadd.f32 %v4259_v23, %v7832_v43 }
 0x58c   : > { %v4412_v61 = vmul.f32 %v4258_v55, %v9324_v49  ;;  %4915 = vst.msk [vmem:[%s8152_s15 + $0x88] sm:$0xff] %vm4897_vm4, %v4850_v21  ;;  %v4550_v26 = vmul.f32 %v7850_v38, %v4410_v52 }
 0x58d   : > { %4784 = vadd.xlane.f32.xlu1 %v4783_v9  ;;  %v4413_v54 = vmul.f32 %v4260_v44, %v9325_v22  ;;  %v4551_v5 = vmul.f32 %v7844_v35, %v4411_v45 }
 0x58e   : > { %v4552_v58 = vmul.f32 %v7850_v38, %v4412_v61 }
 0x58f   : > { %v4263_v6 = vpop.f32.mrb[48].mxu0  ;;  %v4645_v31 = vpop.xlane.xlu0 %4644  ;;  %v4786_v14 = vsel %vm1418_vm3, %v4551_v5, 0.0  ;;  %v4553_v0 = vmul.f32 %v7844_v35, %v4413_v54 }
 0x590   : > { %v4264_v41 = vadd.f32 %v4263_v6, %v7828_v24  ;;  %v4851_v27 = vadd.f32 %v8145_v50, %v4645_v31  ;;  %v4265_v10 = vpop.f32.mrb[49].mxu0  ;;  %v4787_v8 = vadd.f32 %v4786_v14, %v4550_v26  ;;  %v9330_v26 = vld [vmem:[#allocation77_spill] sm:$0xff]  ;;  %v9331_v31 = vld [vmem:[#allocation80_spill] sm:$0xff] }
 0x591   : > { %v4266_v40 = vadd.f32 %v4265_v10, %v7832_v43  ;;  %v4267_v60 = vpop.f32.mrb[50].mxu0  ;;  %v4649_v28 = vpop.xlane.xlu1 %4648  ;;  %v4790_v3 = vsel %vm1418_vm3, %v4553_v0, 0.0 }
 0x592   : > { %v4414_v19 = vmul.f32 %v4264_v41, %v9326_v29  ;;  %4916 = vst.msk [vmem:[%s8152_s15 + $0x90] sm:$0xff] %vm4897_vm4, %v4851_v27  ;;  %v4268_v46 = vadd.f32 %v4267_v60, %v7828_v24  ;;  %v4852_v11 = vadd.f32 %v8145_v50, %v4649_v28  ;;  %v4269_v33 = vpop.f32.mrb[51].mxu0  ;;  %4788 = vadd.xlane.f32.xlu0 %v4787_v8 }
 0x593   : > { %v4791_v48 = vadd.f32 %v4790_v3, %v4552_v58  ;;  %v4415_v37 = vmul.f32 %v4266_v40, %v9327_v39  ;;  %v4270_v51 = vadd.f32 %v4269_v33, %v7832_v43 }
 0x594   : > { %v4416_v59 = vmul.f32 %v4268_v46, %v9328_v56  ;;  %4917 = vst.msk [vmem:[%s8152_s15 + $0x98] sm:$0xff] %vm4897_vm4, %v4852_v11  ;;  %v4554_v36 = vmul.f32 %v7850_v38, %v4414_v19 }
 0x595   : > { %4792 = vadd.xlane.f32.xlu1 %v4791_v48  ;;  %v4417_v63 = vmul.f32 %v4270_v51, %v9329_v20  ;;  %v4555_v30 = vmul.f32 %v7844_v35, %v4415_v37 }
 0x596   : > { %v4556_v52 = vmul.f32 %v7850_v38, %v4416_v59 }
 0x597   : > { %v4273_v34 = vpop.f32.mrb[52].mxu0  ;;  %v4653_v62 = vpop.xlane.xlu0 %4652  ;;  %v4794_v7 = vsel %vm1418_vm3, %v4555_v30, 0.0  ;;  %v4557_v25 = vmul.f32 %v7844_v35, %v4417_v63 }
 0x598   : > { %v4274_v32 = vadd.f32 %v4273_v34, %v7828_v24  ;;  %v4853_v18 = vadd.f32 %v8145_v50, %v4653_v62  ;;  %v4275_v12 = vpop.f32.mrb[53].mxu0  ;;  %v4795_v57 = vadd.f32 %v4794_v7, %v4554_v36 }
 0x599   : > { %v4276_v55 = vadd.f32 %v4275_v12, %v7832_v43  ;;  %v4277_v21 = vpop.f32.mrb[54].mxu0  ;;  %v4657_v23 = vpop.xlane.xlu1 %4656  ;;  %v4798_v9 = vsel %vm1418_vm3, %v4557_v25, 0.0 }
 0x59a   : > { %v4418_v45 = vmul.f32 %v4274_v32, %v9243_v17  ;;  %4918 = vst.msk [vmem:[%s8152_s15 + $0xa0] sm:$0xff] %vm4897_vm4, %v4853_v18  ;;  %v4278_v44 = vadd.f32 %v4277_v21, %v7828_v24  ;;  %v4854_v49 = vadd.f32 %v8145_v50, %v4657_v23  ;;  %v4279_v61 = vpop.f32.mrb[55].mxu0  ;;  %4796 = vadd.xlane.f32.xlu0 %v4795_v57 }
 0x59b   : > { %v4799_v22 = vadd.f32 %v4798_v9, %v4556_v52  ;;  %v4419_v54 = vmul.f32 %v4276_v55, %v9245_v2  ;;  %v4280_v5 = vadd.f32 %v4279_v61, %v7832_v43 }
 0x59c   : > { %v4420_v6 = vmul.f32 %v4278_v44, %v9330_v26  ;;  %4919 = vst.msk [vmem:[%s8152_s15 + $0xa8] sm:$0xff] %vm4897_vm4, %v4854_v49  ;;  %v4558_v0 = vmul.f32 %v7850_v38, %v4418_v45 }
 0x59d   : > { %4800 = vadd.xlane.f32.xlu1 %v4799_v22  ;;  %v4421_v17 = vmul.f32 %v4280_v5, %v9331_v31  ;;  %v4559_v14 = vmul.f32 %v7844_v35, %v4419_v54 }
 0x59e   : > { %v4560_v28 = vmul.f32 %v7850_v38, %v4420_v6 }
 0x59f   : > { %v4283_v41 = vpop.f32.mrb[56].mxu0  ;;  %v4661_v27 = vpop.xlane.xlu0 %4660  ;;  %v4802_v10 = vsel %vm1418_vm3, %v4559_v14, 0.0  ;;  %v4561_v2 = vmul.f32 %v7844_v35, %v4421_v17 }
 0x5a0   : > { %v4284_v8 = vadd.f32 %v4283_v41, %v7828_v24  ;;  %v4855_v58 = vadd.f32 %v8145_v50, %v4661_v27  ;;  %v4285_v40 = vpop.f32.mrb[57].mxu0  ;;  %v4803_v60 = vadd.f32 %v4802_v10, %v4558_v0 }
 0x5a1   : > { %v4286_v3 = vadd.f32 %v4285_v40, %v7832_v43  ;;  %v4287_v29 = vpop.f32.mrb[58].mxu0  ;;  %v4665_v19 = vpop.xlane.xlu1 %4664  ;;  %v4806_v46 = vsel %vm1418_vm3, %v4561_v2, 0.0 }
 0x5a2   : > { %v4422_v11 = vmul.f32 %v4284_v8, %v9154_v4  ;;  %4920 = vst.msk [vmem:[%s8152_s15 + $0xb0] sm:$0xff] %vm4897_vm4, %v4855_v58  ;;  %v4288_v33 = vadd.f32 %v4287_v29, %v7828_v24  ;;  %v4856_v48 = vadd.f32 %v8145_v50, %v4665_v19  ;;  %v4289_v39 = vpop.f32.mrb[59].mxu0  ;;  %4804 = vadd.xlane.f32.xlu0 %v4803_v60 }
 0x5a3   : > { %v4807_v37 = vadd.f32 %v4806_v46, %v4560_v28  ;;  %v4423_v51 = vmul.f32 %v4286_v3, %v9156_v16  ;;  %v4290_v56 = vadd.f32 %v4289_v39, %v7832_v43 }
 0x5a4   : > { %v4424_v59 = vmul.f32 %v4288_v33, %v9155_v1  ;;  %4921 = vst.msk [vmem:[%s8152_s15 + $0xb8] sm:$0xff] %vm4897_vm4, %v4856_v48  ;;  %v4562_v63 = vmul.f32 %v7850_v38, %v4422_v11 }
 0x5a5   : > { %4808 = vadd.xlane.f32.xlu1 %v4807_v37  ;;  %v4425_v4 = vmul.f32 %v4290_v56, %v9157_v13  ;;  %v4563_v20 = vmul.f32 %v7844_v35, %v4423_v51 }
 0x5a6   : > { %v4564_v13 = vmul.f32 %v7850_v38, %v4424_v59 }
 0x5a7   : > { %v4293_v30 = vpop.f32.mrb[60].mxu0  ;;  %v4669_v36 = vpop.xlane.xlu0 %4668  ;;  %v4810_v34 = vsel %vm1418_vm3, %v4563_v20, 0.0  ;;  %v4565_v16 = vmul.f32 %v7844_v35, %v4425_v4 }
 0x5a8   : > { %v4294_v62 = vadd.f32 %v4293_v30, %v7828_v24  ;;  %v4857_v1 = vadd.f32 %v8145_v50, %v4669_v36  ;;  %v4295_v7 = vpop.f32.mrb[61].mxu0  ;;  %v4811_v25 = vadd.f32 %v4810_v34, %v4562_v63 }
 0x5a9   : > { %v4296_v32 = vadd.f32 %v4295_v7, %v7832_v43  ;;  %v4297_v18 = vpop.f32.mrb[62].mxu0  ;;  %v4673_v12 = vpop.xlane.xlu1 %4672  ;;  %v4814_v57 = vsel %vm1418_vm3, %v4565_v16, 0.0 }
 0x5aa   : > { %v4426_v52 = vmul.f32 %v4294_v62, %v9066_v42  ;;  %4922 = vst.msk [vmem:[%s8152_s15 + $0xc0] sm:$0xff] %vm4897_vm4, %v4857_v1  ;;  %v4298_v55 = vadd.f32 %v4297_v18, %v7828_v24  ;;  %v4858_v21 = vadd.f32 %v8145_v50, %v4673_v12  ;;  %v4299_v23 = vpop.f32.mrb[63].mxu0  ;;  %4812 = vadd.xlane.f32.xlu0 %v4811_v25 }
 0x5ab   : > { %v4815_v9 = vadd.f32 %v4814_v57, %v4564_v13  ;;  %v4427_v45 = vmul.f32 %v4296_v32, %v9068_v53  ;;  %v4300_v44 = vadd.f32 %v4299_v23, %v7832_v43 }
 0x5ac   : > { %v4428_v49 = vmul.f32 %v4298_v55, %v9067_v47  ;;  %4923 = vst.msk [vmem:[%s8152_s15 + $0xc8] sm:$0xff] %vm4897_vm4, %v4858_v21  ;;  %v4566_v61 = vmul.f32 %v7850_v38, %v4426_v52 }
 0x5ad   : > { %4816 = vadd.xlane.f32.xlu1 %v4815_v9  ;;  %v4429_v42 = vmul.f32 %v4300_v44, %v9069_v15  ;;  %v4567_v24 = vmul.f32 %v7844_v35, %v4427_v45 }
 0x5ae   : > { %v4568_v5 = vmul.f32 %v7850_v38, %v4428_v49 }
 0x5af   : > { %v4677_v22 = vpop.xlane.xlu0 %4676  ;;  %v4818_v54 = vsel %vm1418_vm3, %v4567_v24, 0.0  ;;  %v4569_v53 = vmul.f32 %v7844_v35, %v4429_v42 }
 0x5b0   : > { %v4859_v43 = vadd.f32 %v8145_v50, %v4677_v22  ;;  %v4819_v47 = vadd.f32 %v4818_v54, %v4566_v61 }
 0x5b1   : > { %v4681_v26 = vpop.xlane.xlu1 %4680  ;;  %v4822_v6 = vsel %vm1418_vm3, %v4569_v53, 0.0 }
 0x5b2   : > { %4924 = vst.msk [vmem:[%s8152_s15 + $0xd0] sm:$0xff] %vm4897_vm4, %v4859_v43  ;;  %v4860_v15 = vadd.f32 %v8145_v50, %v4681_v26  ;;  %4820 = vadd.xlane.f32.xlu0 %v4819_v47  ;;  %v4823_v31 = vadd.f32 %v4822_v6, %v4568_v5 }
 0x5b4   : > { %4925 = vst.msk [vmem:[%s8152_s15 + $0xd8] sm:$0xff] %vm4897_vm4, %v4860_v15  ;;  %4824 = vadd.xlane.f32.xlu1 %v4823_v31 }
 0x5b7   : > { %v4685_v35 = vpop.xlane.xlu0 %4684 }
 0x5b8   : > { %v4861_v17 = vadd.f32 %v8145_v50, %v4685_v35 }
 0x5b9   : > { %v4689_v38 = vpop.xlane.xlu1 %4688 }
 0x5ba   : > { %4926 = vst.msk [vmem:[%s8152_s15 + $0xe0] sm:$0xff] %vm4897_vm4, %v4861_v17  ;;  %v4862_v14 = vadd.f32 %v8145_v50, %v4689_v38 }
 0x5bc   : > { %4927 = vst.msk [vmem:[%s8152_s15 + $0xe8] sm:$0xff] %vm4897_vm4, %v4862_v14 }
 0x5bf   : > { %v4693_v0 = vpop.xlane.xlu0 %4692 }
 0x5c0   : > { %v4863_v41 = vadd.f32 %v8145_v50, %v4693_v0 }
 0x5c1   : > { %v4697_v27 = vpop.xlane.xlu1 %4696 }
 0x5c2   : > { %4928 = vst.msk [vmem:[%s8152_s15 + $0xf0] sm:$0xff] %vm4897_vm4, %v4863_v41  ;;  %v4864_v10 = vadd.f32 %v8145_v50, %v4697_v27 }
 0x5c4   : > { %4929 = vst.msk [vmem:[%s8152_s15 + $0xf8] sm:$0xff] %vm4897_vm4, %v4864_v10 }
 0x5c7   : > { %v4701_v2 = vpop.xlane.xlu0 %4700 }
 0x5c8   : > { %v4865_v8 = vadd.f32 %v8145_v50, %v4701_v2 }
 0x5c9   : > { %v4705_v58 = vpop.xlane.xlu1 %4704 }
 0x5ca   : > { %4930 = vst.msk [vmem:[%s8152_s15 + $0x100] sm:$0xff] %vm4897_vm4, %v4865_v8  ;;  %v4866_v40 = vadd.f32 %v8145_v50, %v4705_v58 }
 0x5cc   : > { %4931 = vst.msk [vmem:[%s8152_s15 + $0x108] sm:$0xff] %vm4897_vm4, %v4866_v40 }
 0x5cf   : > { %v4709_v60 = vpop.xlane.xlu0 %4708 }
 0x5d0   : > { %v4867_v28 = vadd.f32 %v8145_v50, %v4709_v60 }
 0x5d1   : > { %v4713_v3 = vpop.xlane.xlu1 %4712 }
 0x5d2   : > { %4932 = vst.msk [vmem:[%s8152_s15 + $0x110] sm:$0xff] %vm4897_vm4, %v4867_v28  ;;  %v4868_v29 = vadd.f32 %v8145_v50, %v4713_v3 }
 0x5d4   : > { %4933 = vst.msk [vmem:[%s8152_s15 + $0x118] sm:$0xff] %vm4897_vm4, %v4868_v29 }
 0x5d7   : > { %v4717_v19 = vpop.xlane.xlu0 %4716 }
 0x5d8   : > { %v4869_v46 = vadd.f32 %v8145_v50, %v4717_v19 }
 0x5d9   : > { %v4721_v11 = vpop.xlane.xlu1 %4720 }
 0x5da   : > { %4934 = vst.msk [vmem:[%s8152_s15 + $0x120] sm:$0xff] %vm4897_vm4, %v4869_v46  ;;  %v4870_v33 = vadd.f32 %v8145_v50, %v4721_v11 }
 0x5dc   : > { %4935 = vst.msk [vmem:[%s8152_s15 + $0x128] sm:$0xff] %vm4897_vm4, %v4870_v33 }
 0x5df   : > { %v4725_v48 = vpop.xlane.xlu0 %4724 }
 0x5e0   : > { %v4871_v39 = vadd.f32 %v8145_v50, %v4725_v48 }
 0x5e1   : > { %v4729_v37 = vpop.xlane.xlu1 %4728 }
 0x5e2   : > { %4936 = vst.msk [vmem:[%s8152_s15 + $0x130] sm:$0xff] %vm4897_vm4, %v4871_v39  ;;  %v4872_v51 = vadd.f32 %v8145_v50, %v4729_v37 }
 0x5e4   : > { %4937 = vst.msk [vmem:[%s8152_s15 + $0x138] sm:$0xff] %vm4897_vm4, %v4872_v51 }
 0x5e7   : > { %v4733_v56 = vpop.xlane.xlu0 %4732 }
 0x5e8   : > { %v4873_v59 = vadd.f32 %v8145_v50, %v4733_v56 }
 0x5ea   : > { %v4737_v4 = vpop.xlane.xlu1 %4736  ;;  %4938 = vst.msk [vmem:[%s8152_s15 + $0x140] sm:$0xff] %vm4897_vm4, %v4873_v59 }
 0x5eb   : > { %v4874_v20 = vadd.f32 %v8145_v50, %v4737_v4 }
 0x5ed   : > { %4939 = vst.msk [vmem:[%s8152_s15 + $0x148] sm:$0xff] %vm4897_vm4, %v4874_v20 }
 0x5ef   : > { %v4741_v63 = vpop.xlane.xlu0 %4740 }
 0x5f0   : > { %v4875_v30 = vadd.f32 %v8145_v50, %v4741_v63 }
 0x5f1   : > { %v4745_v36 = vpop.xlane.xlu1 %4744 }
 0x5f2   : > { %4940 = vst.msk [vmem:[%s8152_s15 + $0x150] sm:$0xff] %vm4897_vm4, %v4875_v30  ;;  %v4876_v34 = vadd.f32 %v8145_v50, %v4745_v36 }
 0x5f4   : > { %4941 = vst.msk [vmem:[%s8152_s15 + $0x158] sm:$0xff] %vm4897_vm4, %v4876_v34 }
 0x5f7   : > { %v4749_v16 = vpop.xlane.xlu0 %4748 }
 0x5f8   : > { %v4877_v62 = vadd.f32 %v8145_v50, %v4749_v16 }
 0x5fa   : > { %v4753_v1 = vpop.xlane.xlu1 %4752  ;;  %4942 = vst.msk [vmem:[%s8152_s15 + $0x160] sm:$0xff] %vm4897_vm4, %v4877_v62 }
 0x5fb   : > { %v4878_v7 = vadd.f32 %v8145_v50, %v4753_v1 }
 0x5fd   : > { %4943 = vst.msk [vmem:[%s8152_s15 + $0x168] sm:$0xff] %vm4897_vm4, %v4878_v7 }
 0x5ff   : > { %v4757_v25 = vpop.xlane.xlu0 %4756 }
 0x600   : > { %v4879_v13 = vadd.f32 %v8145_v50, %v4757_v25 }
 0x602   : > { %v4761_v32 = vpop.xlane.xlu1 %4760  ;;  %4944 = vst.msk [vmem:[%s8152_s15 + $0x170] sm:$0xff] %vm4897_vm4, %v4879_v13 }
 0x603   : > { %v4880_v18 = vadd.f32 %v8145_v50, %v4761_v32 }
 0x605   : > { %4945 = vst.msk [vmem:[%s8152_s15 + $0x178] sm:$0xff] %vm4897_vm4, %v4880_v18 }
 0x607   : > { %v4765_v12 = vpop.xlane.xlu0 %4764 }
 0x608   : > { %v4881_v57 = vadd.f32 %v8145_v50, %v4765_v12 }
 0x60a   : > { %v4769_v52 = vpop.xlane.xlu1 %4768  ;;  %4946 = vst.msk [vmem:[%s8152_s15 + $0x180] sm:$0xff] %vm4897_vm4, %v4881_v57 }
 0x60b   : > { %v4882_v55 = vadd.f32 %v8145_v50, %v4769_v52 }
 0x60d   : > { %4947 = vst.msk [vmem:[%s8152_s15 + $0x188] sm:$0xff] %vm4897_vm4, %v4882_v55 }
 0x60f   : > { %v4773_v21 = vpop.xlane.xlu0 %4772 }
 0x610   : > { %v4883_v23 = vadd.f32 %v8145_v50, %v4773_v21 }
 0x612   : > { %v4777_v9 = vpop.xlane.xlu1 %4776  ;;  %4948 = vst.msk [vmem:[%s8152_s15 + $0x190] sm:$0xff] %vm4897_vm4, %v4883_v23 }
 0x613   : > { %v4884_v45 = vadd.f32 %v8145_v50, %v4777_v9 }
 0x615   : > { %4949 = vst.msk [vmem:[%s8152_s15 + $0x198] sm:$0xff] %vm4897_vm4, %v4884_v45 }
 0x617   : > { %v4781_v44 = vpop.xlane.xlu0 %4780 }
 0x618   : > { %v4885_v49 = vadd.f32 %v8145_v50, %v4781_v44 }
 0x61a   : > { %v4785_v42 = vpop.xlane.xlu1 %4784  ;;  %4950 = vst.msk [vmem:[%s8152_s15 + $0x1a0] sm:$0xff] %vm4897_vm4, %v4885_v49 }
 0x61b   : > { %v4886_v24 = vadd.f32 %v8145_v50, %v4785_v42 }
 0x61d   : > { %4951 = vst.msk [vmem:[%s8152_s15 + $0x1a8] sm:$0xff] %vm4897_vm4, %v4886_v24 }
 0x61f   : > { %v4789_v61 = vpop.xlane.xlu0 %4788 }
 0x620   : > { %v4887_v22 = vadd.f32 %v8145_v50, %v4789_v61 }
 0x622   : > { %v4793_v54 = vpop.xlane.xlu1 %4792  ;;  %4952 = vst.msk [vmem:[%s8152_s15 + $0x1b0] sm:$0xff] %vm4897_vm4, %v4887_v22 }
 0x623   : > { %v4888_v53 = vadd.f32 %v8145_v50, %v4793_v54 }
 0x625   : > { %4953 = vst.msk [vmem:[%s8152_s15 + $0x1b8] sm:$0xff] %vm4897_vm4, %v4888_v53 }
 0x627   : > { %v4797_v43 = vpop.xlane.xlu0 %4796 }
 0x628   : > { %v4889_v47 = vadd.f32 %v8145_v50, %v4797_v43 }
 0x62a   : > { %v4801_v5 = vpop.xlane.xlu1 %4800  ;;  %4954 = vst.msk [vmem:[%s8152_s15 + $0x1c0] sm:$0xff] %vm4897_vm4, %v4889_v47 }
 0x62b   : > { %v4890_v26 = vadd.f32 %v8145_v50, %v4801_v5 }
 0x62d   : > { %4955 = vst.msk [vmem:[%s8152_s15 + $0x1c8] sm:$0xff] %vm4897_vm4, %v4890_v26 }
 0x62f   : > { %v4805_v6 = vpop.xlane.xlu0 %4804 }
 0x630   : > { %v4891_v15 = vadd.f32 %v8145_v50, %v4805_v6 }
 0x632   : > { %v4809_v31 = vpop.xlane.xlu1 %4808  ;;  %4956 = vst.msk [vmem:[%s8152_s15 + $0x1d0] sm:$0xff] %vm4897_vm4, %v4891_v15 }
 0x633   : > { %v4892_v35 = vadd.f32 %v8145_v50, %v4809_v31 }
 0x635   : > { %4957 = vst.msk [vmem:[%s8152_s15 + $0x1d8] sm:$0xff] %vm4897_vm4, %v4892_v35 }
 0x637   : > { %v4813_v17 = vpop.xlane.xlu0 %4812 }
 0x638   : > { %v4893_v38 = vadd.f32 %v8145_v50, %v4813_v17 }
 0x63a   : > { %v4817_v14 = vpop.xlane.xlu1 %4816  ;;  %4958 = vst.msk [vmem:[%s8152_s15 + $0x1e0] sm:$0xff] %vm4897_vm4, %v4893_v38 }
 0x63b   : > { %v4894_v0 = vadd.f32 %v8145_v50, %v4817_v14 }
 0x63d   : > { %4959 = vst.msk [vmem:[%s8152_s15 + $0x1e8] sm:$0xff] %vm4897_vm4, %v4894_v0 }
 0x63f   : > { %v4821_v41 = vpop.xlane.xlu0 %4820 }
 0x640   : > { %v4895_v27 = vadd.f32 %v8145_v50, %v4821_v41 }
 0x641   : > { %v4825_v10 = vpop.xlane.xlu1 %4824 }
 0x642   : > { %4960 = vst.msk [vmem:[%s8152_s15 + $0x1f0] sm:$0xff] %vm4897_vm4, %v4895_v27  ;;  %v4896_v2 = vadd.f32 %v8145_v50, %v4825_v10 }
 0x644   : > { %4961 = vst.msk [vmem:[%s8152_s15 + $0x1f8] sm:$0xff] %vm4897_vm4, %v4896_v2 }
 0x645 PF: > { %s27_s27 = sadd.s32 1, %s5699_s27  }
 0x646   : > { %p24_p7 = scmp.ge.s32.totalorder %s27_s27, 4  }
 0x648   :  { %26 = sbr.rel (!%p24_p7) target bundleno = 5 (0x5), region = 115 }
 0x64f   :  { %4984 = vsyncpa [#allocation4], 1 }
 0x650   :  { %4986 = vsyncpa [#allocation4 + $0x1], 1 }
 0x651   :  { %4987 = vsyncpa [#allocation6], 1 }

</bundles_post_ra>
